<compile_context>
chip_gen: v7x
topology: tpu7x:2x2x1
jax: 0.10.0
libtpu: 0.0.40
codegen_flags: <defaults>
</compile_context>

<pallas_src>
import functools

import numpy as np
import jax
import jax.numpy as jnp
from jax.experimental import pallas as pl
from jax.experimental.pallas import tpu as pltpu


def _round_up(x, m):
    return (x + m - 1) // m * m


# ----------------------------------------------------------------------------
# Kernel 1: fused SE_net (3x conv3x3 via im2col) + Sout combine
# ----------------------------------------------------------------------------
def _se_fused_kernel(sli_ref, tr_ref, mask_ref, w1_ref, b1_ref, w2_ref, b2_ref,
                     w3_ref, b3_ref, sout_ref, sbp_ref, buf_ref,
                     *, D, C, margin):
    """One batch element per grid step.

    sli_ref/tr_ref: (1, 1, A*D)  flattened sinogram, pixels on the lane axis
    mask_ref:       (2, A*D)     column masks for dw=-1 / dw=+1 taps (f32)
    w1_ref:(C,18) w2_ref:(C,9C)  transposed im2col weights (bf16)
    w3_ref:(9, C)                per-tap layer-3 weights   (bf16)
    b*_ref:         (*, 1)       f32 biases
    sout_ref:       (1, 1, A*D)  f32 Sout
    sbp_ref:        (1, 1, A*D)  bf16 Sout (fed to the backprojection)
    buf_ref:        (C, A*D + 2*margin) f32 VMEM scratch (zero margins = halo)
    """
    AD = sout_ref.shape[2]
    m = margin

    # Zero ONLY the halo margins (never written by the interior stores).
    # Done every step so results are correct even if the batch axis is
    # sharded across cores; it is tiny vs. the old full-scratch memset.
    zeros_m = jnp.zeros((buf_ref.shape[0], m), jnp.float32)
    buf_ref[:, 0:m] = zeros_m
    buf_ref[:, m + AD:m + AD + m] = zeros_m

    sli_n = sli_ref[0] * (1.0 / 255.0)          # (1, AD) f32
    tr = tr_ref[0]                              # (1, AD) f32

    buf_ref[0:1, m:m + AD] = sli_n              # channel 0 = SLI/255
    buf_ref[1:2, m:m + AD] = tr                 # channel 1 = Tr

    def shifted_tap(cin, kh, kw):
        # Lane-shifted activation slice for one conv tap; horizontal
        # wrap-around is killed by the column masks (applied in f32, then a
        # single bf16 cast so the MXU sees bf16 operands).
        s = (kh - 1) * D + (kw - 1)
        t = buf_ref[0:cin, m + s:m + s + AD]                 # (cin, AD) f32
        if kw == 0:
            t = t * mask_ref[0:1, :]
        elif kw == 2:
            t = t * mask_ref[1:2, :]
        return t.astype(jnp.bfloat16)

    def im2col(cin):
        # (9*cin, AD) bf16 patch matrix (tap-major, cin within tap).
        cols = [shifted_tap(cin, kh, kw) for kh in range(3) for kw in range(3)]
        return jnp.concatenate(cols, axis=0)

    # layer 1: Cin=2 -> C, ReLU   (bf16 MXU, f32 accumulate)
    h = jnp.dot(w1_ref[...], im2col(2), preferred_element_type=jnp.float32)
    h = jnp.maximum(h + b1_ref[...], 0.0)                    # (C, AD) f32
    buf_ref[0:C, m:m + AD] = h

    # layer 2: C -> C, ReLU
    h = jnp.dot(w2_ref[...], im2col(C), preferred_element_type=jnp.float32)
    h = jnp.maximum(h + b2_ref[...], 0.0)
    buf_ref[0:C, m:m + AD] = h

    # layer 3: C -> 1 (no ReLU). Cout=1 -> accumulate 9 per-tap matmuls of the
    # already-resident shifted activations instead of a second im2col concat.
    se = jnp.zeros((1, AD), jnp.float32)
    tap = 0
    for kh in range(3):
        for kw in range(3):
            se = se + jnp.dot(w3_ref[tap:tap + 1, :], shifted_tap(C, kh, kw),
                              preferred_element_type=jnp.float32)
            tap += 1
    se = se + b3_ref[...]                                    # (1, AD)

    # Sout = (SLI/255 + SE * Tr) * 255
    sout = (sli_n + se * tr) * 255.0
    sout_ref[0] = sout
    sbp_ref[0] = sout.astype(jnp.bfloat16)


def se_fused(sli_flat, tr_flat, col_mask, w1t, b1, w2t, b2, w3t, b3, *, D, C):
    N, _, AD = sli_flat.shape
    margin = D + 1
    kernel = functools.partial(_se_fused_kernel, D=D, C=C, margin=margin)
    const = lambda n: (0, 0)
    per_n = lambda n: (n, 0, 0)
    return pl.pallas_call(
        kernel,
        out_shape=(jax.ShapeDtypeStruct((N, 1, AD), jnp.float32),
                   jax.ShapeDtypeStruct((N, 1, AD), jnp.bfloat16)),
        grid=(N,),
        in_specs=[
            pl.BlockSpec((1, 1, AD), per_n),
            pl.BlockSpec((1, 1, AD), per_n),
            pl.BlockSpec((2, AD), const),
            pl.BlockSpec((C, 18), const),
            pl.BlockSpec((C, 1), const),
            pl.BlockSpec((C, 9 * C), const),
            pl.BlockSpec((C, 1), const),
            pl.BlockSpec((9, C), const),
            pl.BlockSpec((1, 1), const),
        ],
        out_specs=[pl.BlockSpec((1, 1, AD), per_n),
                   pl.BlockSpec((1, 1, AD), per_n)],
        scratch_shapes=[pltpu.VMEM((C, AD + 2 * margin), jnp.float32)],
        compiler_params=pltpu.CompilerParams(
            dimension_semantics=("parallel",),
            vmem_limit_bytes=64 << 20),
    )(sli_flat, tr_flat, col_mask, w1t, b1, w2t, b2, w3t, b3)
    # TODO(synk): for production sinogram sizes (A*D*C f32 scratch >> VMEM on
    # v7x), tile the A (row) axis with a 3-row halo as a second grid dim and
    # switch the scratch to a 2-D rows x (D+2) layout (drops col_mask).


# ----------------------------------------------------------------------------
# Kernel 2: batched, K-tiled FBP backprojection (ramp filter pre-folded)
#           Xcorr = Sout @ Bf4^T   (Bf4 = 4 * B_backproj . F_ramlak, bf16)
#           Sout is resident in VMEM (full (N, AD) bf16 block, DMA'd once).
# ----------------------------------------------------------------------------
def _bp_kernel(s_ref, b_ref, o_ref, acc_ref, *, tk):
    k = pl.program_id(1)

    @pl.when(k == 0)
    def _():
        acc_ref[...] = jnp.zeros_like(acc_ref)

    off = pl.multiple_of(k * tk, tk)
    s = s_ref[:, pl.ds(off, tk)]                 # (N, tk) bf16, already VMEM
    acc_ref[...] += jnp.dot(s, b_ref[...], preferred_element_type=jnp.float32)

    @pl.when(k == pl.num_programs(1) - 1)
    def _():
        o_ref[...] = acc_ref[...]


def backproject(sout_bf16, bp_t_bf16, *, tk=512, tp=512):
    N, AD = sout_bf16.shape
    _, P = bp_t_bf16.shape

    # Pad K / P up to tile multiples (zero padding is exact for the matmul)
    # instead of silently falling back to untiled operands.
    tk = min(tk, _round_up(AD, 128))
    tp = min(tp, _round_up(P, 128))
    AD_p = _round_up(AD, tk)
    P_p = _round_up(P, tp)
    s = sout_bf16
    b = bp_t_bf16
    if AD_p != AD:
        s = jnp.pad(s, ((0, 0), (0, AD_p - AD)))
    if AD_p != AD or P_p != P:
        b = jnp.pad(b, ((0, AD_p - AD), (0, P_p - P)))
    # TODO(synk): pre-pad B on the host for production shapes.

    out = pl.pallas_call(
        functools.partial(_bp_kernel, tk=tk),
        out_shape=jax.ShapeDtypeStruct((N, P_p), jnp.float32),
        grid=(P_p // tp, AD_p // tk),            # reduction (K) axis last
        in_specs=[
            pl.BlockSpec((N, AD_p), lambda p, k: (0, 0)),   # resident Sout
            pl.BlockSpec((tk, tp), lambda p, k: (k, p)),
        ],
        out_specs=pl.BlockSpec((N, tp), lambda p, k: (0, p)),
        scratch_shapes=[pltpu.VMEM((N, tp), jnp.float32)],
        compiler_params=pltpu.CompilerParams(
            dimension_semantics=("parallel", "arbitrary"),
            vmem_limit_bytes=64 << 20),
    )(s, b)
    return out[:, :P] if P_p != P else out
    # TODO(synk): B has only 2 nonzeros per row per angle (linear interp); a
    # scalar-prefetched gather backprojection (PrefetchScalarGridSpec) removes
    # the dense-B HBM traffic at clinical sizes. Per-generation B quantization
    # (fp8 on v7x, int8 on v5e/v6e, per-tile scale in the finalize) is a
    # further ~2x HBM win on this mem-bound matmul.


# ----------------------------------------------------------------------------
# Host-side geometry / constants
# ----------------------------------------------------------------------------
def build_bp_matrix(A, D, H, W):
    """Ram-Lak filter folded into a parallel-beam backprojection matrix.

    Returns (A*D, P) bfloat16 matrix Bf4^T with all scalar factors
    (dt, pi/A, and the 4.0 = (4/255)*255 of the forward pass) folded in.
    """
    # TODO(synk): exact ODL fan-beam geometry (initialization()/build_gemotry())
    # is not reproducible here; parallel-beam Ram-Lak approximation.
    n = np.arange(-(D - 1), D)
    h = np.zeros(n.shape, dtype=np.float64)
    h[n == 0] = 0.25
    odd = (n % 2) != 0
    h[odd] = -1.0 / (np.pi ** 2 * n[odd].astype(np.float64) ** 2)

    det = np.linspace(-1.0, 1.0, D)
    dt = det[1] - det[0]
    F = np.zeros((D, D), dtype=np.float64)
    for j in range(D):
        F[j, :] = h[(np.arange(D) - j) + (D - 1)]
    F *= dt

    thetas = np.pi * np.arange(A) / A
    ys, xs = np.meshgrid(np.linspace(-1, 1, H), np.linspace(-1, 1, W),
                         indexing="ij")
    xs, ys = xs.ravel(), ys.ravel()
    P = H * W
    B = np.zeros((P, A * D), dtype=np.float64)
    rows = np.arange(P)
    for a, th in enumerate(thetas):
        t = xs * np.cos(th) + ys * np.sin(th)
        idx = (t - det[0]) / dt
        i0 = np.clip(np.floor(idx).astype(np.int64), 0, D - 2)
        frac = np.clip(idx - i0, 0.0, 1.0)
        valid = (idx >= 0.0) & (idx <= D - 1)
        B[rows, a * D + i0] = np.where(valid, 1.0 - frac, 0.0)
        B[rows, a * D + i0 + 1] = np.where(valid, frac, 0.0)
    B *= np.pi / A

    # Fold the detector ramp filter and all scalar factors into B.
    Bf = np.einsum("pae,de->pad", B.reshape(P, A, D), F).reshape(P, A * D)
    Bf4_T = (4.0 * Bf).T                                  # (A*D, P)
    return jnp.asarray(Bf4_T, jnp.bfloat16)


def build_col_masks(A, D):
    j = np.arange(A * D) % D
    m = np.stack([(j != 0), (j != D - 1)]).astype(np.float32)   # (2, A*D)
    return jnp.asarray(m)


# ----------------------------------------------------------------------------
# PriorNet forward (NCHW in / NCHW out, like the PyTorch module)
# ----------------------------------------------------------------------------
def priornet_forward(SLI, Tr, params, bp_t_bf16, col_mask, img_hw):
    N, _, A, D = SLI.shape
    AD = A * D
    C = params["w1"].shape[-1]
    H, W = img_hw

    sli = SLI.reshape(N, 1, AD).astype(jnp.float32)
    tr = Tr.reshape(N, 1, AD).astype(jnp.float32)

    # Transposed im2col weights: (Cout, 9*Cin), column order (kh, kw, cin).
    # bf16 weights -> bf16 MXU operands (f32 accumulation inside the kernel).
    w1t = params["w1"].reshape(9 * 2, C).T.astype(jnp.bfloat16)
    w2t = params["w2"].reshape(9 * C, C).T.astype(jnp.bfloat16)
    w3t = params["w3"].reshape(9, C).astype(jnp.bfloat16)       # per-tap (9, C)
    b1 = params["b1"].reshape(C, 1)
    b2 = params["b2"].reshape(C, 1)
    b3 = params["b3"].reshape(1, 1)

    sout_flat, sbp_flat = se_fused(sli, tr, col_mask, w1t, b1, w2t, b2,
                                   w3t, b3, D=D, C=C)     # f32 / bf16 (N,1,AD)
    xcorr_flat = backproject(sbp_flat.reshape(N, AD), bp_t_bf16)     # (N, P)

    Sout = sout_flat.reshape(N, 1, A, D)
    Xcorr = xcorr_flat.reshape(N, 1, H, W)
    return Sout, Xcorr


# ----------------------------------------------------------------------------
# Pure-JAX reference (independent formulation, bf16-matmul-matched) for sanity
# ----------------------------------------------------------------------------
def _conv3x3_ref(x, w, b, relu):
    Nb, Hh, Ww, Cin = x.shape
    Cout = w.shape[-1]
    xp = jnp.pad(x, ((0, 0), (1, 1), (1, 1), (0, 0)))
    acc = jnp.zeros((Nb, Hh, Ww, Cout), jnp.float32)
    for kh in range(3):
        for kw in range(3):
            acc = acc + jnp.einsum(
                "nhwc,cf->nhwf",
                xp[:, kh:kh + Hh, kw:kw + Ww, :].astype(jnp.bfloat16),
                w[kh, kw].astype(jnp.bfloat16),
                preferred_element_type=jnp.float32)
    acc = acc + b
    return jnp.maximum(acc, 0.0) if relu else acc


def _forward_ref(SLI, Tr, params, bp_t_bf16, img_hw):
    sli = jnp.transpose(SLI, (0, 2, 3, 1)).astype(jnp.float32)
    tr = jnp.transpose(Tr, (0, 2, 3, 1)).astype(jnp.float32)
    x = jnp.concatenate([sli / 255.0, tr], axis=-1)
    h = _conv3x3_ref(x, params["w1"], params["b1"], True)
    h = _conv3x3_ref(h, params["w2"], params["b2"], True)
    se = _conv3x3_ref(h, params["w3"], params["b3"], False)
    sout = (sli / 255.0 + se * tr) * 255.0                   # (N, A, D, 1)
    Nb, A, D, _ = sout.shape
    H, W = img_hw
    s_flat = sout[..., 0].reshape(Nb, A * D)
    xcorr = jnp.dot(s_flat.astype(jnp.bfloat16), bp_t_bf16,
                    preferred_element_type=jnp.float32)
    return (jnp.transpose(sout, (0, 3, 1, 2)),
            xcorr.reshape(Nb, 1, H, W))


# ----------------------------------------------------------------------------
if __name__ == "__main__":
    N, A, D = 2, 16, 16          # batch, sinogram angles, detector bins
    H, W = 16, 16                # reconstructed image size
    C = 32                       # SE_net hidden channels

    key = jax.random.PRNGKey(0)
    k1, k2, k3, k4, k5 = jax.random.split(key, 5)
    params = {
        "w1": jax.random.normal(k1, (3, 3, 2, C), jnp.float32) * 0.1,
        "b1": jnp.zeros((C,), jnp.float32),
        "w2": jax.random.normal(k2, (3, 3, C, C), jnp.float32) * 0.05,
        "b2": jnp.zeros((C,), jnp.float32),
        "w3": jax.random.normal(k3, (3, 3, C, 1), jnp.float32) * 0.05,
        "b3": jnp.zeros((1,), jnp.float32),
    }

    SLI = jax.random.uniform(k4, (N, 1, A, D), jnp.float32) * 255.0
    Tr = (jax.random.uniform(k5, (N, 1, A, D)) > 0.7).astype(jnp.float32)

    bp_t_bf16 = build_bp_matrix(A, D, H, W)        # (A*D, H*W) bf16
    col_mask = build_col_masks(A, D)               # (2, A*D)

    fwd = jax.jit(functools.partial(priornet_forward, img_hw=(H, W)))
    Sout, Xcorr = fwd(SLI, Tr, params, bp_t_bf16, col_mask)
    jax.block_until_ready((Sout, Xcorr))

    Sout_ref, Xcorr_ref = _forward_ref(SLI, Tr, params, bp_t_bf16, (H, W))

    assert Sout.shape == (N, 1, A, D) and Xcorr.shape == (N, 1, H, W)
    assert jnp.allclose(Sout, Sout_ref, rtol=1e-2, atol=1.0), "Sout mismatch"
    rel = jnp.max(jnp.abs(Xcorr - Xcorr_ref)) / (
        jnp.max(jnp.abs(Xcorr_ref)) + 1e-6)
    assert rel < 2e-2, f"Xcorr rel err {rel}"

    print("KERNEL_OK")
</pallas_src>

<mosaic_0001>
module attributes {stable_mosaic.version = 11 : i64} {
  func.func @_bp_kernel(%arg0: i32, %arg1: i32, %arg2: memref<2x256xbf16, #tpu.memory_space<vmem>>, %arg3: memref<256x256xbf16, #tpu.memory_space<vmem>>, %arg4: memref<2x256xf32, #tpu.memory_space<vmem>>, %arg5: memref<2x256xf32, #tpu.memory_space<vmem>>) attributes {dimension_semantics = [#tpu.dimension_semantics<parallel>, #tpu.dimension_semantics<arbitrary>], iteration_bounds = array<i64: 1, 1>, scalar_prefetch = 0 : i64, scratch_operands = 1 : i64, tpu.core_type = #tpu.core_type<tc>, window_params = [{pipeline_mode = #tpu.pipeline_mode<synchronous>, transform_indices = @transform_0, window_bounds = array<i64: 2, 256>}, {transform_indices = @transform_1, window_bounds = array<i64: 256, 256>}, {transform_indices = @transform_2, window_bounds = array<i64: 2, 256>}]} {
    %c0_i32 = arith.constant 0 : i32
    %0 = arith.cmpi eq, %arg1, %c0_i32 : i32
    %1 = arith.extui %0 : i1 to i32
    %c0_i32_0 = arith.constant 0 : i32
    %2 = arith.cmpi ne, %1, %c0_i32_0 : i32
    scf.if %2 {
      %cst_9 = arith.constant 0.000000e+00 : f32
      %15 = vector.broadcast %cst_9 : f32 to vector<2x256xf32>
      %c0_10 = arith.constant 0 : index
      %c0_11 = arith.constant 0 : index
      %16 = vector.load %arg5[%c0_10, %c0_11] : memref<2x256xf32, #tpu.memory_space<vmem>>, vector<2x256xf32>
      tpu.vector_store %arg5[%c0_10, %c0_11], %15 {strides = array<i32>} : memref<2x256xf32, #tpu.memory_space<vmem>>, vector<2x256xf32>,
    } else {
    }
    %c256_i32 = arith.constant 256 : i32
    %3 = arith.muli %arg1, %c256_i32 : i32
    %4 = tpu.assume_multiple %3, 256 : i32
    %c0 = arith.constant 0 : index
    %5 = arith.index_cast %4 : i32 to index
    %6 = vector.load %arg2[%c0, %5] : memref<2x256xbf16, #tpu.memory_space<vmem>>, vector<2x256xbf16>
    %c0_1 = arith.constant 0 : index
    %c0_2 = arith.constant 0 : index
    %7 = vector.load %arg5[%c0_1, %c0_2] : memref<2x256xf32, #tpu.memory_space<vmem>>, vector<2x256xf32>
    %c0_3 = arith.constant 0 : index
    %c0_4 = arith.constant 0 : index
    %8 = vector.load %arg3[%c0_3, %c0_4] : memref<256x256xbf16, #tpu.memory_space<vmem>>, vector<256x256xbf16>
    %cst = arith.constant dense<0.000000e+00> : vector<2x256xf32>
    %9 = tpu.matmul %6, %8, %cst {dimension_numbers = #tpu.dot_dimension_numbers<[1], [0], [0], [1], [0, 0, 1, 1], [], []>} : vector<2x256xbf16>, vector<256x256xbf16>, vector<2x256xf32> -> vector<2x256xf32>
    %10 = arith.addf %7, %9 : vector<2x256xf32>
    %c0_5 = arith.constant 0 : index
    %c0_6 = arith.constant 0 : index
    %11 = vector.load %arg5[%c0_5, %c0_6] : memref<2x256xf32, #tpu.memory_space<vmem>>, vector<2x256xf32>
    tpu.vector_store %arg5[%c0_5, %c0_6], %10 {strides = array<i32>} : memref<2x256xf32, #tpu.memory_space<vmem>>, vector<2x256xf32>,
    %c0_i32_7 = arith.constant 0 : i32
    %12 = arith.cmpi eq, %arg1, %c0_i32_7 : i32
    %13 = arith.extui %12 : i1 to i32
    %c0_i32_8 = arith.constant 0 : i32
    %14 = arith.cmpi ne, %13, %c0_i32_8 : i32
    scf.if %14 {
      %c0_9 = arith.constant 0 : index
      %c0_10 = arith.constant 0 : index
      %15 = vector.load %arg5[%c0_9, %c0_10] : memref<2x256xf32, #tpu.memory_space<vmem>>, vector<2x256xf32>
      %c0_11 = arith.constant 0 : index
      %c0_12 = arith.constant 0 : index
      %16 = vector.load %arg4[%c0_11, %c0_12] : memref<2x256xf32, #tpu.memory_space<vmem>>, vector<2x256xf32>
      tpu.vector_store %arg4[%c0_11, %c0_12], %15 {strides = array<i32>} : memref<2x256xf32, #tpu.memory_space<vmem>>, vector<2x256xf32>,
    } else {
    }
    return
  }
  func.func @transform_0(%arg0: i32, %arg1: i32) -> (i32, i32) {
    %c0_i32 = arith.constant 0 : i32
    %c0_i32_0 = arith.constant 0 : i32
    %c0_i32_1 = arith.constant 0 : i32
    return %c0_i32, %c0_i32_0 : i32, i32
  }
  func.func @transform_1(%arg0: i32, %arg1: i32) -> (i32, i32) {
    %c0_i32 = arith.constant 0 : i32
    return %arg1, %arg0 : i32, i32
  }
  func.func @transform_2(%arg0: i32, %arg1: i32) -> (i32, i32) {
    %c0_i32 = arith.constant 0 : i32
    %c0_i32_0 = arith.constant 0 : i32
    return %c0_i32, %arg0 : i32, i32
  }
}

module attributes {stable_mosaic.version = 11 : i64} {
  func.func @_se_fused_kernel(%arg0: i32, %arg1: memref<1x1x256xf32, #tpu.memory_space<vmem>>, %arg2: memref<1x1x256xf32, #tpu.memory_space<vmem>>, %arg3: memref<2x256xf32, #tpu.memory_space<vmem>>, %arg4: memref<32x18xbf16, #tpu.memory_space<vmem>>, %arg5: memref<32x1xf32, #tpu.memory_space<vmem>>, %arg6: memref<32x288xbf16, #tpu.memory_space<vmem>>, %arg7: memref<32x1xf32, #tpu.memory_space<vmem>>, %arg8: memref<9x32xbf16, #tpu.memory_space<vmem>>, %arg9: memref<1x1xf32, #tpu.memory_space<vmem>>, %arg10: memref<1x1x256xf32, #tpu.memory_space<vmem>>, %arg11: memref<1x1x256xbf16, #tpu.memory_space<vmem>>, %arg12: memref<32x290xf32, #tpu.memory_space<vmem>>) attributes {dimension_semantics = [#tpu.dimension_semantics<parallel>], iteration_bounds = array<i64: 2>, scalar_prefetch = 0 : i64, scratch_operands = 1 : i64, tpu.core_type = #tpu.core_type<tc>, window_params = [{transform_indices = @transform_0, window_bounds = array<i64: 1, 1, 256>}, {transform_indices = @transform_1, window_bounds = array<i64: 1, 1, 256>}, {pipeline_mode = #tpu.pipeline_mode<synchronous>, transform_indices = @transform_2, window_bounds = array<i64: 2, 256>}, {pipeline_mode = #tpu.pipeline_mode<synchronous>, transform_indices = @transform_3, window_bounds = array<i64: 32, 18>}, {pipeline_mode = #tpu.pipeline_mode<synchronous>, transform_indices = @transform_4, window_bounds = array<i64: 32, 1>}, {pipeline_mode = #tpu.pipeline_mode<synchronous>, transform_indices = @transform_5, window_bounds = array<i64: 32, 288>}, {pipeline_mode = #tpu.pipeline_mode<synchronous>, transform_indices = @transform_6, window_bounds = array<i64: 32, 1>}, {pipeline_mode = #tpu.pipeline_mode<synchronous>, transform_indices = @transform_7, window_bounds = array<i64: 9, 32>}, {pipeline_mode = #tpu.pipeline_mode<synchronous>, transform_indices = @transform_8, window_bounds = array<i64: 1, 1>}, {transform_indices = @transform_9, window_bounds = array<i64: 1, 1, 256>}, {transform_indices = @transform_10, window_bounds = array<i64: 1, 1, 256>}]} {
    %cst = arith.constant 0.000000e+00 : f32
    %0 = vector.broadcast %cst : f32 to vector<32x17xf32>
    %c0 = arith.constant 0 : index
    %c0_0 = arith.constant 0 : index
    %1 = vector.load %arg12[%c0, %c0_0] : memref<32x290xf32, #tpu.memory_space<vmem>>, vector<32x17xf32>
    tpu.vector_store %arg12[%c0, %c0_0], %0 {strides = array<i32>} : memref<32x290xf32, #tpu.memory_space<vmem>>, vector<32x17xf32>,
    %c0_1 = arith.constant 0 : index
    %c273 = arith.constant 273 : index
    %2 = vector.load %arg12[%c0_1, %c273] : memref<32x290xf32, #tpu.memory_space<vmem>>, vector<32x17xf32>
    tpu.vector_store %arg12[%c0_1, %c273], %0 {strides = array<i32>} : memref<32x290xf32, #tpu.memory_space<vmem>>, vector<32x17xf32>,
    %c0_2 = arith.constant 0 : index
    %c0_3 = arith.constant 0 : index
    %c0_4 = arith.constant 0 : index
    %3 = vector.load %arg1[%c0_2, %c0_3, %c0_4] : memref<1x1x256xf32, #tpu.memory_space<vmem>>, vector<1x1x256xf32>
    %4 = vector.shape_cast %3 : vector<1x1x256xf32> to vector<1x256xf32>
    %cst_5 = arith.constant 0.00392156886 : f32
    %5 = vector.broadcast %cst_5 : f32 to vector<1x256xf32>
    %6 = arith.mulf %4, %5 : vector<1x256xf32>
    %c0_6 = arith.constant 0 : index
    %c0_7 = arith.constant 0 : index
    %c0_8 = arith.constant 0 : index
    %7 = vector.load %arg2[%c0_6, %c0_7, %c0_8] : memref<1x1x256xf32, #tpu.memory_space<vmem>>, vector<1x1x256xf32>
    %8 = vector.shape_cast %7 : vector<1x1x256xf32> to vector<1x256xf32>
    %c0_9 = arith.constant 0 : index
    %c17 = arith.constant 17 : index
    %9 = vector.load %arg12[%c0_9, %c17] : memref<32x290xf32, #tpu.memory_space<vmem>>, vector<1x256xf32>
    tpu.vector_store %arg12[%c0_9, %c17], %6 {strides = array<i32>} : memref<32x290xf32, #tpu.memory_space<vmem>>, vector<1x256xf32>,
    %c1 = arith.constant 1 : index
    %c17_10 = arith.constant 17 : index
    %10 = vector.load %arg12[%c1, %c17_10] : memref<32x290xf32, #tpu.memory_space<vmem>>, vector<1x256xf32>
    tpu.vector_store %arg12[%c1, %c17_10], %8 {strides = array<i32>} : memref<32x290xf32, #tpu.memory_space<vmem>>, vector<1x256xf32>,
    %c0_11 = arith.constant 0 : index
    %c0_12 = arith.constant 0 : index
    %11 = vector.load %arg4[%c0_11, %c0_12] : memref<32x18xbf16, #tpu.memory_space<vmem>>, vector<32x18xbf16>
    %c0_13 = arith.constant 0 : index
    %c0_14 = arith.constant 0 : index
    %12 = vector.load %arg12[%c0_13, %c0_14] : memref<32x290xf32, #tpu.memory_space<vmem>>, vector<2x256xf32>
    %c0_15 = arith.constant 0 : index
    %c0_16 = arith.constant 0 : index
    %13 = vector.load %arg3[%c0_15, %c0_16] : memref<2x256xf32, #tpu.memory_space<vmem>>, vector<1x256xf32>
    %14 = vector.broadcast %13 : vector<1x256xf32> to vector<2x256xf32>
    %15 = arith.mulf %12, %14 : vector<2x256xf32>
    %16 = arith.truncf %15 : vector<2x256xf32> to vector<2x256xbf16>
    %c0_17 = arith.constant 0 : index
    %c1_18 = arith.constant 1 : index
    %17 = vector.load %arg12[%c0_17, %c1_18] : memref<32x290xf32, #tpu.memory_space<vmem>>, vector<2x256xf32>
    %18 = arith.truncf %17 : vector<2x256xf32> to vector<2x256xbf16>
    %c0_19 = arith.constant 0 : index
    %c2 = arith.constant 2 : index
    %19 = vector.load %arg12[%c0_19, %c2] : memref<32x290xf32, #tpu.memory_space<vmem>>, vector<2x256xf32>
    %c1_20 = arith.constant 1 : index
    %c0_21 = arith.constant 0 : index
    %20 = vector.load %arg3[%c1_20, %c0_21] : memref<2x256xf32, #tpu.memory_space<vmem>>, vector<1x256xf32>
    %21 = vector.broadcast %20 : vector<1x256xf32> to vector<2x256xf32>
    %22 = arith.mulf %19, %21 : vector<2x256xf32>
    %23 = arith.truncf %22 : vector<2x256xf32> to vector<2x256xbf16>
    %c0_22 = arith.constant 0 : index
    %c16 = arith.constant 16 : index
    %24 = vector.load %arg12[%c0_22, %c16] : memref<32x290xf32, #tpu.memory_space<vmem>>, vector<2x256xf32>
    %c0_23 = arith.constant 0 : index
    %c0_24 = arith.constant 0 : index
    %25 = vector.load %arg3[%c0_23, %c0_24] : memref<2x256xf32, #tpu.memory_space<vmem>>, vector<1x256xf32>
    %26 = vector.broadcast %25 : vector<1x256xf32> to vector<2x256xf32>
    %27 = arith.mulf %24, %26 : vector<2x256xf32>
    %28 = arith.truncf %27 : vector<2x256xf32> to vector<2x256xbf16>
    %c0_25 = arith.constant 0 : index
    %c17_26 = arith.constant 17 : index
    %29 = vector.load %arg12[%c0_25, %c17_26] : memref<32x290xf32, #tpu.memory_space<vmem>>, vector<2x256xf32>
    %30 = arith.truncf %29 : vector<2x256xf32> to vector<2x256xbf16>
    %c0_27 = arith.constant 0 : index
    %c18 = arith.constant 18 : index
    %31 = vector.load %arg12[%c0_27, %c18] : memref<32x290xf32, #tpu.memory_space<vmem>>, vector<2x256xf32>
    %c1_28 = arith.constant 1 : index
    %c0_29 = arith.constant 0 : index
    %32 = vector.load %arg3[%c1_28, %c0_29] : memref<2x256xf32, #tpu.memory_space<vmem>>, vector<1x256xf32>
    %33 = vector.broadcast %32 : vector<1x256xf32> to vector<2x256xf32>
    %34 = arith.mulf %31, %33 : vector<2x256xf32>
    %35 = arith.truncf %34 : vector<2x256xf32> to vector<2x256xbf16>
    %c0_30 = arith.constant 0 : index
    %c32 = arith.constant 32 : index
    %36 = vector.load %arg12[%c0_30, %c32] : memref<32x290xf32, #tpu.memory_space<vmem>>, vector<2x256xf32>
    %c0_31 = arith.constant 0 : index
    %c0_32 = arith.constant 0 : index
    %37 = vector.load %arg3[%c0_31, %c0_32] : memref<2x256xf32, #tpu.memory_space<vmem>>, vector<1x256xf32>
    %38 = vector.broadcast %37 : vector<1x256xf32> to vector<2x256xf32>
    %39 = arith.mulf %36, %38 : vector<2x256xf32>
    %40 = arith.truncf %39 : vector<2x256xf32> to vector<2x256xbf16>
    %c0_33 = arith.constant 0 : index
    %c33 = arith.constant 33 : index
    %41 = vector.load %arg12[%c0_33, %c33] : memref<32x290xf32, #tpu.memory_space<vmem>>, vector<2x256xf32>
    %42 = arith.truncf %41 : vector<2x256xf32> to vector<2x256xbf16>
    %c0_34 = arith.constant 0 : index
    %c34 = arith.constant 34 : index
    %43 = vector.load %arg12[%c0_34, %c34] : memref<32x290xf32, #tpu.memory_space<vmem>>, vector<2x256xf32>
    %c1_35 = arith.constant 1 : index
    %c0_36 = arith.constant 0 : index
    %44 = vector.load %arg3[%c1_35, %c0_36] : memref<2x256xf32, #tpu.memory_space<vmem>>, vector<1x256xf32>
    %45 = vector.broadcast %44 : vector<1x256xf32> to vector<2x256xf32>
    %46 = arith.mulf %43, %45 : vector<2x256xf32>
    %47 = arith.truncf %46 : vector<2x256xf32> to vector<2x256xbf16>
    %48 = tpu.concatenate %16, %18, %23, %28, %30, %35, %40, %42, %47 in 0 : vector<2x256xbf16>, vector<2x256xbf16>, vector<2x256xbf16>, vector<2x256xbf16>, vector<2x256xbf16>, vector<2x256xbf16>, vector<2x256xbf16>, vector<2x256xbf16>, vector<2x256xbf16> -> vector<18x256xbf16>
    %cst_37 = arith.constant dense<0.000000e+00> : vector<32x256xf32>
    %49 = tpu.matmul %11, %48, %cst_37 {dimension_numbers = #tpu.dot_dimension_numbers<[1], [0], [0], [1], [0, 0, 1, 1], [], []>} : vector<32x18xbf16>, vector<18x256xbf16>, vector<32x256xf32> -> vector<32x256xf32>
    %c0_38 = arith.constant 0 : index
    %c0_39 = arith.constant 0 : index
    %50 = vector.load %arg5[%c0_38, %c0_39] : memref<32x1xf32, #tpu.memory_space<vmem>>, vector<32x1xf32>
    %51 = vector.broadcast %50 : vector<32x1xf32> to vector<32x256xf32>
    %52 = arith.addf %49, %51 : vector<32x256xf32>
    %cst_40 = arith.constant 0.000000e+00 : f32
    %53 = vector.broadcast %cst_40 : f32 to vector<32x256xf32>
    %54 = arith.maximumf %52, %53 : vector<32x256xf32>
    %c0_41 = arith.constant 0 : index
    %c17_42 = arith.constant 17 : index
    %55 = vector.load %arg12[%c0_41, %c17_42] : memref<32x290xf32, #tpu.memory_space<vmem>>, vector<32x256xf32>
    tpu.vector_store %arg12[%c0_41, %c17_42], %54 {strides = array<i32>} : memref<32x290xf32, #tpu.memory_space<vmem>>, vector<32x256xf32>,
    %c0_43 = arith.constant 0 : index
    %c0_44 = arith.constant 0 : index
    %56 = vector.load %arg6[%c0_43, %c0_44] : memref<32x288xbf16, #tpu.memory_space<vmem>>, vector<32x288xbf16>
    %c0_45 = arith.constant 0 : index
    %c0_46 = arith.constant 0 : index
    %57 = vector.load %arg12[%c0_45, %c0_46] : memref<32x290xf32, #tpu.memory_space<vmem>>, vector<32x256xf32>
    %c0_47 = arith.constant 0 : index
    %c0_48 = arith.constant 0 : index
    %58 = vector.load %arg3[%c0_47, %c0_48] : memref<2x256xf32, #tpu.memory_space<vmem>>, vector<1x256xf32>
    %59 = vector.broadcast %58 : vector<1x256xf32> to vector<32x256xf32>
    %60 = arith.mulf %57, %59 : vector<32x256xf32>
    %61 = arith.truncf %60 : vector<32x256xf32> to vector<32x256xbf16>
    %c0_49 = arith.constant 0 : index
    %c1_50 = arith.constant 1 : index
    %62 = vector.load %arg12[%c0_49, %c1_50] : memref<32x290xf32, #tpu.memory_space<vmem>>, vector<32x256xf32>
    %63 = arith.truncf %62 : vector<32x256xf32> to vector<32x256xbf16>
    %c0_51 = arith.constant 0 : index
    %c2_52 = arith.constant 2 : index
    %64 = vector.load %arg12[%c0_51, %c2_52] : memref<32x290xf32, #tpu.memory_space<vmem>>, vector<32x256xf32>
    %c1_53 = arith.constant 1 : index
    %c0_54 = arith.constant 0 : index
    %65 = vector.load %arg3[%c1_53, %c0_54] : memref<2x256xf32, #tpu.memory_space<vmem>>, vector<1x256xf32>
    %66 = vector.broadcast %65 : vector<1x256xf32> to vector<32x256xf32>
    %67 = arith.mulf %64, %66 : vector<32x256xf32>
    %68 = arith.truncf %67 : vector<32x256xf32> to vector<32x256xbf16>
    %c0_55 = arith.constant 0 : index
    %c16_56 = arith.constant 16 : index
    %69 = vector.load %arg12[%c0_55, %c16_56] : memref<32x290xf32, #tpu.memory_space<vmem>>, vector<32x256xf32>
    %c0_57 = arith.constant 0 : index
    %c0_58 = arith.constant 0 : index
    %70 = vector.load %arg3[%c0_57, %c0_58] : memref<2x256xf32, #tpu.memory_space<vmem>>, vector<1x256xf32>
    %71 = vector.broadcast %70 : vector<1x256xf32> to vector<32x256xf32>
    %72 = arith.mulf %69, %71 : vector<32x256xf32>
    %73 = arith.truncf %72 : vector<32x256xf32> to vector<32x256xbf16>
    %c0_59 = arith.constant 0 : index
    %c17_60 = arith.constant 17 : index
    %74 = vector.load %arg12[%c0_59, %c17_60] : memref<32x290xf32, #tpu.memory_space<vmem>>, vector<32x256xf32>
    %75 = arith.truncf %74 : vector<32x256xf32> to vector<32x256xbf16>
    %c0_61 = arith.constant 0 : index
    %c18_62 = arith.constant 18 : index
    %76 = vector.load %arg12[%c0_61, %c18_62] : memref<32x290xf32, #tpu.memory_space<vmem>>, vector<32x256xf32>
    %c1_63 = arith.constant 1 : index
    %c0_64 = arith.constant 0 : index
    %77 = vector.load %arg3[%c1_63, %c0_64] : memref<2x256xf32, #tpu.memory_space<vmem>>, vector<1x256xf32>
    %78 = vector.broadcast %77 : vector<1x256xf32> to vector<32x256xf32>
    %79 = arith.mulf %76, %78 : vector<32x256xf32>
    %80 = arith.truncf %79 : vector<32x256xf32> to vector<32x256xbf16>
    %c0_65 = arith.constant 0 : index
    %c32_66 = arith.constant 32 : index
    %81 = vector.load %arg12[%c0_65, %c32_66] : memref<32x290xf32, #tpu.memory_space<vmem>>, vector<32x256xf32>
    %c0_67 = arith.constant 0 : index
    %c0_68 = arith.constant 0 : index
    %82 = vector.load %arg3[%c0_67, %c0_68] : memref<2x256xf32, #tpu.memory_space<vmem>>, vector<1x256xf32>
    %83 = vector.broadcast %82 : vector<1x256xf32> to vector<32x256xf32>
    %84 = arith.mulf %81, %83 : vector<32x256xf32>
    %85 = arith.truncf %84 : vector<32x256xf32> to vector<32x256xbf16>
    %c0_69 = arith.constant 0 : index
    %c33_70 = arith.constant 33 : index
    %86 = vector.load %arg12[%c0_69, %c33_70] : memref<32x290xf32, #tpu.memory_space<vmem>>, vector<32x256xf32>
    %87 = arith.truncf %86 : vector<32x256xf32> to vector<32x256xbf16>
    %c0_71 = arith.constant 0 : index
    %c34_72 = arith.constant 34 : index
    %88 = vector.load %arg12[%c0_71, %c34_72] : memref<32x290xf32, #tpu.memory_space<vmem>>, vector<32x256xf32>
    %c1_73 = arith.constant 1 : index
    %c0_74 = arith.constant 0 : index
    %89 = vector.load %arg3[%c1_73, %c0_74] : memref<2x256xf32, #tpu.memory_space<vmem>>, vector<1x256xf32>
    %90 = vector.broadcast %89 : vector<1x256xf32> to vector<32x256xf32>
    %91 = arith.mulf %88, %90 : vector<32x256xf32>
    %92 = arith.truncf %91 : vector<32x256xf32> to vector<32x256xbf16>
    %93 = tpu.concatenate %61, %63, %68, %73, %75, %80, %85, %87, %92 in 0 : vector<32x256xbf16>, vector<32x256xbf16>, vector<32x256xbf16>, vector<32x256xbf16>, vector<32x256xbf16>, vector<32x256xbf16>, vector<32x256xbf16>, vector<32x256xbf16>, vector<32x256xbf16> -> vector<288x256xbf16>
    %cst_75 = arith.constant dense<0.000000e+00> : vector<32x256xf32>
    %94 = tpu.matmul %56, %93, %cst_75 {dimension_numbers = #tpu.dot_dimension_numbers<[1], [0], [0], [1], [0, 0, 1, 1], [], []>} : vector<32x288xbf16>, vector<288x256xbf16>, vector<32x256xf32> -> vector<32x256xf32>
    %c0_76 = arith.constant 0 : index
    %c0_77 = arith.constant 0 : index
    %95 = vector.load %arg7[%c0_76, %c0_77] : memref<32x1xf32, #tpu.memory_space<vmem>>, vector<32x1xf32>
    %96 = vector.broadcast %95 : vector<32x1xf32> to vector<32x256xf32>
    %97 = arith.addf %94, %96 : vector<32x256xf32>
    %cst_78 = arith.constant 0.000000e+00 : f32
    %98 = vector.broadcast %cst_78 : f32 to vector<32x256xf32>
    %99 = arith.maximumf %97, %98 : vector<32x256xf32>
    %c0_79 = arith.constant 0 : index
    %c17_80 = arith.constant 17 : index
    %100 = vector.load %arg12[%c0_79, %c17_80] : memref<32x290xf32, #tpu.memory_space<vmem>>, vector<32x256xf32>
    tpu.vector_store %arg12[%c0_79, %c17_80], %99 {strides = array<i32>} : memref<32x290xf32, #tpu.memory_space<vmem>>, vector<32x256xf32>,
    %cst_81 = arith.constant 0.000000e+00 : f32
    %101 = vector.broadcast %cst_81 : f32 to vector<1x256xf32>
    %c0_82 = arith.constant 0 : index
    %c0_83 = arith.constant 0 : index
    %102 = vector.load %arg8[%c0_82, %c0_83] : memref<9x32xbf16, #tpu.memory_space<vmem>>, vector<1x32xbf16>
    %c0_84 = arith.constant 0 : index
    %c0_85 = arith.constant 0 : index
    %103 = vector.load %arg12[%c0_84, %c0_85] : memref<32x290xf32, #tpu.memory_space<vmem>>, vector<32x256xf32>
    %c0_86 = arith.constant 0 : index
    %c0_87 = arith.constant 0 : index
    %104 = vector.load %arg3[%c0_86, %c0_87] : memref<2x256xf32, #tpu.memory_space<vmem>>, vector<1x256xf32>
    %105 = vector.broadcast %104 : vector<1x256xf32> to vector<32x256xf32>
    %106 = arith.mulf %103, %105 : vector<32x256xf32>
    %107 = arith.truncf %106 : vector<32x256xf32> to vector<32x256xbf16>
    %cst_88 = arith.constant dense<0.000000e+00> : vector<1x256xf32>
    %108 = tpu.matmul %102, %107, %cst_88 {dimension_numbers = #tpu.dot_dimension_numbers<[1], [0], [0], [1], [0, 0, 1, 1], [], []>} : vector<1x32xbf16>, vector<32x256xbf16>, vector<1x256xf32> -> vector<1x256xf32>
    %109 = arith.addf %101, %108 : vector<1x256xf32>
    %c1_89 = arith.constant 1 : index
    %c0_90 = arith.constant 0 : index
    %110 = vector.load %arg8[%c1_89, %c0_90] : memref<9x32xbf16, #tpu.memory_space<vmem>>, vector<1x32xbf16>
    %c0_91 = arith.constant 0 : index
    %c1_92 = arith.constant 1 : index
    %111 = vector.load %arg12[%c0_91, %c1_92] : memref<32x290xf32, #tpu.memory_space<vmem>>, vector<32x256xf32>
    %112 = arith.truncf %111 : vector<32x256xf32> to vector<32x256xbf16>
    %cst_93 = arith.constant dense<0.000000e+00> : vector<1x256xf32>
    %113 = tpu.matmul %110, %112, %cst_93 {dimension_numbers = #tpu.dot_dimension_numbers<[1], [0], [0], [1], [0, 0, 1, 1], [], []>} : vector<1x32xbf16>, vector<32x256xbf16>, vector<1x256xf32> -> vector<1x256xf32>
    %114 = arith.addf %109, %113 : vector<1x256xf32>
    %c2_94 = arith.constant 2 : index
    %c0_95 = arith.constant 0 : index
    %115 = vector.load %arg8[%c2_94, %c0_95] : memref<9x32xbf16, #tpu.memory_space<vmem>>, vector<1x32xbf16>
    %c0_96 = arith.constant 0 : index
    %c2_97 = arith.constant 2 : index
    %116 = vector.load %arg12[%c0_96, %c2_97] : memref<32x290xf32, #tpu.memory_space<vmem>>, vector<32x256xf32>
    %c1_98 = arith.constant 1 : index
    %c0_99 = arith.constant 0 : index
    %117 = vector.load %arg3[%c1_98, %c0_99] : memref<2x256xf32, #tpu.memory_space<vmem>>, vector<1x256xf32>
    %118 = vector.broadcast %117 : vector<1x256xf32> to vector<32x256xf32>
    %119 = arith.mulf %116, %118 : vector<32x256xf32>
    %120 = arith.truncf %119 : vector<32x256xf32> to vector<32x256xbf16>
    %cst_100 = arith.constant dense<0.000000e+00> : vector<1x256xf32>
    %121 = tpu.matmul %115, %120, %cst_100 {dimension_numbers = #tpu.dot_dimension_numbers<[1], [0], [0], [1], [0, 0, 1, 1], [], []>} : vector<1x32xbf16>, vector<32x256xbf16>, vector<1x256xf32> -> vector<1x256xf32>
    %122 = arith.addf %114, %121 : vector<1x256xf32>
    %c3 = arith.constant 3 : index
    %c0_101 = arith.constant 0 : index
    %123 = vector.load %arg8[%c3, %c0_101] : memref<9x32xbf16, #tpu.memory_space<vmem>>, vector<1x32xbf16>
    %c0_102 = arith.constant 0 : index
    %c16_103 = arith.constant 16 : index
    %124 = vector.load %arg12[%c0_102, %c16_103] : memref<32x290xf32, #tpu.memory_space<vmem>>, vector<32x256xf32>
    %c0_104 = arith.constant 0 : index
    %c0_105 = arith.constant 0 : index
    %125 = vector.load %arg3[%c0_104, %c0_105] : memref<2x256xf32, #tpu.memory_space<vmem>>, vector<1x256xf32>
    %126 = vector.broadcast %125 : vector<1x256xf32> to vector<32x256xf32>
    %127 = arith.mulf %124, %126 : vector<32x256xf32>
    %128 = arith.truncf %127 : vector<32x256xf32> to vector<32x256xbf16>
    %cst_106 = arith.constant dense<0.000000e+00> : vector<1x256xf32>
    %129 = tpu.matmul %123, %128, %cst_106 {dimension_numbers = #tpu.dot_dimension_numbers<[1], [0], [0], [1], [0, 0, 1, 1], [], []>} : vector<1x32xbf16>, vector<32x256xbf16>, vector<1x256xf32> -> vector<1x256xf32>
    %130 = arith.addf %122, %129 : vector<1x256xf32>
    %c4 = arith.constant 4 : index
    %c0_107 = arith.constant 0 : index
    %131 = vector.load %arg8[%c4, %c0_107] : memref<9x32xbf16, #tpu.memory_space<vmem>>, vector<1x32xbf16>
    %c0_108 = arith.constant 0 : index
    %c17_109 = arith.constant 17 : index
    %132 = vector.load %arg12[%c0_108, %c17_109] : memref<32x290xf32, #tpu.memory_space<vmem>>, vector<32x256xf32>
    %133 = arith.truncf %132 : vector<32x256xf32> to vector<32x256xbf16>
    %cst_110 = arith.constant dense<0.000000e+00> : vector<1x256xf32>
    %134 = tpu.matmul %131, %133, %cst_110 {dimension_numbers = #tpu.dot_dimension_numbers<[1], [0], [0], [1], [0, 0, 1, 1], [], []>} : vector<1x32xbf16>, vector<32x256xbf16>, vector<1x256xf32> -> vector<1x256xf32>
    %135 = arith.addf %130, %134 : vector<1x256xf32>
    %c5 = arith.constant 5 : index
    %c0_111 = arith.constant 0 : index
    %136 = vector.load %arg8[%c5, %c0_111] : memref<9x32xbf16, #tpu.memory_space<vmem>>, vector<1x32xbf16>
    %c0_112 = arith.constant 0 : index
    %c18_113 = arith.constant 18 : index
    %137 = vector.load %arg12[%c0_112, %c18_113] : memref<32x290xf32, #tpu.memory_space<vmem>>, vector<32x256xf32>
    %c1_114 = arith.constant 1 : index
    %c0_115 = arith.constant 0 : index
    %138 = vector.load %arg3[%c1_114, %c0_115] : memref<2x256xf32, #tpu.memory_space<vmem>>, vector<1x256xf32>
    %139 = vector.broadcast %138 : vector<1x256xf32> to vector<32x256xf32>
    %140 = arith.mulf %137, %139 : vector<32x256xf32>
    %141 = arith.truncf %140 : vector<32x256xf32> to vector<32x256xbf16>
    %cst_116 = arith.constant dense<0.000000e+00> : vector<1x256xf32>
    %142 = tpu.matmul %136, %141, %cst_116 {dimension_numbers = #tpu.dot_dimension_numbers<[1], [0], [0], [1], [0, 0, 1, 1], [], []>} : vector<1x32xbf16>, vector<32x256xbf16>, vector<1x256xf32> -> vector<1x256xf32>
    %143 = arith.addf %135, %142 : vector<1x256xf32>
    %c6 = arith.constant 6 : index
    %c0_117 = arith.constant 0 : index
    %144 = vector.load %arg8[%c6, %c0_117] : memref<9x32xbf16, #tpu.memory_space<vmem>>, vector<1x32xbf16>
    %c0_118 = arith.constant 0 : index
    %c32_119 = arith.constant 32 : index
    %145 = vector.load %arg12[%c0_118, %c32_119] : memref<32x290xf32, #tpu.memory_space<vmem>>, vector<32x256xf32>
    %c0_120 = arith.constant 0 : index
    %c0_121 = arith.constant 0 : index
    %146 = vector.load %arg3[%c0_120, %c0_121] : memref<2x256xf32, #tpu.memory_space<vmem>>, vector<1x256xf32>
    %147 = vector.broadcast %146 : vector<1x256xf32> to vector<32x256xf32>
    %148 = arith.mulf %145, %147 : vector<32x256xf32>
    %149 = arith.truncf %148 : vector<32x256xf32> to vector<32x256xbf16>
    %cst_122 = arith.constant dense<0.000000e+00> : vector<1x256xf32>
    %150 = tpu.matmul %144, %149, %cst_122 {dimension_numbers = #tpu.dot_dimension_numbers<[1], [0], [0], [1], [0, 0, 1, 1], [], []>} : vector<1x32xbf16>, vector<32x256xbf16>, vector<1x256xf32> -> vector<1x256xf32>
    %151 = arith.addf %143, %150 : vector<1x256xf32>
    %c7 = arith.constant 7 : index
    %c0_123 = arith.constant 0 : index
    %152 = vector.load %arg8[%c7, %c0_123] : memref<9x32xbf16, #tpu.memory_space<vmem>>, vector<1x32xbf16>
    %c0_124 = arith.constant 0 : index
    %c33_125 = arith.constant 33 : index
    %153 = vector.load %arg12[%c0_124, %c33_125] : memref<32x290xf32, #tpu.memory_space<vmem>>, vector<32x256xf32>
    %154 = arith.truncf %153 : vector<32x256xf32> to vector<32x256xbf16>
    %cst_126 = arith.constant dense<0.000000e+00> : vector<1x256xf32>
    %155 = tpu.matmul %152, %154, %cst_126 {dimension_numbers = #tpu.dot_dimension_numbers<[1], [0], [0], [1], [0, 0, 1, 1], [], []>} : vector<1x32xbf16>, vector<32x256xbf16>, vector<1x256xf32> -> vector<1x256xf32>
    %156 = arith.addf %151, %155 : vector<1x256xf32>
    %c8 = arith.constant 8 : index
    %c0_127 = arith.constant 0 : index
    %157 = vector.load %arg8[%c8, %c0_127] : memref<9x32xbf16, #tpu.memory_space<vmem>>, vector<1x32xbf16>
    %c0_128 = arith.constant 0 : index
    %c34_129 = arith.constant 34 : index
    %158 = vector.load %arg12[%c0_128, %c34_129] : memref<32x290xf32, #tpu.memory_space<vmem>>, vector<32x256xf32>
    %c1_130 = arith.constant 1 : index
    %c0_131 = arith.constant 0 : index
    %159 = vector.load %arg3[%c1_130, %c0_131] : memref<2x256xf32, #tpu.memory_space<vmem>>, vector<1x256xf32>
    %160 = vector.broadcast %159 : vector<1x256xf32> to vector<32x256xf32>
    %161 = arith.mulf %158, %160 : vector<32x256xf32>
    %162 = arith.truncf %161 : vector<32x256xf32> to vector<32x256xbf16>
    %cst_132 = arith.constant dense<0.000000e+00> : vector<1x256xf32>
    %163 = tpu.matmul %157, %162, %cst_132 {dimension_numbers = #tpu.dot_dimension_numbers<[1], [0], [0], [1], [0, 0, 1, 1], [], []>} : vector<1x32xbf16>, vector<32x256xbf16>, vector<1x256xf32> -> vector<1x256xf32>
    %164 = arith.addf %156, %163 : vector<1x256xf32>
    %c0_133 = arith.constant 0 : index
    %c0_134 = arith.constant 0 : index
    %165 = vector.load %arg9[%c0_133, %c0_134] : memref<1x1xf32, #tpu.memory_space<vmem>>, vector<1x1xf32>
    %166 = vector.broadcast %165 : vector<1x1xf32> to vector<1x256xf32>
    %167 = arith.addf %164, %166 : vector<1x256xf32>
    %168 = arith.mulf %167, %8 : vector<1x256xf32>
    %169 = arith.addf %6, %168 : vector<1x256xf32>
    %cst_135 = arith.constant 2.550000e+02 : f32
    %170 = vector.broadcast %cst_135 : f32 to vector<1x256xf32>
    %171 = arith.mulf %169, %170 : vector<1x256xf32>
    %c0_136 = arith.constant 0 : index
    %c0_137 = arith.constant 0 : index
    %c0_138 = arith.constant 0 : index
    %172 = vector.load %arg10[%c0_136, %c0_137, %c0_138] : memref<1x1x256xf32, #tpu.memory_space<vmem>>, vector<1x1x256xf32>
    %173 = vector.shape_cast %172 : vector<1x1x256xf32> to vector<1x256xf32>
    %174 = vector.shape_cast %171 : vector<1x256xf32> to vector<1x1x256xf32>
    tpu.vector_store %arg10[%c0_136, %c0_137, %c0_138], %174 {strides = array<i32>} : memref<1x1x256xf32, #tpu.memory_space<vmem>>, vector<1x1x256xf32>,
    %175 = arith.truncf %171 : vector<1x256xf32> to vector<1x256xbf16>
    %c0_139 = arith.constant 0 : index
    %c0_140 = arith.constant 0 : index
    %c0_141 = arith.constant 0 : index
    %176 = vector.load %arg11[%c0_139, %c0_140, %c0_141] : memref<1x1x256xbf16, #tpu.memory_space<vmem>>, vector<1x1x256xbf16>
    %177 = vector.shape_cast %176 : vector<1x1x256xbf16> to vector<1x256xbf16>
    %178 = vector.shape_cast %175 : vector<1x256xbf16> to vector<1x1x256xbf16>
    tpu.vector_store %arg11[%c0_139, %c0_140, %c0_141], %178 {strides = array<i32>} : memref<1x1x256xbf16, #tpu.memory_space<vmem>>, vector<1x1x256xbf16>,
    return
  }
  func.func @transform_0(%arg0: i32) -> (i32, i32, i32) {
    %c0_i32 = arith.constant 0 : i32
    %c0_i32_0 = arith.constant 0 : i32
    %c0_i32_1 = arith.constant 0 : i32
    return %arg0, %c0_i32, %c0_i32_0 : i32, i32, i32
  }
  func.func @transform_1(%arg0: i32) -> (i32, i32, i32) {
    %c0_i32 = arith.constant 0 : i32
    %c0_i32_0 = arith.constant 0 : i32
    %c0_i32_1 = arith.constant 0 : i32
    return %arg0, %c0_i32, %c0_i32_0 : i32, i32, i32
  }
  func.func @transform_2(%arg0: i32) -> (i32, i32) {
    %c0_i32 = arith.constant 0 : i32
    %c0_i32_0 = arith.constant 0 : i32
    %c0_i32_1 = arith.constant 0 : i32
    return %c0_i32, %c0_i32_0 : i32, i32
  }
  func.func @transform_3(%arg0: i32) -> (i32, i32) {
    %c0_i32 = arith.constant 0 : i32
    %c0_i32_0 = arith.constant 0 : i32
    %c0_i32_1 = arith.constant 0 : i32
    return %c0_i32, %c0_i32_0 : i32, i32
  }
  func.func @transform_4(%arg0: i32) -> (i32, i32) {
    %c0_i32 = arith.constant 0 : i32
    %c0_i32_0 = arith.constant 0 : i32
    %c0_i32_1 = arith.constant 0 : i32
    return %c0_i32, %c0_i32_0 : i32, i32
  }
  func.func @transform_5(%arg0: i32) -> (i32, i32) {
    %c0_i32 = arith.constant 0 : i32
    %c0_i32_0 = arith.constant 0 : i32
    %c0_i32_1 = arith.constant 0 : i32
    return %c0_i32, %c0_i32_0 : i32, i32
  }
  func.func @transform_6(%arg0: i32) -> (i32, i32) {
    %c0_i32 = arith.constant 0 : i32
    %c0_i32_0 = arith.constant 0 : i32
    %c0_i32_1 = arith.constant 0 : i32
    return %c0_i32, %c0_i32_0 : i32, i32
  }
  func.func @transform_7(%arg0: i32) -> (i32, i32) {
    %c0_i32 = arith.constant 0 : i32
    %c0_i32_0 = arith.constant 0 : i32
    %c0_i32_1 = arith.constant 0 : i32
    return %c0_i32, %c0_i32_0 : i32, i32
  }
  func.func @transform_8(%arg0: i32) -> (i32, i32) {
    %c0_i32 = arith.constant 0 : i32
    %c0_i32_0 = arith.constant 0 : i32
    %c0_i32_1 = arith.constant 0 : i32
    return %c0_i32, %c0_i32_0 : i32, i32
  }
  func.func @transform_9(%arg0: i32) -> (i32, i32, i32) {
    %c0_i32 = arith.constant 0 : i32
    %c0_i32_0 = arith.constant 0 : i32
    %c0_i32_1 = arith.constant 0 : i32
    return %arg0, %c0_i32, %c0_i32_0 : i32, i32, i32
  }
  func.func @transform_10(%arg0: i32) -> (i32, i32, i32) {
    %c0_i32 = arith.constant 0 : i32
    %c0_i32_0 = arith.constant 0 : i32
    %c0_i32_1 = arith.constant 0 : i32
    return %arg0, %c0_i32, %c0_i32_0 : i32, i32, i32
  }
}

</mosaic_0001>

<bundles_post_ra>
// kernel: priornet_forward.3
= control target key start
LH: loop header
LB: loop body
LE: loop exit
PB: predicated region body
PF: predicated region fallthrough
CT: control target
= control target key end

     0   :  { %7 = vsyncpa [#allocation4], 0  ;;  %s569_s0 = inlined_call_operand.hbm [shape: bf16[2,256], index: 0, kind: input, shape index: {}]   ;;  %s570_s1 = inlined_call_operand.hbm [shape: bf16[256,256], index: 1, kind: input, shape index: {}]   ;;  %s571_s2 = inlined_call_operand.hbm [shape: f32[2,256], index: 2, kind: output, shape index: {}]  }
   0x1   :  { %8 = vsyncpa [#allocation7], 0 }
   0x2   :  { %9 = vsyncpa [#allocation5], 0  ;;  %s503_s9 = smov [#allocation3]   ;;  %s504_s11 = smov [#allocation6]  }
   0x3   :  { %s16_s10 = sshll.u32 %s503_s9, 4  ;;  %s25_s12 = sshll.u32 %s504_s11, 4  ;;  %s17_s10 = int_to_ptr.vmem [resolvable:$true] %s16_s10  ;;  %s526_s12 = int_to_ptr.vmem [resolvable:$true] %s25_s12 }
   0x4   :  { %s431_s15 = scalar_lea.hbm %s569_s0, 32 }
   0x5   :  { %p432_p0 = scmp.ne.s32.totalorder %s569_s0, %s431_s15  ;;  %p435_p1 = scmp.lt.u32.totalorder %s431_s15, %s569_s0 }
   0x7   :  { %p437_p2 = pnand %p435_p1, %p432_p0 }
   0x9   :  { %440 = shalt.err (!%p437_p2)
}
   0xa   :  { %s441_s20 = scalar_lea.vmem %s17_s10, 32  ;;  %p446_p4 = scmp.lt.s32.totalorder %s17_s10, %s17_s10 }
   0xb   :  { %p442_p3 = scmp.ne.s32.totalorder %s17_s10, %s441_s20  ;;  %p447_p5 = scmp.lt.s32.totalorder %s441_s20, %s441_s20 }
   0xd   :  { %p448_p6 = por %p447_p5, %p446_p4 }
   0xf   :  { %p449_p7 = pnand %p448_p6, %p442_p3 }
  0x11   :  { %452 = shalt.err (!%p449_p7)
}
  0x12   :  { %19 = dma.hbm_to_vmem [thread:$0]  %s569_s0, 32, %s17_s10, [#allocation4]  }
  0x13   :  { %s453_s25 = scalar_lea.hbm %s570_s1, 4096 }
  0x14   :  { %p454_p8 = scmp.ne.s32.totalorder %s570_s1, %s453_s25  ;;  %p457_p9 = scmp.lt.u32.totalorder %s453_s25, %s570_s1 }
  0x16   :  { %p459_p10 = pnand %p457_p9, %p454_p8 }
  0x18   :  { %462 = shalt.err (!%p459_p10)
}
  0x19   :  { %s463_s30 = scalar_lea.vmem %s526_s12, 4096  ;;  %p468_p12 = scmp.lt.s32.totalorder %s526_s12, %s526_s12 }
  0x1a   :  { %p464_p11 = scmp.ne.s32.totalorder %s526_s12, %s463_s30  ;;  %p469_p13 = scmp.lt.s32.totalorder %s463_s30, %s463_s30 }
  0x1c   :  { %p470_p0 = por %p469_p13, %p468_p12 }
  0x1e   :  { %p471_p1 = pnand %p470_p0, %p464_p11 }
  0x20   :  { %474 = shalt.err (!%p471_p1)
}
  0x21   :  { %s505_s0 = smov 128   ;;  %s506_s3 = smov 8  }
  0x22   :  { %31 = dma.hbm_to_vmem [thread:$0]  %s570_s1, 4096, %s526_s12, [#allocation7], %s505_s0, %s505_s0, %s506_s3  }
  0x23   :  { %497 = dma.done.wait [#allocation4], 32  }
  0x24   :  { %498 = vsyncadd [#allocation4], 4294967264 }
  0x25   :  { %499 = dma.done.wait [#allocation7], 4096  }
  0x26   :  { %500 = vsyncadd [#allocation7], 4294963200  ;;  %v383_v0 = vld [vmem:[#allocation6 + $0x4] ss:$8 sps:$4 sm:$0xff]   ;;  %v385_v1 = vld [vmem:[#allocation6] ss:$8 sps:$4 sm:$0xff]   ;;  %v93_v11 = vlaneseq }
  0x27   :  { %266 = vmatprep.subr.bf16.mxu0 %v383_v0  ;;  %v386_v2 = vld [vmem:[#allocation6 + $0x14] ss:$8 sps:$4 sm:$0xff]   ;;  %v388_v3 = vld [vmem:[#allocation6 + $0x10] ss:$8 sps:$4 sm:$0xff]   ;;  %v389_v4 = vld [vmem:[#allocation6 + $0x24] ss:$8 sps:$4 sm:$0xff]  }
  0x28   :  { %267 = vmatpush1.bf16.msra.mxu0 %v385_v1  ;;  %v391_v5 = vld [vmem:[#allocation6 + $0x20] ss:$8 sps:$4 sm:$0xff]   ;;  %v392_v6 = vld [vmem:[#allocation6 + $0x34] ss:$8 sps:$4 sm:$0xff]   ;;  %v394_v7 = vld [vmem:[#allocation6 + $0x30] ss:$8 sps:$4 sm:$0xff]  }
  0x29   :  { %268 = vmatprep.subr.bf16.mxu0 %v386_v2  ;;  %v395_v8 = vld [vmem:[#allocation6 + $0x44] ss:$8 sps:$4 sm:$0xff]   ;;  %v507_v9 = vmov 1966171168   ;;  %v397_v12 = vld [vmem:[#allocation6 + $0x40] ss:$8 sps:$4 sm:$0xff]  }
  0x2a   :  { %v91_v10 = vunpack.c.l.s4 %v507_v9  ;;  %v398_v13 = vld [vmem:[#allocation6 + $0x54] ss:$8 sps:$4 sm:$0xff]   ;;  %v94_v15 = vshrl.u32 %v93_v11, 7  ;;  %v400_v16 = vld [vmem:[#allocation6 + $0x50] ss:$8 sps:$4 sm:$0xff]   ;;  %v508_v42 = vmov 0.0  }
  0x2b   :  { %v401_v17 = vld [vmem:[#allocation6 + $0x64] ss:$8 sps:$4 sm:$0xff]   ;;  %v342_v19 = vld.sshfl [vmem:[#allocation3] sm:$0x11 pattern:$0x75316420] }
  0x2c   :  { %269 = vmatpush1.bf16.msra.mxu0 %v388_v3  ;;  %v92_v14 = vunpack.c.0.s8 %v91_v10  ;;  %v89_v20 = vcombine.high %v342_v19, %v342_v19  ;;  %v403_v21 = vld [vmem:[#allocation6 + $0x60] ss:$8 sps:$4 sm:$0xff]   ;;  %v404_v22 = vld [vmem:[#allocation6 + $0x74] ss:$8 sps:$4 sm:$0xff]   ;;  %v406_v24 = vld [vmem:[#allocation6 + $0x70] ss:$8 sps:$4 sm:$0xff]  }
  0x2d   :  { %270 = vmatprep.subr.bf16.mxu0 %v389_v4  ;;  %v407_v25 = vld [vmem:[#allocation6 + $0x84] ss:$8 sps:$4 sm:$0xff]   ;;  %v409_v26 = vld [vmem:[#allocation6 + $0x80] ss:$8 sps:$4 sm:$0xff]   ;;  %v410_v27 = vld [vmem:[#allocation6 + $0x94] ss:$8 sps:$4 sm:$0xff]  }
  0x2e   :  { %v95_v18 = vsub.s32 %v92_v14, %v94_v15  ;;  %v412_v28 = vld [vmem:[#allocation6 + $0x90] ss:$8 sps:$4 sm:$0xff]   ;;  %v413_v29 = vld [vmem:[#allocation6 + $0xa4] ss:$8 sps:$4 sm:$0xff]   ;;  %v415_v30 = vld [vmem:[#allocation6 + $0xa0] ss:$8 sps:$4 sm:$0xff]  }
  0x2f   :  { %v416_v31 = vld [vmem:[#allocation6 + $0xb4] ss:$8 sps:$4 sm:$0xff]   ;;  %v418_v32 = vld [vmem:[#allocation6 + $0xb0] ss:$8 sps:$4 sm:$0xff]   ;;  %v419_v33 = vld [vmem:[#allocation6 + $0xc4] ss:$8 sps:$4 sm:$0xff]  }
  0x30   :  { %271 = vmatpush1.bf16.msra.mxu0 %v391_v5  ;;  %v103_v23 = vrot.slane %v89_v20, %v95_v18  ;;  %v421_v34 = vld [vmem:[#allocation6 + $0xc0] ss:$8 sps:$4 sm:$0xff]   ;;  %v422_v35 = vld [vmem:[#allocation6 + $0xd4] ss:$8 sps:$4 sm:$0xff]   ;;  %v424_v36 = vld [vmem:[#allocation6 + $0xd0] ss:$8 sps:$4 sm:$0xff]   ;;  %v96_v41 = vrot.slane %v342_v19, %v95_v18 }
  0x31   :  { %272 = vmatprep.subr.bf16.mxu0 %v392_v6  ;;  %v425_v37 = vld [vmem:[#allocation6 + $0xe4] ss:$8 sps:$4 sm:$0xff]   ;;  %v427_v38 = vld [vmem:[#allocation6 + $0xe0] ss:$8 sps:$4 sm:$0xff]   ;;  %v428_v39 = vld [vmem:[#allocation6 + $0xf4] ss:$8 sps:$4 sm:$0xff]  }
  0x32   :  { %298 = vmatprep.mubr.bf16.mxu0 %v103_v23  ;;  %v430_v40 = vld [vmem:[#allocation6 + $0xf0] ss:$8 sps:$4 sm:$0xff]   ;;  %42 = vst [vmem:[#allocation2] sm:$0xf] %v508_v42  ;;  %v509_v43 = vmov 1983009808  }
  0x33   :  { %v311_v44 = vunpack.c.l.s4 %v509_v43  ;;  %s510_s1 = smov [#allocation8]  }
  0x34   :  { %273 = vmatpush1.bf16.msra.mxu0 %v394_v7  ;;  %s331_s6 = sshll.u32 %s510_s1, 4  ;;  %s332_s6 = int_to_ptr.vmem [resolvable:$true] %s331_s6 }
  0x35   :  { %274 = vmatprep.subr.bf16.mxu0 %v395_v8  ;;  %v312_v45 = vunpack.c.0.s8 %v311_v44  ;;  %s475_s7 = scalar_lea.vmem %s332_s6, 64  ;;  %p480_p3 = scmp.lt.s32.totalorder %s332_s6, %s332_s6 }
  0x36   :  { %p476_p2 = scmp.ne.s32.totalorder %s332_s6, %s475_s7  ;;  %p481_p4 = scmp.lt.s32.totalorder %s475_s7, %s475_s7 }
  0x37   :  { %v315_v47 = vsub.s32 %v312_v45, %v94_v15 }
  0x38   :  { %275 = vmatpush1.bf16.msra.mxu0 %v397_v12  ;;  %p482_p5 = por %p481_p4, %p480_p3 }
  0x39   :  { %276 = vmatprep.subr.bf16.mxu0 %v398_v13  ;;  %v48_v51 = vld [vmem:[#allocation2] sm:$0xf] }
  0x3a   :  { %p483_p6 = pnand %p482_p5, %p476_p2 }
  0x3c   :  { %277 = vmatpush1.bf16.msra.mxu0 %v400_v16 }
  0x3d   :  { %278 = vmatprep.subr.bf16.mxu0 %v401_v17 }
  0x40   :  { %279 = vmatpush1.bf16.msra.mxu0 %v403_v21 }
  0x41   :  { %280 = vmatprep.subr.bf16.mxu0 %v404_v22 }
  0x44   :  { %281 = vmatpush1.bf16.msra.mxu0 %v406_v24 }
  0x45   :  { %282 = vmatprep.subr.bf16.mxu0 %v407_v25 }
  0x48   :  { %283 = vmatpush1.bf16.msra.mxu0 %v409_v26 }
  0x49   :  { %284 = vmatprep.subr.bf16.mxu0 %v410_v27 }
  0x4c   :  { %285 = vmatpush1.bf16.msra.mxu0 %v412_v28 }
  0x4d   :  { %286 = vmatprep.subr.bf16.mxu0 %v413_v29 }
  0x50   :  { %287 = vmatpush1.bf16.msra.mxu0 %v415_v30 }
  0x51   :  { %288 = vmatprep.subr.bf16.mxu0 %v416_v31 }
  0x54   :  { %289 = vmatpush1.bf16.msra.mxu0 %v418_v32 }
  0x55   :  { %290 = vmatprep.subr.bf16.mxu0 %v419_v33 }
  0x58   :  { %291 = vmatpush1.bf16.msra.mxu0 %v421_v34 }
  0x59   :  { %292 = vmatprep.subr.bf16.mxu0 %v422_v35 }
  0x5c   :  { %293 = vmatpush1.bf16.msra.mxu0 %v424_v36 }
  0x5d   :  { %294 = vmatprep.subr.bf16.mxu0 %v425_v37 }
  0x60   :  { %295 = vmatpush1.bf16.msra.mxu0 %v427_v38 }
  0x61   :  { %296 = vmatprep.subr.bf16.mxu0 %v428_v39 }
  0x64   :  { %297 = vmatpush1.bf16.msra.mxu0 %v430_v40 }
  0x67   :  { %299 = vmatmul.mubr.bf16.vlgmr.msra.gmra.mrb[0].mxu0 %v96_v41 }
 0x13a   :  { %v300_v46 = vpop.f32.mrb[0].mxu0 }
 0x13b   :  { %v302_v48 = vpop.f32.mrb[1].mxu0 }
 0x13c   :  { %v309_v49 = vcombine.low %v300_v46, %v302_v48  ;;  %v304_v50 = vpop.f32.mrb[2].mxu0 }
 0x13d   :  { %v305_v52 = vpop.f32.mrb[3].mxu0 }
 0x13e   :  { %v316_v53 = vrot.slane %v309_v49, %v315_v47 }
 0x140   :  { %v318_v54 = vadd.f32 %v316_v53, %v48_v51 }
 0x142   :  { %319 = vst [vmem:[#allocation2] sm:$0xf] %v318_v54 }
 0x149   :  { %v323_v55 = vld [vmem:[#allocation2] sm:$0xf] }
 0x14a   :  { %324 = vst [vmem:[#allocation8] sm:$0xf] %v323_v55 }
 0x14b   :  { %486 = shalt.err (!%p483_p6)
}
 0x14c   :  { %s487_s10 = scalar_lea.hbm %s571_s2, 64 }
 0x14d   :  { %p488_p7 = scmp.ne.s32.totalorder %s571_s2, %s487_s10  ;;  %p491_p8 = scmp.lt.u32.totalorder %s487_s10, %s571_s2 }
 0x14f   :  { %p493_p9 = pnand %p491_p8, %p488_p7 }
 0x151   :  { %496 = shalt.err (!%p493_p9)
}
 0x152   :  { %334 = dma.vmem_to_hbm [thread:$0]  %s332_s6, 64, %s571_s2, [#allocation5]  }
 0x153   :  { %501 = dma.done.wait [#allocation5], 64  }
 0x154   :  { %502 = vsyncadd [#allocation5], 4294967232 }
 0x155   :  { %338 = vsyncpa [#allocation4], 1 }
 0x156   :  { %339 = vsyncpa [#allocation7], 1 }
 0x157   :  { %340 = vsyncpa [#allocation5], 1 }

// kernel: priornet_forward.2
= control target key start
LH: loop header
LB: loop body
LE: loop exit
PB: predicated region body
PF: predicated region fallthrough
CT: control target
= control target key end

     0   :  { %s4773_s0 = inlined_call_operand.hbm [shape: f32[2,1,256], index: 0, kind: input, shape index: {}]   ;;  %s4774_s1 = inlined_call_operand.hbm [shape: f32[2,1,256], index: 1, kind: input, shape index: {}]   ;;  %s4775_s2 = inlined_call_operand.hbm [shape: f32[2,256], index: 2, kind: input, shape index: {}]   ;;  %s4776_s3 = inlined_call_operand.hbm [shape: bf16[32,18], index: 3, kind: input, shape index: {}]   ;;  %s4777_s4 = inlined_call_operand.hbm [shape: f32[32,1], index: 4, kind: input, shape index: {}]   ;;  %s4778_s5 = inlined_call_operand.hbm [shape: bf16[32,288], index: 5, kind: input, shape index: {}]   ;;  %s4779_s6 = inlined_call_operand.hbm [shape: f32[32,1], index: 6, kind: input, shape index: {}]   ;;  %s4780_s7 = inlined_call_operand.hbm [shape: bf16[9,32], index: 7, kind: input, shape index: {}]   ;;  %s4781_s8 = inlined_call_operand.<no memory space> [shape: f32[1,1], index: 8, kind: input, shape index: {}]   ;;  %s4782_s9 = inlined_call_operand.hbm [shape: f32[2,1,256], index: 9, kind: output, shape index: {0}]   ;;  %s4783_s10 = inlined_call_operand.hbm [shape: bf16[2,1,256], index: 10, kind: output, shape index: {1}]  }
   0x1   :  { %4799 = sst [smem:[#allocation29_spill]] %s4775_s2  ;;  %v16_v0 = vstv %s4781_s8 }
   0x2   :  { %4800 = sst [smem:[#allocation30_spill]] %s4776_s3  ;;  %17 = vst [vmem:[#allocation3] sm:$0x1] %v16_v0 }
   0x3   :  { %4801 = sst [smem:[#allocation31_spill]] %s4777_s4 }
   0x4   :  { %4802 = sst [smem:[#allocation32_spill]] %s4778_s5 }
   0x5   :  { %4803 = sst [smem:[#allocation33_spill]] %s4779_s6 }
   0x6   :  { %4804 = sst [smem:[#allocation34_spill]] %s4780_s7 }
   0x7   :  { %18 = vsyncpa [#allocation5], 0 }
   0x8   :  { %20 = vsyncpa [#allocation5 + $0x1], 0 }
   0x9   :  { %21 = vsyncpa [#allocation8], 0 }
   0xa   :  { %23 = vsyncpa [#allocation8 + $0x1], 0 }
   0xb   :  { %24 = vsyncpa [#allocation11], 0 }
   0xc   :  { %25 = vsyncpa [#allocation14], 0 }
   0xd   :  { %26 = vsyncpa [#allocation17], 0 }
   0xe   :  { %27 = vsyncpa [#allocation6], 0 }
   0xf   :  { %29 = vsyncpa [#allocation6 + $0x1], 0 }
  0x10   :  { %30 = vsyncpa [#allocation20], 0 }
  0x11   :  { %32 = vsyncpa [#allocation20 + $0x1], 0  ;;  %s3386_s15 = smov 0   ;;  %s3388_s16 = smov 0  }
  0x12   :  { %s3390_s17 = smov 0   ;;  %s3392_s18 = smov 0  }
  0x13 LB: > { %s3295_s8 = smov [#allocation9]   ;;  %s3407_s20 = sadd.s32 4294967295, %s3293_s18   ;;  %s3293_s18 = sphi %s3392_s18, %s4871_s18   ;;  %s3289_s17 = sphi %s3390_s17, %s4870_s17   ;;  %s3285_s16 = sphi %s3388_s16, %s4869_s16   ;;  %s3281_s15 = sphi %s3386_s15, %s4868_s15  }
  0x14   : > { %s307_s19 = sshll.u32 %s3295_s8, 4  ;;  %p2710_p0 = scmp.ge.s32.totalorder %s3293_s18, 1  ;;  %s308_s19 = int_to_ptr.vmem [resolvable:$true] %s307_s19 }
  0x15   : > { %p4784_p1 = scmp.eq.s32.totalorder %s3407_s20, 0  ;;  %p294_p2 = scmp.lt.s32.totalorder %s3293_s18, 3 }
  0x16   : > { %s3296_s22 = smov [#allocation10]   ;;  %s3297_s25 = smov [#allocation13]  }
  0x17   : > { %p3412_p3 = pnand %p2710_p0, %p294_p2  ;;  %s317_s23 = sshll.u32 %s3296_s22, 4  ;;  %s3419_s23 = int_to_ptr.vmem [resolvable:$true] %s317_s23 }
  0x18   : > { %s343_s26 = sshll.u32 %s3297_s25, 4  ;;  %s4807_s2 = sld [smem:[#allocation29_spill]]  ;;  %s3427_s26 = int_to_ptr.vmem [resolvable:$true] %s343_s26 }
  0x19   : > { %s4805_s21 = scalar_select %p3412_p3, 1, 0 }
  0x1a   : > { %p2822_p5 = pneg %p3412_p3 }
  0x1c   : > { %p3423_p6 = pnand %p2822_p5, %p4784_p1 }
  0x1e   : > { %s2947_s29 = scalar_lea.hbm %s4807_s2, 64  ;;  %p3437_p8 = pneg %p3423_p6 }
  0x1f   : > { %p2948_p7 = scmp.ne.s32.totalorder %s4807_s2, %s2947_s29  ;;  %p2954_p11 = scmp.lt.u32.totalorder %s2947_s29, %s4807_s2 }
  0x21   : > { %p2950_p9 = pnand %p3437_p8, %p2948_p7 }
  0x23   : > { %p2951_p10 = pneg %p2950_p9 }
  0x25   : > { %p2956_p12 = pnand %p2954_p11, %p2951_p10 }
  0x27   : > { %2959 = shalt.err (!%p2956_p12)
}
  0x28   : > { %s2960_s8 = scalar_lea.vmem %s308_s19, 64  ;;  %p2968_p5 = scmp.lt.s32.totalorder %s308_s19, %s308_s19 }
  0x29   : > { %p2961_p13 = scmp.ne.s32.totalorder %s308_s19, %s2960_s8  ;;  %p2969_p4 = scmp.lt.s32.totalorder %s2960_s8, %s2960_s8 }
  0x2b   : > { %p2963_p0 = pnand %p2961_p13, %p3437_p8  ;;  %p2970_p1 = por %p2969_p4, %p2968_p5 }
  0x2d   : > { %p2964_p2 = pneg %p2963_p0 }
  0x2f   : > { %p2971_p3 = pnand %p2970_p1, %p2964_p2 }
  0x31   : > { %2974 = shalt.err (!%p2971_p3)
}
  0x32   : > { %2825 = dma.hbm_to_vmem [thread:$0]  (!%p3423_p6), %s4807_s2, 64, %s308_s19, [#allocation8]  }
  0x33   : > { %s4809_s3 = sld [smem:[#allocation30_spill]] }
  0x39   : > { %s2975_s29 = scalar_lea.hbm %s4809_s3, 256 }
  0x3a   : > { %p2976_p7 = scmp.ne.s32.totalorder %s4809_s3, %s2975_s29  ;;  %p2982_p1 = scmp.lt.u32.totalorder %s2975_s29, %s4809_s3 }
  0x3c   : > { %p2978_p9 = pnand %p2976_p7, %p3437_p8 }
  0x3e   : > { %p2979_p4 = pneg %p2978_p9 }
  0x40   : > { %p2984_p3 = pnand %p2982_p1, %p2979_p4 }
  0x42   : > { %2987 = shalt.err (!%p2984_p3)
}
  0x43   : > { %s2988_s19 = scalar_lea.vmem %s3419_s23, 256  ;;  %p2996_p13 = scmp.lt.s32.totalorder %s3419_s23, %s3419_s23 }
  0x44   : > { %p2989_p10 = scmp.ne.s32.totalorder %s3419_s23, %s2988_s19  ;;  %p2997_p0 = scmp.lt.s32.totalorder %s2988_s19, %s2988_s19 }
  0x46   : > { %p2991_p11 = pnand %p2989_p10, %p3437_p8  ;;  %p2998_p2 = por %p2997_p0, %p2996_p13 }
  0x48   : > { %p2992_p12 = pneg %p2991_p11 }
  0x4a   : > { %p2999_p5 = pnand %p2998_p2, %p2992_p12 }
  0x4c   : > { %3002 = shalt.err (!%p2999_p5)
}
  0x4d   : > { %s4786_s8 = smov 64   ;;  %s4787_s22 = smov 4  }
  0x4e   : > { %2828 = dma.hbm_to_vmem [thread:$0]  (!%p3423_p6), %s4809_s3, 256, %s3419_s23, [#allocation11], %s4786_s8, %s4786_s8, %s4787_s22  }
  0x4f   : > { %s4810_s5 = sld [smem:[#allocation32_spill]] }
  0x55   : > { %s3003_s30 = scalar_lea.hbm %s4810_s5, 768 }
  0x56   : > { %p3004_p7 = scmp.ne.s32.totalorder %s4810_s5, %s3003_s30  ;;  %p3010_p1 = scmp.lt.u32.totalorder %s3003_s30, %s4810_s5 }
  0x58   : > { %p3006_p9 = pnand %p3004_p7, %p3437_p8 }
  0x5a   : > { %p3007_p4 = pneg %p3006_p9 }
  0x5c   : > { %p3012_p3 = pnand %p3010_p1, %p3007_p4 }
  0x5e   : > { %3015 = shalt.err (!%p3012_p3)
}
  0x5f   : > { %s3016_s23 = scalar_lea.vmem %s3427_s26, 768  ;;  %p3024_p13 = scmp.lt.s32.totalorder %s3427_s26, %s3427_s26 }
  0x60   : > { %p3017_p10 = scmp.ne.s32.totalorder %s3427_s26, %s3016_s23  ;;  %p3025_p0 = scmp.lt.s32.totalorder %s3016_s23, %s3016_s23 }
  0x62   : > { %p3019_p11 = pnand %p3017_p10, %p3437_p8  ;;  %p3026_p2 = por %p3025_p0, %p3024_p13 }
  0x64   : > { %p3020_p12 = pneg %p3019_p11 }
  0x66   : > { %p3027_p5 = pnand %p3026_p2, %p3020_p12 }
  0x68   : > { %3030 = shalt.err (!%p3027_p5)
}
  0x69   : > { %s3300_s25 = smov 192   ;;  %s3301_s27 = smov 12  }
  0x6a   : > { %2834 = dma.hbm_to_vmem [thread:$0]  (!%p3423_p6), %s4810_s5, 768, %s3427_s26, [#allocation14], %s3300_s25, %s3300_s25, %s3301_s27  }
  0x6b   : > { %s3302_s30 = smov [#allocation12]   ;;  %s4811_s4 = sld [smem:[#allocation31_spill]] }
  0x6c   : > { %s330_s11 = sshll.u32 %s3302_s30, 4  ;;  %s331_s11 = int_to_ptr.vmem [resolvable:$true] %s330_s11 }
  0x71   : > { %s3031_s19 = scalar_lea.hbm %s4811_s4, 512 }
  0x72   : > { %p3032_p7 = scmp.ne.s32.totalorder %s4811_s4, %s3031_s19  ;;  %p3038_p1 = scmp.lt.u32.totalorder %s3031_s19, %s4811_s4 }
  0x74   : > { %p3034_p9 = pnand %p3032_p7, %p3437_p8 }
  0x76   : > { %p3035_p4 = pneg %p3034_p9 }
  0x78   : > { %p3040_p3 = pnand %p3038_p1, %p3035_p4 }
  0x7a   : > { %3043 = shalt.err (!%p3040_p3)
}
  0x7b   : > { %s3044_s26 = scalar_lea.vmem %s331_s11, 512  ;;  %p3052_p13 = scmp.lt.s32.totalorder %s331_s11, %s331_s11 }
  0x7c   : > { %p3045_p10 = scmp.ne.s32.totalorder %s331_s11, %s3044_s26  ;;  %p3053_p0 = scmp.lt.s32.totalorder %s3044_s26, %s3044_s26 }
  0x7e   : > { %p3047_p11 = pnand %p3045_p10, %p3437_p8  ;;  %p3054_p2 = por %p3053_p0, %p3052_p13 }
  0x80   : > { %p3048_p12 = pneg %p3047_p11 }
  0x82   : > { %p3055_p5 = pnand %p3054_p2, %p3048_p12 }
  0x84   : > { %3058 = shalt.err (!%p3055_p5)
}
  0x85   : > { %s3303_s8 = smov 128   ;;  %s3304_s25 = smov 8  }
  0x86   : > { %2831 = dma.hbm_to_vmem [thread:$0]  (!%p3423_p6), %s4811_s4, 512, %s331_s11, [#allocation11], %s3303_s8, %s3303_s8, %s3304_s25  }
  0x87   : > { %s3305_s27 = smov [#allocation15]   ;;  %s3306_s29 = smov [#allocation16]  }
  0x88   : > { %s356_s28 = sshll.u32 %s3305_s27, 4  ;;  %s369_s30 = sshll.u32 %s3306_s29, 4  ;;  %s357_s28 = int_to_ptr.vmem [resolvable:$true] %s356_s28  ;;  %s3520_s30 = int_to_ptr.vmem [resolvable:$true] %s369_s30 }
  0x89   : > { %s4812_s6 = sld [smem:[#allocation33_spill]] }
  0x8f   : > { %s3059_s19 = scalar_lea.hbm %s4812_s6, 512 }
  0x90   : > { %p3060_p7 = scmp.ne.s32.totalorder %s4812_s6, %s3059_s19  ;;  %p3066_p1 = scmp.lt.u32.totalorder %s3059_s19, %s4812_s6 }
  0x92   : > { %p3062_p9 = pnand %p3060_p7, %p3437_p8 }
  0x94   : > { %p3063_p4 = pneg %p3062_p9 }
  0x96   : > { %p3068_p3 = pnand %p3066_p1, %p3063_p4 }
  0x98   : > { %3071 = shalt.err (!%p3068_p3)
}
  0x99   : > { %s3072_s22 = scalar_lea.vmem %s357_s28, 512  ;;  %p3080_p13 = scmp.lt.s32.totalorder %s357_s28, %s357_s28 }
  0x9a   : > { %p3073_p10 = scmp.ne.s32.totalorder %s357_s28, %s3072_s22  ;;  %p3081_p0 = scmp.lt.s32.totalorder %s3072_s22, %s3072_s22 }
  0x9c   : > { %p3075_p11 = pnand %p3073_p10, %p3437_p8  ;;  %p3082_p2 = por %p3081_p0, %p3080_p13 }
  0x9e   : > { %p3076_p12 = pneg %p3075_p11 }
  0xa0   : > { %p3083_p5 = pnand %p3082_p2, %p3076_p12 }
  0xa2   : > { %3086 = shalt.err (!%p3083_p5)
}
  0xa3   : > { %2837 = dma.hbm_to_vmem [thread:$0]  (!%p3423_p6), %s4812_s6, 512, %s357_s28, [#allocation14], %s3303_s8, %s3303_s8, %s3304_s25  }
  0xa4   : > { %s4813_s7 = sld [smem:[#allocation34_spill]] }
  0xaa   : > { %s3087_s19 = scalar_lea.hbm %s4813_s7, 128 }
  0xab   : > { %p3088_p7 = scmp.ne.s32.totalorder %s4813_s7, %s3087_s19  ;;  %p3094_p1 = scmp.lt.u32.totalorder %s3087_s19, %s4813_s7 }
  0xad   : > { %p3090_p9 = pnand %p3088_p7, %p3437_p8 }
  0xaf   : > { %p3091_p4 = pneg %p3090_p9 }
  0xb1   : > { %p3096_p3 = pnand %p3094_p1, %p3091_p4 }
  0xb3   : > { %3099 = shalt.err (!%p3096_p3)
}
  0xb4   : > { %s3100_s8 = scalar_lea.vmem %s3520_s30, 128  ;;  %p3108_p13 = scmp.lt.s32.totalorder %s3520_s30, %s3520_s30 }
  0xb5   : > { %p3101_p10 = scmp.ne.s32.totalorder %s3520_s30, %s3100_s8  ;;  %p3109_p0 = scmp.lt.s32.totalorder %s3100_s8, %s3100_s8 }
  0xb7   : > { %p3103_p11 = pnand %p3101_p10, %p3437_p8  ;;  %p3110_p2 = por %p3109_p0, %p3108_p13 }
  0xb9   : > { %p3104_p12 = pneg %p3103_p11 }
  0xbb   : > { %p3111_p5 = pnand %p3110_p2, %p3104_p12 }
  0xbd   : > { %3114 = shalt.err (!%p3111_p5)
}
  0xbe   : > { %s4814_s25 = smov 4   ;;  %s4815_s28 = smov 64  }
  0xbf   : > { %2840 = dma.hbm_to_vmem [thread:$0]  (!%p3423_p6), %s4813_s7, 128, %s3520_s30, [#allocation17], %s4815_s28, %s4815_s28, %s4814_s25  }
  0xc0   : > { %s2709_s24 = sadd.s32 4294967294, %s3293_s18   ;;  %s3568_s12 = sadd.s32 1, %s3293_s18  }
  0xc1   : > { %s42_s29 = ssub.s32 %s3293_s18, %s3568_s12  ;;  %s45_s13 = sadd.s32 1, %s3289_s17 }
  0xc2   : > { %p43_p8 = scmp.eq.s32.totalorder %s42_s29, 0  ;;  %p52_p7 = scmp.ne.s32.totalorder %s3289_s17, %s3285_s16 }
  0xc3   : > { %p53_p9 = scmp.eq.s32.totalorder %s3293_s18, 0  ;;  %p58_p4 = scmp.ne.s32.totalorder %s3285_s16, %s3281_s15 }
  0xc4   : > { %s3579_s14 = scalar_select %p43_p8, %s3289_s17, %s45_s13  }
  0xc5   : > { %p3581_p1 = por %p53_p9, %p52_p7  ;;  %p4817_p3 = scmp.eq.s32.totalorder %s3407_s20, 0 }
  0xc6   : > { %p255_p10 = scmp.eq.s32.totalorder %s3407_s20, 1  ;;  %p261_p11 = scmp.eq.s32.totalorder %s2709_s24, 1 }
  0xc7   : > { %p3587_p6 = por %p4817_p3, %p58_p4  ;;  %p2861_p12 = scmp.lt.s32.totalorder %s3293_s18, 2 }
  0xc8   : > { %s386_s23 = sand.u32 1, %s3289_s17   ;;  %p3594_p13 = por %p255_p10, %p52_p7 }
  0xc9   : > { %s4818_s30 = scalar_select %p3587_p6, 1, 0 }
  0xca   : > { %s4819_s26 = scalar_select %p3594_p13, 1, 0 }
  0xcb   : > { %p3598_p0 = por %p261_p11, %p58_p4  ;;  %s3602_s11 = sshll.u32 %s386_s23, 1 }
  0xcc   : > { %s2770_s8 = sshll.u32 %s3293_s18, 5  ;;  %s390_s27 = scalar_lea.vmem [#allocation4], %s3602_s11 }
  0xcd   : > { %s4820_s2 = scalar_select %p3598_p0, 1, 0 }
  0xce   : > { %s3608_s22 = scalar_lea.hbm %s4773_s0, %s2770_s8  ;;  %s398_s24 = sshll.u32 %s390_s27, 4  ;;  %s3611_s24 = int_to_ptr.vmem [resolvable:$true] %s398_s24 }
  0xcf   : > { %p3615_p2 = pnand %p2861_p12, %p3581_p1  ;;  %s3622_s25 = scalar_lea.hbm %s4774_s1, %s2770_s8 }
  0xd0   : > { %s405_s28 = sand.u32 1, %s3293_s18   ;;  %s387_s4 = scalar_lea.sflag [#allocation5], %s386_s23 }
  0xd1   : > { %s3115_s5 = scalar_lea.hbm %s3608_s22, 32  ;;  %p3117_p8 = pneg %p3615_p2 }
  0xd2   : > { %p3116_p5 = scmp.ne.s32.totalorder %s3608_s22, %s3115_s5  ;;  %s3120_s6 = scalar_lea.hbm %s4773_s0, 64 }
  0xd3   : > { %p3121_p4 = scmp.lt.u32.totalorder %s3608_s22, %s4773_s0  ;;  %p3122_p1 = scmp.lt.u32.totalorder %s3120_s6, %s3115_s5 }
  0xd4   : > { %p3118_p7 = pnand %p3117_p8, %p3116_p5  ;;  %p3124_p10 = scmp.lt.u32.totalorder %s3115_s5, %s3608_s22 }
  0xd5   : > { %p3123_p3 = por %p3122_p1, %p3121_p4 }
  0xd6   : > { %p3119_p9 = pneg %p3118_p7 }
  0xd7   : > { %p3125_p11 = por %p3124_p10, %p3123_p3 }
  0xd9   : > { %p3126_p12 = pnand %p3125_p11, %p3119_p9 }
  0xdb   : > { %3129 = shalt.err (!%p3126_p12)
}
  0xdc   : > { %s3130_s23 = scalar_lea.vmem %s3611_s24, 32  ;;  %s3307_s8 = smov [#allocation4]  }
  0xdd   : > { %p3131_p5 = scmp.ne.s32.totalorder %s3611_s24, %s3130_s23  ;;  %s3135_s13 = sshll.u32 %s3307_s8, 4  ;;  %s3136_s13 = int_to_ptr.vmem [resolvable:$false] %s3135_s13 }
  0xde   : > { %s3137_s7 = scalar_lea.vmem %s3136_s13, 64  ;;  %p3138_p13 = scmp.lt.s32.totalorder %s3611_s24, %s3136_s13 }
  0xdf   : > { %p3133_p7 = pnand %p3131_p5, %p3117_p8  ;;  %p3139_p4 = scmp.lt.s32.totalorder %s3137_s7, %s3130_s23 }
  0xe1   : > { %p3134_p0 = pneg %p3133_p7  ;;  %p3140_p1 = por %p3139_p4, %p3138_p13 }
  0xe3   : > { %p3141_p3 = pnand %p3140_p1, %p3134_p0 }
  0xe5   : > { %3144 = shalt.err (!%p3141_p3)
}
  0xe6   : > { %2844 = dma.hbm_to_vmem [thread:$0]  (!%p3615_p2), %s3608_s22, 32, %s3611_s24, %s387_s4  }
  0xe7   : > { %s409_s5 = scalar_lea.vmem [#allocation7], %s3602_s11  ;;  %s406_s19 = scalar_lea.sflag [#allocation8], %s405_s28 }
  0xe8   : > { %s417_s6 = sshll.u32 %s409_s5, 4  ;;  %s3145_s27 = scalar_lea.hbm %s3622_s25, 32  ;;  %s418_s6 = int_to_ptr.vmem [resolvable:$true] %s417_s6 }
  0xe9   : > { %p3146_p13 = scmp.ne.s32.totalorder %s3622_s25, %s3145_s27  ;;  %s3150_s8 = scalar_lea.hbm %s4774_s1, 64 }
  0xea   : > { %p3151_p10 = scmp.lt.u32.totalorder %s3622_s25, %s4774_s1  ;;  %p3152_p11 = scmp.lt.u32.totalorder %s3150_s8, %s3145_s27 }
  0xeb   : > { %p3148_p0 = pnand %p3146_p13, %p3117_p8  ;;  %p3154_p5 = scmp.lt.u32.totalorder %s3145_s27, %s3622_s25 }
  0xec   : > { %p3153_p12 = por %p3152_p11, %p3151_p10 }
  0xed   : > { %p3149_p9 = pneg %p3148_p0 }
  0xee   : > { %p3155_p7 = por %p3154_p5, %p3153_p12 }
  0xf0   : > { %p3156_p4 = pnand %p3155_p7, %p3149_p9 }
  0xf2   : > { %3159 = shalt.err (!%p3156_p4)
}
  0xf3   : > { %s3160_s4 = scalar_lea.vmem %s418_s6, 32  ;;  %s3308_s11 = smov [#allocation7]  }
  0xf4   : > { %p3161_p1 = scmp.ne.s32.totalorder %s418_s6, %s3160_s4  ;;  %s3165_s22 = sshll.u32 %s3308_s11, 4  ;;  %s3166_s22 = int_to_ptr.vmem [resolvable:$false] %s3165_s22 }
  0xf5   : > { %s3167_s24 = scalar_lea.vmem %s3166_s22, 64  ;;  %p3168_p0 = scmp.lt.s32.totalorder %s418_s6, %s3166_s22 }
  0xf6   : > { %p3163_p3 = pnand %p3161_p1, %p3117_p8  ;;  %p3169_p6 = scmp.lt.s32.totalorder %s3167_s24, %s3160_s4 }
  0xf8   : > { %p3164_p13 = pneg %p3163_p3  ;;  %p3170_p10 = por %p3169_p6, %p3168_p0 }
  0xfa   : > { %p3171_p11 = pnand %p3170_p10, %p3164_p13 }
  0xfc   : > { %3174 = shalt.err (!%p3171_p11)
}
  0xfd   : > { %2847 = dma.hbm_to_vmem [thread:$0]  (!%p3615_p2), %s3622_s25, 32, %s418_s6, %s406_s19  }
  0xfe   : > { %p4822_p9 = scmp.ne.s32.totalorder %s4805_s21, 0 }
  0xff   : > { %s3675_s28 = sand.u32 (!%p4822_p9), 1, %s3285_s16   ;;  %p4823_p6 = scmp.ne.s32.totalorder (!%p4822_p9), %s4818_s30, 0 }
 0x100   : > { %426 = sbr.rel (%p4822_p9) target bundleno = 1966 (0x7ae), region = 56  ;;  %s3678_s5 = sshll.u32 (!%p4822_p9), %s3675_s28, 1 }
 0x101   : > { %s429_s27 = scalar_lea.sflag (!%p4822_p9), [#allocation5], %s3675_s28  ;;  %s432_s3 = scalar_lea.vmem (!%p4822_p9), [#allocation4], %s3678_s5 }
 0x107   : > { %3248 = dma.done.wait (%p4823_p6), %s429_s27, 32  }
 0x108   : > { %3250 = vsyncadd (%p4823_p6), %s429_s27, 4294967264  ;;  %s437_s21 = sand.u32 1, %s3407_s20   ;;  %s441_s25 = scalar_lea.vmem [#allocation7], %s3678_s5 }
 0x109   : > { %s438_s29 = scalar_lea.sflag [#allocation8], %s437_s21 }
 0x10a   : > { %3252 = dma.done.wait (%p4823_p6), %s438_s29, 32  }
 0x10b   : > { %3254 = vsyncadd (%p4823_p6), %s438_s29, 4294967264  ;;  %p4824_p2 = scmp.eq.s32.totalorder %s3407_s20, 0 }
 0x10d   : > { %3256 = dma.done.wait (%p4824_p2), [#allocation8], 64   ;;  %p4825_p8 = pmov %p4824_p2 }
 0x10e   : > { %p4826_p12 = pmov %p4824_p2 }
 0x10f   : > { %3258 = vsyncadd (%p4825_p8), [#allocation8], 4294967232 }
 0x110   : > { %3260 = dma.done.wait (%p4826_p12), [#allocation11], 768   ;;  %p4827_p5 = pmov %p4824_p2 }
 0x111   : > { %p4828_p7 = pmov %p4824_p2 }
 0x112   : > { %3262 = vsyncadd (%p4827_p5), [#allocation11], 4294966528 }
 0x113   : > { %3264 = dma.done.wait (%p4828_p7), [#allocation14], 1280   ;;  %p4829_p4 = pmov %p4824_p2 }
 0x114   : > { %p4830_p1 = pmov %p4824_p2 }
 0x115   : > { %3266 = vsyncadd (%p4829_p4), [#allocation14], 4294966016 }
 0x116   : > { %3268 = dma.done.wait (%p4830_p1), [#allocation17], 128   ;;  %p4831_p3 = pmov %p4830_p1 }
 0x117   : > { %v4796_v1 = vlaneseq  ;;  %vm513_vm0 = vcmask 138240   ;;  %vm518_vm1 = vcmask 277640   ;;  %v3309_v2 = vmov 0.0   ;;  %v574_v6 = vld [vmem:[#allocation9 + $0x1] ss:$2 sm:$0x3] }
 0x118   : > { %3270 = vsyncadd (%p4831_p3), [#allocation17], 4294967168  ;;  %514 = vst.msk [vmem:[#allocation2] sm:$0xff] %vm513_vm0, %v3309_v2  ;;  %v523_v7 = vld [vmem:[%s432_s3] sm:$0x3]  ;;  %s3310_s30 = smov 2  }
 0x119   : > { %515 = vst.msk [vmem:[#allocation2 + $0x18] sm:$0xff] %vm513_vm0, %v3309_v2  ;;  %516 = vst.msk [vmem:[#allocation2 + $0x30] sm:$0xff] %vm513_vm0, %v3309_v2  ;;  %v3713_v3 = vshrl.u32 %v4796_v1, 7  ;;  %v3724_v9 = vmul.f32 0.003921569, %v523_v7  ;;  %s3311_s6 = smov 17  }
 0x11a   : > { %517 = vst.msk [vmem:[#allocation2 + $0x48] sm:$0xff] %vm513_vm0, %v3309_v2  ;;  %v553_v10 = vld [vmem:[#allocation9] ss:$2 sm:$0x3]  ;;  %v525_v12 = vld [vmem:[%s441_s25] sm:$0x3] }
 0x11b   : > { %519 = vst.msk [vmem:[#allocation2 + $0x10] sm:$0xff] %vm518_vm1, %v3309_v2  ;;  %520 = vst.msk [vmem:[#allocation2 + $0x28] sm:$0xff] %vm518_vm1, %v3309_v2  ;;  %v3716_v4 = vsub.s32 0, %v3713_v3  ;;  %v3719_v5 = vsub.s32 1, %v3713_v3  ;;  %527 = vrot.lane.b32.xlu0 %v3724_v9, %s3311_s6  ;;  %s3312_s19 = smov 16   ;;  %s3313_s23 = smov 18  }
 0x11c   : > { %521 = vst.msk [vmem:[#allocation2 + $0x40] sm:$0xff] %vm518_vm1, %v3309_v2  ;;  %522 = vst.msk [vmem:[#allocation2 + $0x58] sm:$0xff] %vm518_vm1, %v3309_v2  ;;  %s3314_s8 = smov 32   ;;  %s3315_s13 = smov 34   ;;  %vm533_vm2 = vcmp.ge.s32.totalorder %v4796_v1, 17  ;;  %vm534_vm3 = vcmp.lt.s32.totalorder %v4796_v1, 273 }
 0x11d   : > { %v579_v8 = vrot.slane %v574_v6, %v3716_v4  ;;  %v583_v11 = vrot.slane %v574_v6, %v3719_v5  ;;  %v3735_v13 = vrot.slane %v553_v10, %v3719_v5  ;;  %v3738_v14 = vrot.slane %v553_v10, %v3716_v4  ;;  %vm535_vm4 = vmand %vm533_vm2, %vm534_vm3  ;;  %s3316_s7 = smov 127   ;;  %s3317_s4 = smov 111  }
 0x11e   : > { %vm588_vm5 = vcmask 15360   ;;  %vm4792_vm6 = vcmask 130048   ;;  %s3318_s11 = smov 95   ;;  %vm4795_vm7 = vcmask 146432   ;;  %vm633_vm8 = vcmask 261120   ;;  %s3319_s22 = smov 126  }
 0x11f   : > { %584 = vrot.lane.b32.xlu1 %v579_v8, %s3310_s30  ;;  %539 = vrot.lane.b32.xlu0 %v525_v12, %s3311_s6  ;;  %s3320_s24 = smov 112   ;;  %s3321_s27 = smov 110   ;;  %vm4791_vm9 = vcmask 277504   ;;  %vm4790_vm10 = vcmask 1039360   ;;  %vm4793_vm11 = vcmask 1031168   ;;  %vm701_vm12 = vcmask 916480  }
 0x120   : > { %s3322_s3 = smov 96   ;;  %s3324_s21 = smov 94   ;;  %vm4794_vm13 = vcmask 1040384   ;;  %vm777_vm14 = vcmask 1041408   ;;  %vm782_vm15 = vcmask 1042432   ;;  %vm728_vm1 = vcmask 900096  }
 0x121   : > { %vm713_vm2 = vcmask 908288   ;;  %vm787_vm3 = vcmask 1043456   ;;  %s2772_s29 = sshll.u32 %s3407_s20, 5  ;;  %p4864_p0 = scmp.ne.s32.totalorder %s4819_s26, 0 }
 0x123   : > { %586 = vrot.lane.b32.xlu1 %v583_v11, %s3310_s30  ;;  %599 = vrot.lane.b32.xlu0 %v3738_v14, %s3312_s19 }
 0x127   : > { %601 = vrot.lane.b32.xlu1 %v3735_v13, %s3312_s19  ;;  %614 = vrot.lane.b32.xlu0 %v579_v8, %s3313_s23 }
 0x12b   : > { %616 = vrot.lane.b32.xlu1 %v583_v11, %s3313_s23  ;;  %629 = vrot.lane.b32.xlu0 %v3738_v14, %s3314_s8 }
 0x12f   : > { %631 = vrot.lane.b32.xlu1 %v3735_v13, %s3314_s8  ;;  %644 = vrot.lane.b32.xlu0 %v579_v8, %s3315_s13 }
 0x133   : > { %646 = vrot.lane.b32.xlu1 %v583_v11, %s3315_s13 }
 0x18d   : > { %v528_v15 = vpop.permute.xlu0 %527 }
 0x18e   : > { %v529_v16 = vrot.slane %v528_v15, 7 }
 0x190   : > { %v530_v17 = vsel %vm513_vm0, %v529_v16, %v528_v15 }
 0x191   : > { %536 = vst.msk [vmem:[#allocation2] ss:$8 sm:$0x7] %vm535_vm4, %v530_v17  ;;  %v540_v18 = vpop.permute.xlu0 %539  ;;  %v585_v21 = vpop.permute.xlu1 %584 }
 0x192   : > { %v541_v19 = vrot.slane %v540_v18, 7 }
 0x194   : > { %v542_v20 = vsel %vm513_vm0, %v541_v19, %v540_v18 }
 0x195   : > { %545 = vst.msk [vmem:[#allocation2 + $0x1] ss:$8 sm:$0x7] %vm535_vm4, %v542_v20  ;;  %v587_v27 = vpop.permute.xlu1 %586  ;;  %v600_v35 = vpop.permute.xlu0 %599  ;;  %vm792_vm4 = vcmask 1044480  }
 0x196   : > { %v589_v32 = vsel %vm588_vm5, %v585_v21, %v587_v27 }
 0x199   : > { %v602_v34 = vpop.permute.xlu1 %601  ;;  %v615_v42 = vpop.permute.xlu0 %614 }
 0x19a   : > { %v604_v40 = vsel %vm4792_vm6, %v600_v35, %v602_v34  ;;  %vm797_vm6 = vcmask 1045504  }
 0x19c   : > { %v3756_v22 = vld [vmem:[#allocation2 + $0x10] sm:$0x3]  ;;  %v3758_v23 = vld [vmem:[#allocation2 + $0x8] sm:$0x3]  ;;  %v3760_v24 = vld [vmem:[#allocation2] sm:$0x3] }
 0x19d   : > { %v572_v25 = vpack.c.bf16 %v3756_v22, %v3756_v22  ;;  %v571_v26 = vpack.c.bf16 %v3758_v23, %v3758_v23  ;;  %v3768_v30 = vpack.c.bf16 %v3760_v24, %v3760_v24  ;;  %v594_v37 = vmul.f32 %v589_v32, %v3758_v23  ;;  %v617_v41 = vpop.permute.xlu1 %616  ;;  %v630_v57 = vpop.permute.xlu0 %629 }
 0x19e   : > { %v595_v39 = vmul.f32 %v587_v27, %v3756_v22  ;;  %v593_v45 = vmul.f32 %v585_v21, %v3760_v24  ;;  %v609_v46 = vmul.f32 %v604_v40, %v3758_v23  ;;  %v610_v49 = vmul.f32 %v602_v34, %v3756_v22 }
 0x19f   : > { %v664_v28 = vrot.slane %v572_v25, 7  ;;  %v663_v29 = vrot.slane %v571_v26, 7  ;;  %v705_v31 = vrot.slane %v571_v26, 4  ;;  %v662_v33 = vrot.slane %v3768_v30, 7 }
 0x1a0   : > { %v704_v36 = vrot.slane %v3768_v30, 4  ;;  %v706_v38 = vrot.slane %v572_v25, 4  ;;  %v748_v43 = vrot.slane %v572_v25, 1  ;;  %v597_v44 = vpack.c.bf16 %v594_v37, %v594_v37 }
 0x1a1   : > { %669 = vrot.lane.b32.xlu1 %v664_v28, %s3316_s7  ;;  %667 = vrot.lane.b32.xlu0 %v663_v29, %s3316_s7  ;;  %v747_v47 = vrot.slane %v571_v26, 1  ;;  %v598_v48 = vpack.c.bf16 %v595_v39, %v595_v39  ;;  %v596_v51 = vpack.c.bf16 %v593_v45, %v593_v45  ;;  %v608_v52 = vmul.f32 %v600_v35, %v3760_v24  ;;  %v632_v56 = vpop.permute.xlu1 %631  ;;  %v645_v26 = vpop.permute.xlu0 %644 }
 0x1a2   : > { %v678_v50 = vrot.slane %v597_v44, 6  ;;  %v612_v54 = vpack.c.bf16 %v609_v46, %v609_v46  ;;  %v619_v55 = vsel %vm4795_vm7, %v615_v42, %v617_v41  ;;  %v613_v58 = vpack.c.bf16 %v610_v49, %v610_v49 }
 0x1a3   : > { %v679_v53 = vrot.slane %v598_v48, 6  ;;  %v625_v59 = vmul.f32 %v617_v41, %v3756_v22  ;;  %v677_v60 = vrot.slane %v596_v51, 6  ;;  %v611_v61 = vpack.c.bf16 %v608_v52, %v608_v52  ;;  %v810_v41 = vld [vmem:[#allocation12 + $0x8] sm:$0xff] }
 0x1a4   : > { %v624_v62 = vmul.f32 %v619_v55, %v3758_v23  ;;  %v634_v63 = vsel %vm633_vm8, %v630_v57, %v632_v56  ;;  %v693_v0 = vrot.slane %v612_v54, 5  ;;  %v694_v7 = vrot.slane %v613_v58, 5 }
 0x1a5   : > { %709 = vrot.lane.b32.xlu1 %v705_v31, %s3317_s4  ;;  %665 = vrot.lane.b32.xlu0 %v662_v33, %s3316_s7  ;;  %v628_v2 = vpack.c.bf16 %v625_v59, %v625_v59  ;;  %v639_v6 = vmul.f32 %v634_v63, %v3758_v23  ;;  %v623_v8 = vmul.f32 %v615_v42, %v3760_v24  ;;  %v692_v10 = vrot.slane %v611_v61, 5  ;;  %v647_v28 = vpop.permute.xlu1 %646  ;;  %v809_v42 = vld [vmem:[#allocation12] sm:$0xff] }
 0x1a6   : > { %v627_v11 = vpack.c.bf16 %v624_v62, %v624_v62  ;;  %v638_v12 = vmul.f32 %v630_v57, %v3760_v24  ;;  %v640_v18 = vmul.f32 %v632_v56, %v3756_v22  ;;  %v653_v29 = vmul.f32 %v645_v26, %v3760_v24 }
 0x1a7   : > { %v721_v15 = vrot.slane %v628_v2, 3  ;;  %v642_v16 = vpack.c.bf16 %v639_v6, %v639_v6  ;;  %v626_v17 = vpack.c.bf16 %v623_v8, %v623_v8  ;;  %v4797_v33 = vmov 0  }
 0x1a8   : > { %v720_v19 = vrot.slane %v627_v11, 3  ;;  %v641_v20 = vpack.c.bf16 %v638_v12, %v638_v12  ;;  %v643_v25 = vpack.c.bf16 %v640_v18, %v640_v18  ;;  %887 = vmatprep.mubr.bf16.mxu0 %v4797_v33  ;;  %2930 = vset.pattern.permute.xlu0 %v4797_v33  ;;  %v649_v34 = vsel %vm4791_vm9, %v645_v26, %v647_v28 }
 0x1a9   : > { %707 = vrot.lane.b32.xlu1 %v704_v36, %s3317_s4  ;;  %711 = vrot.lane.b32.xlu0 %v706_v38, %s3317_s4  ;;  %v735_v21 = vrot.slane %v642_v16, 2  ;;  %v719_v27 = vrot.slane %v626_v17, 3  ;;  %v655_v35 = vmul.f32 %v647_v28, %v3756_v22  ;;  %v656_v36 = vpack.c.bf16 %v653_v29, %v653_v29  ;;  %v811_v22 = vld [vmem:[#allocation12 + $0x10] sm:$0xff] }
 0x1aa   : > { %v734_v31 = vrot.slane %v641_v20, 2  ;;  %v736_v32 = vrot.slane %v643_v25, 2  ;;  %2931 = vset.pattern.permute.xlu1 %v4797_v33  ;;  %v746_v37 = vrot.slane %v3768_v30, 1  ;;  %v654_v38 = vmul.f32 %v649_v34, %v3758_v23 }
 0x1ab   : > { %v658_v39 = vpack.c.bf16 %v655_v35, %v655_v35  ;;  %v566_v57 = vmul.f32 %v3735_v13, %v3758_v23  ;;  %vm755_vm9 = vcmask 777216  }
 0x1ac   : > { %v657_v40 = vpack.c.bf16 %v654_v38, %v654_v38 }
 0x1ad   : > { %753 = vrot.lane.b32.xlu1 %v748_v43, %s3318_s11  ;;  %751 = vrot.lane.b32.xlu0 %v747_v47, %s3318_s11  ;;  %v812_v43 = vld [vmem:[#allocation12 + $0x18] sm:$0xff]  ;;  %v568_v62 = vpack.c.bf16 %v566_v57, %v566_v57 }
 0x1b1   : > { %682 = vrot.lane.b32.xlu1 %v678_v50, %s3319_s22  ;;  %684 = vrot.lane.b32.xlu0 %v679_v53, %s3319_s22 }
 0x1b5   : > { %680 = vrot.lane.b32.xlu1 %v677_v60, %s3319_s22  ;;  %697 = vrot.lane.b32.xlu0 %v693_v0, %s3320_s24  ;;  %v565_v60 = vmul.f32 %v3738_v14, %v3760_v24 }
 0x1b7   : > { %v567_v6 = vpack.c.bf16 %v565_v60, %v565_v60 }
 0x1b9   : > { %699 = vrot.lane.b32.xlu1 %v694_v7, %s3320_s24  ;;  %695 = vrot.lane.b32.xlu0 %v692_v10, %s3320_s24 }
 0x1bd   : > { %726 = vrot.lane.b32.xlu1 %v721_v15, %s3321_s27  ;;  %724 = vrot.lane.b32.xlu0 %v720_v19, %s3321_s27 }
 0x1c1   : > { %739 = vrot.lane.b32.xlu1 %v735_v21, %s3322_s3  ;;  %722 = vrot.lane.b32.xlu0 %v719_v27, %s3321_s27 }
 0x1c5   : > { %737 = vrot.lane.b32.xlu1 %v734_v31, %s3322_s3  ;;  %741 = vrot.lane.b32.xlu0 %v736_v32, %s3322_s3 }
 0x1c9   : > { %761 = vrot.lane.b32.xlu1 %v656_v36, %s3324_s21  ;;  %749 = vrot.lane.b32.xlu0 %v746_v37, %s3318_s11 }
 0x1cd   : > { %765 = vrot.lane.b32.xlu1 %v658_v39, %s3324_s21  ;;  %763 = vrot.lane.b32.xlu0 %v657_v40, %s3324_s21 }
 0x1d1   : > { %820 = vperm.xlu1 %2931, %v810_v41   ;;  %815 = vperm.xlu0 %2930, %v809_v42  }
 0x1d5   : > { %825 = vperm.xlu1 %2931, %v811_v22   ;;  %830 = vperm.xlu0 %2930, %v812_v43  }
 0x213   : > { %v670_v30 = vpop.permute.xlu1 %669  ;;  %v668_v44 = vpop.permute.xlu0 %667 }
 0x214   : > { %v673_v59 = vsel %vm4790_vm10, %v668_v44, %v670_v30 }
 0x215   : > { %v776_v2 = vsel %vm4794_vm13, %v568_v62, %v673_v59 }
 0x217   : > { %v710_v45 = vpop.permute.xlu1 %709  ;;  %v666_v46 = vpop.permute.xlu0 %665 }
 0x218   : > { %v672_v13 = vsel %vm4790_vm10, %v666_v46, %v668_v44  ;;  %vm743_vm10 = vcmask 785408   ;;  %v2932_v44 = vld [vmem:[#allocation10] sm:$0xff]  }
 0x219   : > { %v773_v11 = vsel %vm4794_vm13, %v567_v6, %v672_v13 }
 0x21b   : > { %v708_v47 = vpop.permute.xlu1 %707  ;;  %v712_v48 = vpop.permute.xlu0 %711 }
 0x21c   : > { %v715_v15 = vsel %vm713_vm2, %v710_v45, %v712_v48  ;;  %v714_v27 = vsel %vm713_vm2, %v708_v47, %v710_v45  ;;  %v2933_v45 = vld [vmem:[#allocation10 + $0x8] sm:$0xff]  }
 0x21f   : > { %v754_v49 = vpop.permute.xlu1 %753  ;;  %v752_v50 = vpop.permute.xlu0 %751 }
 0x220   : > { %v757_v29 = vsel %vm755_vm9, %v752_v50, %v754_v49 }
 0x223   : > { %v683_v51 = vpop.permute.xlu1 %682  ;;  %v685_v52 = vpop.permute.xlu0 %684 }
 0x224   : > { %v688_v63 = vsel %vm4793_vm11, %v683_v51, %v685_v52 }
 0x225   : > { %v781_v7 = vsel %vm777_vm14, %v776_v2, %v688_v63 }
 0x227   : > { %v681_v53 = vpop.permute.xlu1 %680  ;;  %v698_v54 = vpop.permute.xlu0 %697 }
 0x228   : > { %v687_v14 = vsel %vm4793_vm11, %v681_v53, %v683_v51  ;;  %vm802_vm11 = vcmask 1046528  }
 0x229   : > { %v779_v16 = vsel %vm777_vm14, %v773_v11, %v687_v14  ;;  %vm767_vm14 = vcmask 769024  }
 0x22b   : > { %v700_v55 = vpop.permute.xlu1 %699  ;;  %v696_v56 = vpop.permute.xlu0 %695 }
 0x22c   : > { %v703_v0 = vsel %vm701_vm12, %v698_v54, %v700_v55  ;;  %v702_v10 = vsel %vm701_vm12, %v696_v56, %v698_v54 }
 0x22d   : > { %v786_v8 = vsel %vm782_vm15, %v781_v7, %v703_v0  ;;  %v784_v19 = vsel %vm782_vm15, %v779_v16, %v702_v10  ;;  %v985_v16 = vld [vmem:[#allocation9] ss:$2 sm:$0x3]  ;;  %vm4833_vm15 = vcmask 277504  }
 0x22e   : > { %v791_v18 = vsel %vm787_vm3, %v786_v8, %v715_v15  ;;  %v789_v32 = vsel %vm787_vm3, %v784_v19, %v714_v27  ;;  %v1019_v8 = vld [vmem:[#allocation9 + $0x1] ss:$2 sm:$0x3]  ;;  %vm4834_vm3 = vcmask 1039360  }
 0x22f   : > { %v727_v58 = vpop.permute.xlu1 %726  ;;  %v725_v61 = vpop.permute.xlu0 %724  ;;  %v1028_v15 = vrot.slane %v1019_v8, %v3719_v5 }
 0x230   : > { %v730_v12 = vsel %vm728_vm1, %v725_v61, %v727_v58 }
 0x231   : > { %v796_v26 = vsel %vm792_vm4, %v791_v18, %v730_v12  ;;  %v1024_v12 = vrot.slane %v1019_v8, %v3716_v4  ;;  %v994_v18 = vrot.slane %v985_v16, %v3719_v5 }
 0x233   : > { %v740_v23 = vpop.permute.xlu1 %739  ;;  %v723_v24 = vpop.permute.xlu0 %722 }
 0x234   : > { %v729_v21 = vsel %vm728_vm1, %v723_v24, %v725_v61 }
 0x235   : > { %v794_v36 = vsel %vm792_vm4, %v789_v32, %v729_v21  ;;  %vm4835_vm4 = vmmov %vm4834_vm3 }
 0x237   : > { %v738_v17 = vpop.permute.xlu1 %737  ;;  %v742_v20 = vpop.permute.xlu0 %741 }
 0x238   : > { %v745_v25 = vsel %vm743_vm10, %v740_v23, %v742_v20  ;;  %v744_v28 = vsel %vm743_vm10, %v738_v17, %v740_v23  ;;  %v3872_v17 = vrot.slane %v985_v16, %v3716_v4 }
 0x239   : > { %v801_v31 = vsel %vm797_vm6, %v796_v26, %v745_v25  ;;  %v799_v39 = vsel %vm797_vm6, %v794_v36, %v744_v28  ;;  %vm956_vm6 = vcmask 1047688  }
 0x23a   : > { %v807_v35 = vsel %vm802_vm11, %v801_v31, %v757_v29 }
 0x23b   : > { %v762_v34 = vpop.permute.xlu1 %761  ;;  %855 = vmatprep.subr.bf16.mxu0 %v807_v35  ;;  %v750_v37 = vpop.permute.xlu0 %749 }
 0x23c   : > { %v756_v38 = vsel %vm755_vm9, %v750_v37, %v752_v50 }
 0x23d   : > { %v804_v40 = vsel %vm802_vm11, %v799_v39, %v756_v38  ;;  %vm4832_vm11 = vcmask 130048  }
 0x23e   : > { %856 = vmatpush1.bf16.msra.mxu0 %v804_v40 }
 0x23f   : > { %v766_v41 = vpop.permute.xlu1 %765  ;;  %v764_v42 = vpop.permute.xlu0 %763 }
 0x240   : > { %v769_v22 = vsel %vm767_vm14, %v764_v42, %v766_v41  ;;  %v768_v43 = vsel %vm767_vm14, %v762_v34, %v764_v42 }
 0x241   : > { %2737 = vmatprep.subr.msk.bf16.mxu0 %vm4794_vm13, %v769_v22  ;;  %v850_v30 = vsel %vm4794_vm13, %v768_v43, 0 }
 0x242   : > { %858 = vmatpush1.bf16.msra.mxu0 %v850_v30 }
 0x245   : > { %2738 = vmatmul.mubr.msk.bf16.vlgmr.msra.gmra.mrb[0].mxu0 %vm4795_vm7, %v2932_v44 }
 0x246   : > { %897 = vmatprep.mubr.bf16.mxu0 %v4797_v33 }
 0x24d   : > { %2739 = vmatmul.mubr.msk.bf16.gmra.mrb[4].mxu0 %vm4795_vm7, %v2933_v45 }
 0x24e   : > { %1691 = vmatprep.mubr.bf16.mxu0 %v4797_v33 }
 0x250   : > { %v816_v46 = vpop.permute.xlu0 %815  ;;  %v821_v50 = vpop.permute.xlu1 %820 }
 0x254   : > { %v826_v60 = vpop.permute.xlu1 %825  ;;  %v831_v0 = vpop.permute.xlu0 %830 }
 0x318   : > { %v889_v47 = vpop.f32.mrb[0].mxu0 }
 0x319   : > { %v890_v48 = vadd.f32 %v889_v47, %v816_v46  ;;  %v891_v49 = vpop.f32.mrb[1].mxu0 }
 0x31a   : > { %v892_v51 = vadd.f32 %v891_v49, %v816_v46  ;;  %v893_v52 = vpop.f32.mrb[2].mxu0 }
 0x31b   : > { %v908_v53 = vmax.f32 %v890_v48, 0.0  ;;  %v894_v54 = vadd.f32 %v893_v52, %v821_v50  ;;  %v895_v55 = vpop.f32.mrb[3].mxu0 }
 0x31c   : > { %v909_v56 = vmax.f32 %v892_v51, 0.0  ;;  %v896_v57 = vadd.f32 %v895_v55, %v821_v50 }
 0x31d   : > { %924 = vrot.lane.b32.xlu1 %v908_v53, %s3311_s6  ;;  %v910_v58 = vmax.f32 %v894_v54, 0.0 }
 0x31e   : > { %926 = vrot.lane.b32.xlu0 %v909_v56, %s3311_s6  ;;  %v911_v59 = vmax.f32 %v896_v57, 0.0 }
 0x320   : > { %v899_v61 = vpop.f32.mrb[4].mxu0 }
 0x321   : > { %v900_v62 = vadd.f32 %v899_v61, %v826_v60  ;;  %v901_v63 = vpop.f32.mrb[5].mxu0  ;;  %928 = vrot.lane.b32.xlu1 %v910_v58, %s3311_s6 }
 0x322   : > { %v902_v2 = vadd.f32 %v901_v63, %v826_v60  ;;  %v903_v13 = vpop.f32.mrb[6].mxu0  ;;  %930 = vrot.lane.b32.xlu0 %v911_v59, %s3311_s6 }
 0x323   : > { %v912_v23 = vmax.f32 %v900_v62, 0.0  ;;  %v904_v6 = vadd.f32 %v903_v13, %v831_v0  ;;  %v905_v7 = vpop.f32.mrb[7].mxu0 }
 0x324   : > { %v913_v14 = vmax.f32 %v902_v2, 0.0  ;;  %v906_v24 = vadd.f32 %v905_v7, %v831_v0 }
 0x325   : > { %932 = vrot.lane.b32.xlu1 %v912_v23, %s3311_s6  ;;  %v914_v10 = vmax.f32 %v904_v6, 0.0 }
 0x326   : > { %934 = vrot.lane.b32.xlu0 %v913_v14, %s3311_s6  ;;  %v915_v11 = vmax.f32 %v906_v24, 0.0 }
 0x329   : > { %936 = vrot.lane.b32.xlu1 %v914_v10, %s3311_s6 }
 0x32a   : > { %938 = vrot.lane.b32.xlu0 %v915_v11, %s3311_s6 }
 0x32d   : > { %1029 = vrot.lane.b32.xlu1 %v1024_v12, %s3310_s30 }
 0x32e   : > { %1031 = vrot.lane.b32.xlu0 %v1028_v15, %s3310_s30 }
 0x331   : > { %1055 = vrot.lane.b32.xlu1 %v3872_v17, %s3312_s19 }
 0x332   : > { %1057 = vrot.lane.b32.xlu0 %v994_v18, %s3312_s19 }
 0x335   : > { %1081 = vrot.lane.b32.xlu1 %v1024_v12, %s3313_s23 }
 0x336   : > { %1083 = vrot.lane.b32.xlu0 %v1028_v15, %s3313_s23 }
 0x339   : > { %1107 = vrot.lane.b32.xlu1 %v3872_v17, %s3314_s8 }
 0x33a   : > { %1109 = vrot.lane.b32.xlu0 %v994_v18, %s3314_s8 }
 0x33d   : > { %1133 = vrot.lane.b32.xlu1 %v1024_v12, %s3315_s13 }
 0x33e   : > { %1135 = vrot.lane.b32.xlu0 %v1028_v15, %s3315_s13 }
 0x38f   : > { %v925_v19 = vpop.permute.xlu1 %924 }
 0x390   : > { %957 = vst.msk [vmem:[#allocation2] sm:$0xff] %vm956_vm6, %v925_v19  ;;  %v927_v20 = vpop.permute.xlu0 %926 }
 0x391   : > { %959 = vst.msk [vmem:[#allocation2 + $0x10] sm:$0xff] %vm513_vm0, %v927_v20  ;;  %v3889_v21 = vsel %vm513_vm0, %v925_v19, %v927_v20 }
 0x392   : > { %v998_v28 = vmul.f32 %v994_v18, %v3889_v21 }
 0x393   : > { %v929_v25 = vpop.permute.xlu1 %928 }
 0x394   : > { %960 = vst.msk [vmem:[#allocation2 + $0x18] sm:$0xff] %vm956_vm6, %v929_v25  ;;  %v931_v26 = vpop.permute.xlu0 %930 }
 0x395   : > { %v3893_v27 = vsel %vm513_vm0, %v929_v25, %v931_v26  ;;  %962 = vst.msk [vmem:[#allocation2 + $0x28] sm:$0xff] %vm513_vm0, %v931_v26 }
 0x396   : > { %v1000_v29 = vmul.f32 %v994_v18, %v3893_v27  ;;  %v3948_v55 = vpack.c.bf16 %v3893_v27, %v3889_v21 }
 0x397   : > { %v933_v31 = vpop.permute.xlu1 %932  ;;  %v3900_v35 = vld [vmem:[#allocation2] sm:$0xff] }
 0x398   : > { %963 = vst.msk [vmem:[#allocation2 + $0x30] sm:$0xff] %vm956_vm6, %v933_v31  ;;  %v935_v32 = vpop.permute.xlu0 %934  ;;  %v1006_v34 = vpack.c.bf16 %v1000_v29, %v998_v28  ;;  %v3912_v41 = vld [vmem:[#allocation2 + $0x10] sm:$0xff]  ;;  %v997_v22 = vmul.f32 %v3872_v17, %v3900_v35 }
 0x399   : > { %965 = vst.msk [vmem:[#allocation2 + $0x40] sm:$0xff] %vm513_vm0, %v935_v32  ;;  %v3903_v36 = vsel %vm513_vm0, %v933_v31, %v935_v32 }
 0x39a   : > { %1415 = vmatprep.subr.bf16.mxu1 %v1006_v34  ;;  %v1002_v46 = vmul.f32 %v994_v18, %v3903_v36 }
 0x39b   : > { %v937_v37 = vpop.permute.xlu1 %936  ;;  %v3905_v38 = vld [vmem:[#allocation2 + $0x18] sm:$0xff] }
 0x39c   : > { %966 = vst.msk [vmem:[#allocation2 + $0x48] sm:$0xff] %vm956_vm6, %v937_v37  ;;  %v939_v39 = vpop.permute.xlu0 %938  ;;  %v3910_v40 = vpack.c.bf16 %v3905_v38, %v3900_v35  ;;  %v3914_v42 = vld [vmem:[#allocation2 + $0x28] sm:$0xff]  ;;  %v999_v43 = vmul.f32 %v3872_v17, %v3905_v38 }
 0x39d   : > { %v3921_v30 = vsel %vm513_vm0, %v937_v37, %v939_v39  ;;  %968 = vst.msk [vmem:[#allocation2 + $0x58] sm:$0xff] %vm513_vm0, %v939_v39  ;;  %v3926_v44 = vpack.c.bf16 %v3914_v42, %v3912_v41 }
 0x39e   : > { %1165 = vrot.lane.b32.xlu1 %v3910_v40, %s3316_s7  ;;  %v1005_v45 = vpack.c.bf16 %v999_v43, %v997_v22  ;;  %v1004_v47 = vmul.f32 %v994_v18, %v3921_v30  ;;  %v4010_v31 = vpack.c.bf16 %v3921_v30, %v3903_v36 }
 0x39f   : > { %1169 = vrot.lane.b32.xlu0 %v3926_v44, %s3316_s7  ;;  %v1030_v48 = vpop.permute.xlu1 %1029  ;;  %v3940_v53 = vld [vmem:[#allocation2 + $0x30] sm:$0xff] }
 0x3a0   : > { %v3934_v49 = vpop.permute.xlu0 %1031  ;;  %1416 = vmatpush1.bf16.msra.mxu1 %v1005_v45  ;;  %v1008_v50 = vpack.c.bf16 %v1004_v47, %v1002_v46  ;;  %v1037_v58 = vmul.f32 %v1030_v48, %v3900_v35  ;;  %v1040_v59 = vmul.f32 %v1030_v48, %v3905_v38  ;;  %v1001_v60 = vmul.f32 %v3872_v17, %v3940_v53 }
 0x3a1   : > { %v1039_v51 = vmul.f32 %v3934_v49, %v3912_v41  ;;  %v1042_v52 = vmul.f32 %v3934_v49, %v3914_v42  ;;  %v1033_v12 = vsel %vm588_vm5, %v1030_v48, %v3934_v49  ;;  %v1043_v39 = vmul.f32 %v1030_v48, %v3940_v53 }
 0x3a2   : > { %1237 = vrot.lane.b32.xlu1 %v3910_v40, %s3317_s4  ;;  %1417 = vmatprep.subr.bf16.mxu1 %v1008_v50  ;;  %v1049_v6 = vpack.c.bf16 %v1040_v59, %v1037_v58  ;;  %v1041_v18 = vmul.f32 %v1033_v12, %v3893_v27 }
 0x3a3   : > { %1241 = vrot.lane.b32.xlu0 %v3926_v44, %s3317_s4  ;;  %v1056_v54 = vpop.permute.xlu1 %1055  ;;  %v3950_v56 = vld [vmem:[#allocation2 + $0x48] sm:$0xff]  ;;  %v1051_v62 = vpack.c.bf16 %v1042_v52, %v1039_v51 }
 0x3a4   : > { %v3952_v57 = vpop.permute.xlu0 %1057  ;;  %v1003_v61 = vmul.f32 %v3872_v17, %v3950_v56  ;;  %v1063_v7 = vmul.f32 %v1056_v54, %v3900_v35  ;;  %v1066_v14 = vmul.f32 %v1056_v54, %v3905_v38  ;;  %v3983_v15 = vpack.c.bf16 %v3950_v56, %v3940_v53 }
 0x3a5   : > { %v1065_v63 = vmul.f32 %v3952_v57, %v3912_v41  ;;  %v1068_v0 = vmul.f32 %v3952_v57, %v3914_v42  ;;  %v1038_v17 = vmul.f32 %v1033_v12, %v3889_v21  ;;  %v1059_v25 = vsel %vm4832_vm11, %v1056_v54, %v3952_v57  ;;  %vm4836_vm11 = vmmov %vm4834_vm3 }
 0x3a6   : > { %1167 = vrot.lane.b32.xlu1 %v3948_v55, %s3316_s7  ;;  %v1007_v2 = vpack.c.bf16 %v1003_v61, %v1001_v60  ;;  %v1075_v11 = vpack.c.bf16 %v1066_v14, %v1063_v7  ;;  %v1046_v32 = vmul.f32 %v1030_v48, %v3950_v56  ;;  %v1064_v22 = vmul.f32 %v1059_v25, %v3889_v21 }
 0x3a7   : > { %1195 = vrot.lane.b32.xlu0 %v1051_v62, %s3319_s22  ;;  %v3967_v13 = vpop.permute.xlu1 %1081  ;;  %v1077_v24 = vpack.c.bf16 %v1068_v0, %v1065_v63  ;;  %v1050_v37 = vpack.c.bf16 %v1041_v18, %v1038_v17  ;;  %v1067_v45 = vmul.f32 %v1059_v25, %v3893_v27  ;;  %v1069_v52 = vmul.f32 %v1056_v54, %v3940_v53  ;;  %v4048_v0 = vld [vmem:[#allocation2 + $0x58] sm:$0xff] }
 0x3a8   : > { %v3969_v23 = vpop.permute.xlu0 %1083  ;;  %1418 = vmatpush1.bf16.msra.mxu1 %v1007_v2  ;;  %v1052_v51 = vpack.c.bf16 %v1046_v32, %v1043_v39  ;;  %v1072_v48 = vmul.f32 %v1056_v54, %v3950_v56  ;;  %v4054_v2 = vld [vmem:[#allocation2 + $0x40] sm:$0xff]  ;;  %v1044_v7 = vmul.f32 %v1033_v12, %v3903_v36  ;;  %v1047_v14 = vmul.f32 %v1033_v12, %v3921_v30 }
 0x3a9   : > { %v1076_v62 = vpack.c.bf16 %v1067_v45, %v1064_v22  ;;  %v1045_v17 = vmul.f32 %v3934_v49, %v4054_v2  ;;  %v1071_v12 = vmul.f32 %v3952_v57, %v4054_v2  ;;  %v1073_v32 = vmul.f32 %v1059_v25, %v3921_v30 }
 0x3aa   : > { %1191 = vrot.lane.b32.xlu1 %v1049_v6, %s3319_s22  ;;  %v1078_v63 = vpack.c.bf16 %v1072_v48, %v1069_v52  ;;  %v4058_v6 = vpack.c.bf16 %v4048_v0, %v4054_v2  ;;  %v1089_v52 = vmul.f32 %v3967_v13, %v3900_v35 }
 0x3ab   : > { %1221 = vrot.lane.b32.xlu0 %v1077_v24, %s3320_s24  ;;  %v3975_v8 = vpop.permute.xlu1 %1107  ;;  %v1048_v24 = vmul.f32 %v3934_v49, %v4048_v0 }
 0x3ac   : > { %v3977_v10 = vpop.permute.xlu0 %1109 }
 0x3ad   : > { %v1111_v19 = vsel %vm633_vm8, %v3975_v8, %v3977_v10  ;;  %v1054_v18 = vpack.c.bf16 %v1048_v24, %v1045_v17  ;;  %v1120_v17 = vmul.f32 %v3977_v10, %v3914_v42 }
 0x3ae   : > { %1217 = vrot.lane.b32.xlu1 %v1075_v11, %s3320_s24  ;;  %v4000_v26 = vmul.f32 %v1111_v19, %v3889_v21  ;;  %v4003_v28 = vmul.f32 %v1111_v19, %v3893_v27  ;;  %v4022_v43 = vmul.f32 %v1111_v19, %v3903_v36  ;;  %v4026_v46 = vmul.f32 %v1111_v19, %v3921_v30 }
 0x3af   : > { %1171 = vrot.lane.b32.xlu0 %v3983_v15, %s3316_s7  ;;  %v3988_v16 = vpop.permute.xlu1 %1133  ;;  %v1053_v11 = vpack.c.bf16 %v1047_v14, %v1044_v7  ;;  %v1074_v19 = vmul.f32 %v3952_v57, %v4048_v0  ;;  %v1091_v57 = vmul.f32 %v3969_v23, %v3912_v41  ;;  %v1097_v7 = vmul.f32 %v3969_v23, %v4054_v2 }
 0x3b0   : > { %v3995_v20 = vpop.permute.xlu0 %1135  ;;  %v1128_v34 = vpack.c.bf16 %v4003_v28, %v4000_v26  ;;  %v1131_v58 = vpack.c.bf16 %v4026_v46, %v4022_v43  ;;  %v1100_v14 = vmul.f32 %v3969_v23, %v4048_v0  ;;  %v2936_v26 = vld [vmem:[#allocation13 + $0x4] ss:$12 sps:$4 sm:$0xff]   ;;  %v1356_v43 = vld [vmem:[#allocation15 + $0x8] sm:$0xff]  ;;  %v1358_v46 = vld [vmem:[#allocation15 + $0x18] sm:$0xff] }
 0x3b1   : > { %v1137_v29 = vsel %vm4833_vm15, %v3988_v16, %v3995_v20  ;;  %v1080_v49 = vpack.c.bf16 %v1074_v19, %v1071_v12  ;;  %1447 = vmatprep.mubr.bf16.mxu1 %v2936_v26  ;;  %v1146_v28 = vmul.f32 %v3995_v20, %v3914_v42  ;;  %vm4837_vm15 = vmmov %vm4834_vm3 }
 0x3b2   : > { %1239 = vrot.lane.b32.xlu1 %v3948_v55, %s3317_s4  ;;  %v4029_v47 = vmul.f32 %v1137_v29, %v3889_v21  ;;  %v4032_v50 = vmul.f32 %v1137_v29, %v3893_v27  ;;  %v4042_v60 = vmul.f32 %v1137_v29, %v3903_v36  ;;  %v4046_v61 = vmul.f32 %v1137_v29, %v3921_v30 }
 0x3b3   : > { %1173 = vrot.lane.b32.xlu0 %v4010_v31, %s3316_s7  ;;  %v1070_v29 = vmul.f32 %v1059_v25, %v3903_v36  ;;  %v1094_v25 = vmul.f32 %v3969_v23, %v3914_v42  ;;  %v1149_v42 = vmul.f32 %v3995_v20, %v4054_v2 }
 0x3b4   : > { %v1154_v59 = vpack.c.bf16 %v4032_v50, %v4029_v47  ;;  %v1157_v54 = vpack.c.bf16 %v4046_v61, %v4042_v60 }
 0x3b5   : > { %v1079_v45 = vpack.c.bf16 %v1073_v32, %v1070_v29  ;;  %v1103_v48 = vpack.c.bf16 %v1094_v25, %v1091_v57  ;;  %v1118_v29 = vmul.f32 %v3975_v8, %v3905_v38 }
 0x3b6   : > { %1193 = vrot.lane.b32.xlu1 %v1050_v37, %s3319_s22  ;;  %v1085_v37 = vsel %vm4795_vm7, %v3967_v13, %v3969_v23  ;;  %v1115_v23 = vmul.f32 %v3975_v8, %v3900_v35 }
 0x3b7   : > { %1197 = vrot.lane.b32.xlu0 %v1052_v51, %s3319_s22  ;;  %v1090_v39 = vmul.f32 %v1085_v37, %v3889_v21  ;;  %v1093_v22 = vmul.f32 %v1085_v37, %v3893_v27  ;;  %v1092_v21 = vmul.f32 %v3967_v13, %v3905_v38  ;;  %v1095_v27 = vmul.f32 %v3967_v13, %v3940_v53 }
 0x3b8   : > { %v1096_v12 = vmul.f32 %v1085_v37, %v3903_v36  ;;  %v1099_v19 = vmul.f32 %v1085_v37, %v3921_v30  ;;  %v1127_v36 = vpack.c.bf16 %v1118_v29, %v1115_v23  ;;  %v1123_v30 = vmul.f32 %v3977_v10, %v4054_v2 }
 0x3b9   : > { %v1102_v51 = vpack.c.bf16 %v1093_v22, %v1090_v39  ;;  %v1124_v39 = vmul.f32 %v3975_v8, %v3950_v56  ;;  %v1126_v37 = vmul.f32 %v3977_v10, %v4048_v0 }
 0x3ba   : > { %1219 = vrot.lane.b32.xlu1 %v1076_v62, %s3320_s24  ;;  %v1098_v62 = vmul.f32 %v3967_v13, %v3950_v56  ;;  %v1106_v13 = vpack.c.bf16 %v1100_v14, %v1097_v7  ;;  %v1105_v32 = vpack.c.bf16 %v1099_v19, %v1096_v12 }
 0x3bb   : > { %1223 = vrot.lane.b32.xlu0 %v1078_v63, %s3320_s24  ;;  %v1101_v63 = vpack.c.bf16 %v1092_v21, %v1089_v52 }
 0x3bc   : > { %v1104_v24 = vpack.c.bf16 %v1098_v62, %v1095_v27 }
 0x3be   : > { %1175 = vrot.lane.b32.xlu1 %v4058_v6, %s3316_s7 }
 0x3bf   : > { %1245 = vrot.lane.b32.xlu0 %v4010_v31, %s3317_s4 }
 0x3c2   : > { %1247 = vrot.lane.b32.xlu1 %v4058_v6, %s3317_s4 }
 0x3c3   : > { %1199 = vrot.lane.b32.xlu0 %v1053_v11, %s3319_s22  ;;  %v1117_v11 = vmul.f32 %v3977_v10, %v3912_v41  ;;  %v1143_v10 = vmul.f32 %v3995_v20, %v3912_v41 }
 0x3c6   : > { %1201 = vrot.lane.b32.xlu1 %v1054_v18, %s3319_s22  ;;  %v1129_v18 = vpack.c.bf16 %v1120_v17, %v1117_v11 }
 0x3c7   : > { %1243 = vrot.lane.b32.xlu0 %v3983_v15, %s3317_s4 }
 0x3ca   : > { %1227 = vrot.lane.b32.xlu1 %v1080_v49, %s3320_s24  ;;  %v1121_v49 = vmul.f32 %v3975_v8, %v3940_v53  ;;  %v1132_v8 = vpack.c.bf16 %v1126_v37, %v1123_v30 }
 0x3cb   : > { %1225 = vrot.lane.b32.xlu0 %v1079_v45, %s3320_s24 }
 0x3cc   : > { %v1130_v22 = vpack.c.bf16 %v1124_v39, %v1121_v49 }
 0x3ce   : > { %1265 = vrot.lane.b32.xlu1 %v1102_v51, %s3321_s27 }
 0x3cf   : > { %1267 = vrot.lane.b32.xlu0 %v1103_v48, %s3321_s27 }
 0x3d2   : > { %1263 = vrot.lane.b32.xlu1 %v1101_v63, %s3321_s27 }
 0x3d3   : > { %1269 = vrot.lane.b32.xlu0 %v1104_v24, %s3321_s27 }
 0x3d6   : > { %1273 = vrot.lane.b32.xlu1 %v1106_v13, %s3321_s27 }
 0x3d7   : > { %1293 = vrot.lane.b32.xlu0 %v1129_v18, %s3322_s3 }
 0x3da   : > { %1291 = vrot.lane.b32.xlu1 %v1128_v34, %s3322_s3 }
 0x3db   : > { %1271 = vrot.lane.b32.xlu0 %v1105_v32, %s3321_s27 }
 0x3de   : > { %1289 = vrot.lane.b32.xlu1 %v1127_v36, %s3322_s3 }
 0x3df   : > { %1295 = vrot.lane.b32.xlu0 %v1130_v22, %s3322_s3 }
 0x3e2   : > { %1299 = vrot.lane.b32.xlu1 %v1132_v8, %s3322_s3 }
 0x3e3   : > { %1297 = vrot.lane.b32.xlu0 %v1131_v58, %s3322_s3 }
 0x3e6   : > { %1311 = vrot.lane.b32.xlu1 %v3948_v55, %s3318_s11  ;;  %v1155_v55 = vpack.c.bf16 %v1146_v28, %v1143_v10 }
 0x3e7   : > { %1313 = vrot.lane.b32.xlu0 %v3926_v44, %s3318_s11  ;;  %v1141_v44 = vmul.f32 %v3988_v16, %v3900_v35  ;;  %v1147_v35 = vmul.f32 %v3988_v16, %v3940_v53  ;;  %v1357_v53 = vld [vmem:[#allocation15 + $0x10] sm:$0xff] }
 0x3ea   : > { %1309 = vrot.lane.b32.xlu1 %v3910_v40, %s3318_s11  ;;  %v1144_v40 = vmul.f32 %v3988_v16, %v3905_v38  ;;  %v1150_v38 = vmul.f32 %v3988_v16, %v3950_v56 }
 0x3eb   : > { %1317 = vrot.lane.b32.xlu0 %v4010_v31, %s3318_s11 }
 0x3ec   : > { %v1153_v41 = vpack.c.bf16 %v1144_v40, %v1141_v44  ;;  %v1156_v34 = vpack.c.bf16 %v1150_v38, %v1147_v35 }
 0x3ee   : > { %1319 = vrot.lane.b32.xlu1 %v4058_v6, %s3318_s11 }
 0x3ef   : > { %1315 = vrot.lane.b32.xlu0 %v3983_v15, %s3318_s11  ;;  %v1152_v15 = vmul.f32 %v3995_v20, %v4048_v0  ;;  %v1355_v20 = vld [vmem:[#allocation15] sm:$0xff] }
 0x3f1   : > { %v1158_v31 = vpack.c.bf16 %v1152_v15, %v1149_v42 }
 0x3f2   : > { %1337 = vrot.lane.b32.xlu1 %v1154_v59, %s3324_s21 }
 0x3f3   : > { %1339 = vrot.lane.b32.xlu0 %v1155_v55, %s3324_s21 }
 0x3f6   : > { %1335 = vrot.lane.b32.xlu1 %v1153_v41, %s3324_s21 }
 0x3f7   : > { %1343 = vrot.lane.b32.xlu0 %v1157_v54, %s3324_s21 }
 0x3fa   : > { %1345 = vrot.lane.b32.xlu1 %v1158_v31, %s3324_s21 }
 0x3fb   : > { %1341 = vrot.lane.b32.xlu0 %v1156_v34, %s3324_s21 }
 0x3fe   : > { %1361 = vperm.xlu1 %2931, %v1355_v20  }
 0x3ff   : > { %1366 = vperm.xlu0 %2930, %v1356_v43  }
 0x402   : > { %1371 = vperm.xlu1 %2931, %v1357_v53  }
 0x403   : > { %1376 = vperm.xlu0 %2930, %v1358_v46  }
 0x410   : > { %v1166_v56 = vpop.permute.xlu1 %1165 }
 0x411   : > { %v1170_v16 = vpop.permute.xlu0 %1169 }
 0x414   : > { %v1238_v47 = vpop.permute.xlu1 %1237 }
 0x415   : > { %v1242_v50 = vpop.permute.xlu0 %1241 }
 0x418   : > { %v1168_v58 = vpop.permute.xlu1 %1167 }
 0x419   : > { %v1196_v59 = vpop.permute.xlu0 %1195  ;;  %v1178_v60 = vsel %vm4834_vm3, %v1168_v58, %v1170_v16  ;;  %v1177_v61 = vsel %vm4835_vm4, %v1166_v56, %v1168_v58  ;;  %vm4838_vm3 = vcmask 1031168  }
 0x41a   : > { %1419 = vmatprep.subr.bf16.mxu1 %v1178_v60  ;;  %vm4839_vm4 = vmmov %vm4838_vm3 }
 0x41b   : > { %1420 = vmatpush1.bf16.msra.mxu1 %v1177_v61  ;;  %vm4840_vm13 = vmmov %vm4838_vm3 }
 0x41c   : > { %v1192_v0 = vpop.permute.xlu1 %1191  ;;  %vm4841_vm7 = vmmov %vm4838_vm3 }
 0x41d   : > { %v1222_v54 = vpop.permute.xlu0 %1221 }
 0x420   : > { %v1218_v2 = vpop.permute.xlu1 %1217 }
 0x421   : > { %v1172_v6 = vpop.permute.xlu0 %1171 }
 0x424   : > { %v1240_v45 = vpop.permute.xlu1 %1239 }
 0x425   : > { %v1174_v57 = vpop.permute.xlu0 %1173  ;;  %v1250_v37 = vsel %vm713_vm2, %v1240_v45, %v1242_v50  ;;  %v1249_v26 = vsel %vm713_vm2, %v1238_v47, %v1240_v45  ;;  %v2934_v45 = vld [vmem:[#allocation13] ss:$12 sps:$4 sm:$0xff]  }
 0x426   : > { %v1179_v63 = vsel %vm4837_vm15, %v1172_v6, %v1174_v57 }
 0x428   : > { %v1194_v25 = vpop.permute.xlu1 %1193 }
 0x429   : > { %v1198_v51 = vpop.permute.xlu0 %1197  ;;  %v1204_v7 = vsel %vm4838_vm3, %v1194_v25, %v1196_v59  ;;  %v1203_v11 = vsel %vm4839_vm4, %v1192_v0, %v1194_v25  ;;  %vm4860_vm4 = vmmov %vm4838_vm3 }
 0x42c   : > { %v1220_v52 = vpop.permute.xlu1 %1219 }
 0x42d   : > { %v1224_v21 = vpop.permute.xlu0 %1223  ;;  %v1230_v19 = vsel %vm701_vm12, %v1220_v52, %v1222_v54  ;;  %v1229_v32 = vsel %vm701_vm12, %v1218_v2, %v1220_v52 }
 0x430   : > { %v1176_v48 = vpop.permute.xlu1 %1175 }
 0x431   : > { %v1246_v27 = vpop.permute.xlu0 %1245  ;;  %v1180_v62 = vsel %vm4836_vm11, %v1174_v57, %v1176_v48  ;;  %v2937_v57 = vld [vmem:[#allocation13 + $0x1c] ss:$12 sps:$4 sm:$0xff]  }
 0x432   : > { %1421 = vmatprep.subr.bf16.mxu1 %v1180_v62  ;;  %v2939_v62 = vld [vmem:[#allocation13 + $0x18] ss:$12 sps:$4 sm:$0xff]  }
 0x433   : > { %1422 = vmatpush1.bf16.msra.mxu1 %v1179_v63 }
 0x434   : > { %1423 = vmatprep.subr.bf16.mxu1 %v1204_v7  ;;  %v1248_v14 = vpop.permute.xlu1 %1247 }
 0x435   : > { %v1200_v24 = vpop.permute.xlu0 %1199  ;;  %v1252_v10 = vsel %vm713_vm2, %v1246_v27, %v1248_v14 }
 0x436   : > { %v1205_v12 = vsel %vm4841_vm7, %v1198_v51, %v1200_v24  ;;  %vm4844_vm7 = vcmask 146432  }
 0x437   : > { %1424 = vmatpush1.bf16.msra.mxu1 %v1203_v11  ;;  %v2940_v11 = vld [vmem:[#allocation13 + $0x8] ss:$12 sps:$4 sm:$0xff]  }
 0x438   : > { %v1202_v17 = vpop.permute.xlu1 %1201 }
 0x439   : > { %v1244_v13 = vpop.permute.xlu0 %1243  ;;  %v1206_v18 = vsel %vm4840_vm13, %v1200_v24, %v1202_v17  ;;  %v2941_v17 = vld [vmem:[#allocation13 + $0x20] ss:$12 sps:$4 sm:$0xff]   ;;  %vm4852_vm13 = vmmov %vm4836_vm11 }
 0x43a   : > { %1425 = vmatprep.subr.bf16.mxu1 %v1206_v18  ;;  %v1251_v40 = vsel %vm713_vm2, %v1244_v13, %v1246_v27 }
 0x43b   : > { %1426 = vmatpush1.bf16.msra.mxu1 %v1205_v12 }
 0x43c   : > { %1427 = vmatprep.subr.bf16.mxu1 %v1230_v19  ;;  %v1228_v23 = vpop.permute.xlu1 %1227 }
 0x43d   : > { %v1226_v29 = vpop.permute.xlu0 %1225 }
 0x43e   : > { %v1232_v49 = vsel %vm701_vm12, %v1226_v29, %v1228_v23  ;;  %v1231_v30 = vsel %vm701_vm12, %v1224_v21, %v1226_v29 }
 0x43f   : > { %1428 = vmatpush1.bf16.msra.mxu1 %v1229_v32 }
 0x440   : > { %1429 = vmatprep.subr.bf16.mxu1 %v1232_v49  ;;  %v1266_v39 = vpop.permute.xlu1 %1265 }
 0x441   : > { %v1268_v36 = vpop.permute.xlu0 %1267 }
 0x442   : > { %v1276_v55 = vsel %vm728_vm1, %v1266_v39, %v1268_v36 }
 0x443   : > { %1430 = vmatpush1.bf16.msra.mxu1 %v1231_v30 }
 0x444   : > { %1431 = vmatprep.subr.bf16.mxu1 %v1250_v37  ;;  %v1264_v22 = vpop.permute.xlu1 %1263 }
 0x445   : > { %v1270_v8 = vpop.permute.xlu0 %1269  ;;  %v1275_v15 = vsel %vm728_vm1, %v1264_v22, %v1266_v39 }
 0x447   : > { %1432 = vmatpush1.bf16.msra.mxu1 %v1249_v26 }
 0x448   : > { %1433 = vmatprep.subr.bf16.mxu1 %v1252_v10  ;;  %v1274_v28 = vpop.permute.xlu1 %1273 }
 0x449   : > { %v1294_v44 = vpop.permute.xlu0 %1293 }
 0x44b   : > { %1434 = vmatpush1.bf16.msra.mxu1 %v1251_v40 }
 0x44c   : > { %1435 = vmatprep.subr.bf16.mxu1 %v1276_v55  ;;  %v1292_v41 = vpop.permute.xlu1 %1291 }
 0x44d   : > { %v1272_v42 = vpop.permute.xlu0 %1271  ;;  %v1302_v20 = vsel %vm743_vm10, %v1292_v41, %v1294_v44 }
 0x44e   : > { %v1278_v35 = vsel %vm728_vm1, %v1272_v42, %v1274_v28  ;;  %v1277_v34 = vsel %vm728_vm1, %v1270_v8, %v1272_v42 }
 0x44f   : > { %1436 = vmatpush1.bf16.msra.mxu1 %v1275_v15 }
 0x450   : > { %1437 = vmatprep.subr.bf16.mxu1 %v1278_v35  ;;  %v1290_v38 = vpop.permute.xlu1 %1289 }
 0x451   : > { %v1296_v31 = vpop.permute.xlu0 %1295  ;;  %v1301_v46 = vsel %vm743_vm10, %v1290_v38, %v1292_v41 }
 0x453   : > { %1438 = vmatpush1.bf16.msra.mxu1 %v1277_v34  ;;  %v1745_v34 = vld [vmem:[#allocation9 + $0x1] ss:$2 sm:$0x3] }
 0x454   : > { %1439 = vmatprep.subr.bf16.mxu1 %v1302_v20  ;;  %v1300_v43 = vpop.permute.xlu1 %1299 }
 0x455   : > { %v1298_v53 = vpop.permute.xlu0 %1297 }
 0x456   : > { %v1304_v56 = vsel %vm743_vm10, %v1298_v53, %v1300_v43  ;;  %v1303_v50 = vsel %vm743_vm10, %v1296_v31, %v1298_v53  ;;  %v1750_v53 = vrot.slane %v1745_v34, %v3716_v4 }
 0x457   : > { %1440 = vmatpush1.bf16.msra.mxu1 %v1301_v46  ;;  %v1754_v46 = vrot.slane %v1745_v34, %v3719_v5 }
 0x458   : > { %1441 = vmatprep.subr.bf16.mxu1 %v1304_v56  ;;  %v1312_v16 = vpop.permute.xlu1 %1311  ;;  %v1590_v56 = vld [vmem:[#allocation9] ss:$2 sm:$0x3] }
 0x459   : > { %v1314_v47 = vpop.permute.xlu0 %1313 }
 0x45a   : > { %v1322_v58 = vsel %vm755_vm9, %v1312_v16, %v1314_v47  ;;  %v1599_v47 = vrot.slane %v1590_v56, %v3719_v5 }
 0x45b   : > { %1442 = vmatpush1.bf16.msra.mxu1 %v1303_v50 }
 0x45c   : > { %1443 = vmatprep.subr.bf16.mxu1 %v1322_v58  ;;  %v1310_v59 = vpop.permute.xlu1 %1309 }
 0x45d   : > { %v1318_v60 = vpop.permute.xlu0 %1317  ;;  %v1321_v61 = vsel %vm755_vm9, %v1310_v59, %v1312_v16  ;;  %v4229_v16 = vrot.slane %v1590_v56, %v3716_v4 }
 0x45f   : > { %1444 = vmatpush1.bf16.msra.mxu1 %v1321_v61 }
 0x460   : > { %v1320_v0 = vpop.permute.xlu1 %1319 }
 0x461   : > { %v1316_v54 = vpop.permute.xlu0 %1315  ;;  %v1324_v2 = vsel %vm755_vm9, %v1318_v60, %v1320_v0 }
 0x462   : > { %1445 = vmatprep.subr.bf16.mxu1 %v1324_v2  ;;  %v1323_v6 = vsel %vm755_vm9, %v1316_v54, %v1318_v60 }
 0x463   : > { %1446 = vmatpush1.bf16.msra.mxu1 %v1323_v6 }
 0x464   : > { %v1338_v25 = vpop.permute.xlu1 %1337 }
 0x465   : > { %v1340_v51 = vpop.permute.xlu0 %1339 }
 0x466   : > { %1448 = vmatmul.mubr.bf16.vlgmr.msra.gmra.mrb[0].mxu1 %v2934_v45  ;;  %v1348_v52 = vsel %vm767_vm14, %v1338_v25, %v1340_v51 }
 0x467   : > { %1468 = vmatprep.subr.bf16.mxu1 %v1348_v52  ;;  %1457 = vmatprep.mubr.bf16.mxu1 %v2937_v57 }
 0x468   : > { %v1336_v21 = vpop.permute.xlu1 %1335 }
 0x469   : > { %v1347_v48 = vsel %vm767_vm14, %v1336_v21, %v1338_v25  ;;  %v1344_v27 = vpop.permute.xlu0 %1343 }
 0x46a   : > { %1469 = vmatpush1.bf16.msra.mxu1 %v1347_v48 }
 0x46c   : > { %v1346_v63 = vpop.permute.xlu1 %1345 }
 0x46d   : > { %v1342_v7 = vpop.permute.xlu0 %1341  ;;  %v1350_v14 = vsel %vm767_vm14, %v1344_v27, %v1346_v63 }
 0x46e   : > { %v1349_v24 = vsel %vm767_vm14, %v1342_v7, %v1344_v27  ;;  %1458 = vmatmul.mubr.bf16.gmra.mrb[4].mxu1 %v2939_v62  ;;  %1470 = vmatprep.subr.bf16.mxu1 %v1350_v14 }
 0x46f   : > { %1471 = vmatpush1.bf16.msra.mxu1 %v1349_v24  ;;  %1500 = vmatprep.mubr.bf16.mxu1 %v4797_v33 }
 0x476   : > { %2746 = vmatmul.mubr.msk.bf16.vlgmr.msra.gmra.mrb[0].mxu1 %vm633_vm8, %v2940_v11 }
 0x477   : > { %1510 = vmatprep.mubr.bf16.mxu1 %v4797_v33 }
 0x47d   : > { %v1362_v13 = vpop.permute.xlu1 %1361 }
 0x47e   : > { %2747 = vmatmul.mubr.msk.bf16.gmra.mrb[4].mxu1 %vm633_vm8, %v2941_v17  ;;  %v1367_v23 = vpop.permute.xlu0 %1366 }
 0x481   : > { %v1372_v8 = vpop.permute.xlu1 %1371 }
 0x482   : > { %v1377_v40 = vpop.permute.xlu0 %1376 }
 0x549   : > { %v1502_v18 = vpop.f32.mrb[0].mxu1 }
 0x54a   : > { %v2774_v12 = vadd.f32 %v1502_v18, %v1362_v13  ;;  %v1504_v19 = vpop.f32.mrb[1].mxu1 }
 0x54b   : > { %v2775_v29 = vadd.f32 %v1504_v19, %v1362_v13  ;;  %v1506_v32 = vpop.f32.mrb[2].mxu1 }
 0x54c   : > { %v1521_v49 = vmax.f32 %v2774_v12, 0.0  ;;  %v2776_v39 = vadd.f32 %v1506_v32, %v1367_v23  ;;  %v1508_v36 = vpop.f32.mrb[3].mxu1 }
 0x54d   : > { %v1522_v30 = vmax.f32 %v2775_v29, 0.0  ;;  %v2777_v37 = vadd.f32 %v1508_v36, %v1367_v23 }
 0x54e   : > { %1537 = vrot.lane.b32.xlu1 %v1521_v49, %s3311_s6  ;;  %v1523_v22 = vmax.f32 %v2776_v39, 0.0 }
 0x54f   : > { %1539 = vrot.lane.b32.xlu0 %v1522_v30, %s3311_s6  ;;  %v1524_v26 = vmax.f32 %v2777_v37, 0.0 }
 0x551   : > { %v1512_v10 = vpop.f32.mrb[4].mxu1 }
 0x552   : > { %v2778_v28 = vadd.f32 %v1512_v10, %v1372_v8  ;;  %v1514_v44 = vpop.f32.mrb[5].mxu1  ;;  %1541 = vrot.lane.b32.xlu1 %v1523_v22, %s3311_s6 }
 0x553   : > { %v2779_v55 = vadd.f32 %v1514_v44, %v1372_v8  ;;  %v1516_v41 = vpop.f32.mrb[6].mxu1  ;;  %1543 = vrot.lane.b32.xlu0 %v1524_v26, %s3311_s6 }
 0x554   : > { %v1525_v42 = vmax.f32 %v2778_v28, 0.0  ;;  %v2780_v15 = vadd.f32 %v1516_v41, %v1377_v40  ;;  %v1518_v35 = vpop.f32.mrb[7].mxu1 }
 0x555   : > { %v1526_v38 = vmax.f32 %v2779_v55, 0.0  ;;  %v2781_v31 = vadd.f32 %v1518_v35, %v1377_v40 }
 0x556   : > { %1545 = vrot.lane.b32.xlu1 %v1525_v42, %s3311_s6  ;;  %v1527_v20 = vmax.f32 %v2780_v15, 0.0 }
 0x557   : > { %1547 = vrot.lane.b32.xlu0 %v1526_v38, %s3311_s6  ;;  %v1528_v43 = vmax.f32 %v2781_v31, 0.0 }
 0x55a   : > { %1549 = vrot.lane.b32.xlu1 %v1527_v20, %s3311_s6 }
 0x55b   : > { %1551 = vrot.lane.b32.xlu0 %v1528_v43, %s3311_s6 }
 0x55e   : > { %1755 = vrot.lane.b32.xlu1 %v1750_v53, %s3310_s30 }
 0x55f   : > { %1757 = vrot.lane.b32.xlu0 %v1754_v46, %s3310_s30 }
 0x562   : > { %1857 = vrot.lane.b32.xlu1 %v4229_v16, %s3312_s19 }
 0x563   : > { %1859 = vrot.lane.b32.xlu0 %v1599_v47, %s3312_s19 }
 0x566   : > { %2030 = vrot.lane.b32.xlu1 %v1750_v53, %s3313_s23 }
 0x567   : > { %2032 = vrot.lane.b32.xlu0 %v1754_v46, %s3313_s23  ;;  %s4691_s23 = scalar_lea.hbm %s4782_s9, %s2772_s29 }
 0x56a   : > { %2133 = vrot.lane.b32.xlu1 %v4229_v16, %s3314_s8 }
 0x56b   : > { %2135 = vrot.lane.b32.xlu0 %v1599_v47, %s3314_s8  ;;  %s2494_s8 = scalar_lea.sflag [#allocation6], %s3675_s28 }
 0x56e   : > { %2308 = vrot.lane.b32.xlu1 %v1754_v46, %s3315_s13 }
 0x56f   : > { %2306 = vrot.lane.b32.xlu0 %v1750_v53, %s3315_s13 }
 0x5c0   : > { %v1538_v50 = vpop.permute.xlu1 %1537 }
 0x5c1   : > { %1569 = vst.msk [vmem:[#allocation2] sm:$0xff] %vm956_vm6, %v1538_v50  ;;  %v1540_v58 = vpop.permute.xlu0 %1539 }
 0x5c2   : > { %v4245_v59 = vsel %vm513_vm0, %v1538_v50, %v1540_v58  ;;  %1571 = vst.msk [vmem:[#allocation2 + $0x10] sm:$0xff] %vm513_vm0, %v1540_v58 }
 0x5c3   : > { %1570 = vst [vmem:[#allocation2 + $0x8] sm:$0xff] %v4245_v59  ;;  %v4255_v54 = vmul.f32 %v1599_v47, %v4245_v59 }
 0x5c4   : > { %v1542_v60 = vpop.permute.xlu1 %1541 }
 0x5c5   : > { %1572 = vst.msk [vmem:[#allocation2 + $0x18] sm:$0xff] %vm956_vm6, %v1542_v60  ;;  %v1544_v61 = vpop.permute.xlu0 %1543 }
 0x5c6   : > { %v4251_v0 = vsel %vm513_vm0, %v1542_v60, %v1544_v61  ;;  %1574 = vst.msk [vmem:[#allocation2 + $0x28] sm:$0xff] %vm513_vm0, %v1544_v61 }
 0x5c7   : > { %v4258_v2 = vmul.f32 %v1599_v47, %v4251_v0  ;;  %v4318_v32 = vpack.c.bf16 %v4251_v0, %v4245_v59 }
 0x5c8   : > { %v1546_v6 = vpop.permute.xlu1 %1545  ;;  %v4267_v51 = vld [vmem:[#allocation2] sm:$0xff] }
 0x5c9   : > { %1575 = vst.msk [vmem:[#allocation2 + $0x30] sm:$0xff] %vm956_vm6, %v1546_v6  ;;  %v1548_v45 = vpop.permute.xlu0 %1547  ;;  %v4276_v62 = vld [vmem:[#allocation2 + $0x10] sm:$0xff]  ;;  %v4282_v7 = vmul.f32 %v4229_v16, %v4267_v51 }
 0x5ca   : > { %v4264_v25 = vsel %vm513_vm0, %v1546_v6, %v1548_v45  ;;  %1577 = vst.msk [vmem:[#allocation2 + $0x40] sm:$0xff] %vm513_vm0, %v1548_v45 }
 0x5cb   : > { %v4301_v13 = vmul.f32 %v1599_v47, %v4264_v25 }
 0x5cc   : > { %v1550_v52 = vpop.permute.xlu1 %1549  ;;  %v4269_v21 = vld [vmem:[#allocation2 + $0x18] sm:$0xff] }
 0x5cd   : > { %1578 = vst.msk [vmem:[#allocation2 + $0x48] sm:$0xff] %vm956_vm6, %v1550_v52  ;;  %v1552_v48 = vpop.permute.xlu0 %1551  ;;  %v4274_v27 = vpack.c.bf16 %v4269_v21, %v4267_v51  ;;  %v4278_v63 = vld [vmem:[#allocation2 + $0x28] sm:$0xff]  ;;  %v4286_v14 = vmul.f32 %v4229_v16, %v4269_v21  ;;  %vm4853_vm6 = vmmov %vm4836_vm11 }
 0x5ce   : > { %v4289_v24 = vsel %vm513_vm0, %v1550_v52, %v1552_v48  ;;  %1580 = vst.msk [vmem:[#allocation2 + $0x58] sm:$0xff] %vm513_vm0, %v1552_v48  ;;  %v4294_v11 = vpack.c.bf16 %v4278_v63, %v4276_v62  ;;  %vm4842_vm0 = vcmask 130048   ;;  %vm4854_vm11 = vmmov %vm4853_vm6 }
 0x5cf   : > { %1636 = vrot.lane.b32.xlu1 %v4274_v27, %s3316_s7  ;;  %v4304_v18 = vmul.f32 %v1599_v47, %v4289_v24  ;;  %vm4855_vm15 = vmmov %vm4853_vm6 }
 0x5d0   : > { %1640 = vrot.lane.b32.xlu0 %v4294_v11, %s3316_s7  ;;  %v4308_v12 = vpop.permute.xlu1 %1755  ;;  %v4365_v43 = vld [vmem:[#allocation2 + $0x30] sm:$0xff] }
 0x5d1   : > { %v1763_v19 = vmul.f32 %v4308_v12, %v4267_v51  ;;  %v1766_v23 = vmul.f32 %v4308_v12, %v4269_v21  ;;  %v4314_v29 = vpop.permute.xlu0 %1757  ;;  %v1769_v1 = vmul.f32 %v4308_v12, %v4365_v43  ;;  %v4476_v57 = vmul.f32 %v4229_v16, %v4365_v43 }
 0x5d2   : > { %v1765_v39 = vmul.f32 %v4314_v29, %v4276_v62  ;;  %v1768_v36 = vmul.f32 %v4314_v29, %v4278_v63  ;;  %v4351_v42 = vsel %vm588_vm5, %v4308_v12, %v4314_v29  ;;  %vm4843_vm5 = vcmask 277504  }
 0x5d3   : > { %1638 = vrot.lane.b32.xlu1 %v4318_v32, %s3316_s7  ;;  %v1775_v26 = vpack.c.bf16 %v1766_v23, %v1763_v19  ;;  %v1764_v34 = vmul.f32 %v4351_v42, %v4245_v59  ;;  %v1767_v20 = vmul.f32 %v4351_v42, %v4251_v0 }
 0x5d4   : > { %1968 = vrot.lane.b32.xlu0 %v4294_v11, %s3317_s4  ;;  %v4330_v30 = vpop.permute.xlu1 %1857  ;;  %v1777_v10 = vpack.c.bf16 %v1768_v36, %v1765_v39  ;;  %v4354_v35 = vld [vmem:[#allocation2 + $0x48] sm:$0xff] }
 0x5d5   : > { %v1865_v37 = vmul.f32 %v4330_v30, %v4267_v51  ;;  %v1868_v22 = vmul.f32 %v4330_v30, %v4269_v21  ;;  %v4336_v8 = vpop.permute.xlu0 %1859  ;;  %v4376_v46 = vpack.c.bf16 %v4354_v35, %v4365_v43  ;;  %v1776_v58 = vpack.c.bf16 %v1767_v20, %v1764_v34 }
 0x5d6   : > { %v1867_v28 = vmul.f32 %v4336_v8, %v4276_v62  ;;  %v1870_v44 = vmul.f32 %v4336_v8, %v4278_v63  ;;  %v4370_v53 = vsel %vm4842_vm0, %v4330_v30, %v4336_v8  ;;  %v1874_v17 = vmul.f32 %v4330_v30, %v4354_v35  ;;  %vm4861_vm0 = vmmov %vm4838_vm3 }
 0x5d7   : > { %1791 = vrot.lane.b32.xlu1 %v1775_v26, %s3319_s22  ;;  %v1877_v41 = vpack.c.bf16 %v1868_v22, %v1865_v37  ;;  %v1866_v60 = vmul.f32 %v4370_v53, %v4245_v59  ;;  %v1869_v61 = vmul.f32 %v4370_v53, %v4251_v0  ;;  %v4420_v26 = vld [vmem:[#allocation2 + $0x58] sm:$0xff] }
 0x5d8   : > { %1795 = vrot.lane.b32.xlu0 %v1777_v10, %s3319_s22  ;;  %v4344_v40 = vpop.permute.xlu1 %2030  ;;  %v1879_v15 = vpack.c.bf16 %v1870_v44, %v1867_v28  ;;  %v4424_v10 = vpack.c.bf16 %v4289_v24, %v4264_v25 }
 0x5d9   : > { %v4346_v55 = vpop.permute.xlu0 %2032  ;;  %v1878_v22 = vpack.c.bf16 %v1869_v61, %v1866_v60  ;;  %v4480_v60 = vmul.f32 %v4229_v16, %v4354_v35 }
 0x5db   : > { %1893 = vrot.lane.b32.xlu1 %v1877_v41, %s3320_s24 }
 0x5dc   : > { %v4356_v38 = vpop.permute.xlu1 %2133  ;;  %1897 = vrot.lane.b32.xlu0 %v1879_v15, %s3320_s24  ;;  %v1772_v15 = vmul.f32 %v4308_v12, %v4354_v35  ;;  %v1612_v12 = vpack.c.bf16 %v4480_v60, %v4476_v57 }
 0x5dd   : > { %v4359_v31 = vpop.permute.xlu0 %2135 }
 0x5de   : > { %v2137_v47 = vsel %vm633_vm8, %v4356_v38, %v4359_v31  ;;  %v1778_v33 = vpack.c.bf16 %v1772_v15, %v1769_v1  ;;  %v1770_v1 = vmul.f32 %v4351_v42, %v4264_v25  ;;  %v1773_v15 = vmul.f32 %v4351_v42, %v4289_v24 }
 0x5df   : > { %1966 = vrot.lane.b32.xlu1 %v4318_v32, %s3317_s4  ;;  %v4407_v23 = vmul.f32 %v2137_v47, %v4245_v59  ;;  %v4410_v39 = vmul.f32 %v2137_v47, %v4251_v0  ;;  %v4429_v44 = vmul.f32 %v2137_v47, %v4264_v25  ;;  %v4432_v41 = vmul.f32 %v2137_v47, %v4289_v24 }
 0x5e0   : > { %v4378_v56 = vpop.permute.xlu1 %2308  ;;  %1642 = vrot.lane.b32.xlu0 %v4376_v46, %s3316_s7 }
 0x5e1   : > { %v2307_v50 = vpop.permute.xlu0 %2306  ;;  %v4391_v6 = vmul.f32 %v4378_v56, %v4276_v62  ;;  %v4395_v45 = vmul.f32 %v4378_v56, %v4278_v63 }
 0x5e2   : > { %v2310_v52 = vsel %vm4843_vm5, %v2307_v50, %v4378_v56  ;;  %v4401_v48 = vmul.f32 %v2307_v50, %v4267_v51  ;;  %v4404_v19 = vmul.f32 %v2307_v50, %v4269_v21  ;;  %v4413_v36 = vmul.f32 %v2307_v50, %v4365_v43  ;;  %vm4862_vm5 = vmmov %vm4861_vm0 }
 0x5e3   : > { %1793 = vrot.lane.b32.xlu1 %v1776_v58, %s3319_s22  ;;  %v4416_v37 = vmul.f32 %v2307_v50, %v4354_v35  ;;  %v4438_v34 = vmul.f32 %v2310_v52, %v4245_v59  ;;  %v4441_v20 = vmul.f32 %v2310_v52, %v4251_v0  ;;  %v4445_v58 = vld [vmem:[#allocation2 + $0x40] sm:$0xff]  ;;  %v4452_v61 = vmul.f32 %v2310_v52, %v4264_v25 }
 0x5e4   : > { %1970 = vrot.lane.b32.xlu0 %v4376_v46, %s3317_s4  ;;  %v4463_v49 = vpack.c.bf16 %v4420_v26, %v4445_v58  ;;  %v1871_v50 = vmul.f32 %v4330_v30, %v4365_v43  ;;  %v1873_v42 = vmul.f32 %v4336_v8, %v4445_v58 }
 0x5e6   : > { %v1880_v28 = vpack.c.bf16 %v1874_v17, %v1871_v50  ;;  %v2043_v17 = vmul.f32 %v4346_v55, %v4278_v63  ;;  %v1876_v50 = vmul.f32 %v4336_v8, %v4420_v26 }
 0x5e7   : > { %1895 = vrot.lane.b32.xlu1 %v1878_v22, %s3320_s24  ;;  %v4455_v22 = vmul.f32 %v2310_v52, %v4289_v24  ;;  %v2034_v52 = vsel %vm4844_vm7, %v4344_v40, %v4346_v55 }
 0x5e8   : > { %1644 = vrot.lane.b32.xlu0 %v4424_v10, %s3316_s7  ;;  %v2039_v47 = vmul.f32 %v2034_v52, %v4245_v59  ;;  %v2042_v16 = vmul.f32 %v2034_v52, %v4251_v0  ;;  %v1771_v59 = vmul.f32 %v4314_v29, %v4445_v58  ;;  %v2040_v0 = vmul.f32 %v4346_v55, %v4276_v62 }
 0x5e9   : > { %v1882_v8 = vpack.c.bf16 %v1876_v50, %v1873_v42  ;;  %v2143_v42 = vmul.f32 %v4359_v31, %v4276_v62  ;;  %v2146_v50 = vmul.f32 %v4359_v31, %v4278_v63  ;;  %v2141_v62 = vmul.f32 %v4356_v38, %v4267_v51 }
 0x5ea   : > { %v2051_v30 = vpack.c.bf16 %v2042_v16, %v2039_v47  ;;  %v1872_v16 = vmul.f32 %v4370_v53, %v4264_v25  ;;  %v2144_v63 = vmul.f32 %v4356_v38, %v4269_v21 }
 0x5eb   : > { %1646 = vrot.lane.b32.xlu1 %v4463_v49, %s3316_s7  ;;  %s3326_s7 = smov [#allocation18]  }
 0x5ec   : > { %1797 = vrot.lane.b32.xlu0 %v1778_v33, %s3319_s22  ;;  %v1774_v33 = vmul.f32 %v4314_v29, %v4420_v26  ;;  %v2052_v29 = vpack.c.bf16 %v2043_v17, %v2040_v0  ;;  %v2049_v17 = vmul.f32 %v4346_v55, %v4420_v26 }
 0x5ee   : > { %v1780_v47 = vpack.c.bf16 %v1774_v33, %v1771_v59  ;;  %v2044_v33 = vmul.f32 %v4344_v40, %v4365_v43  ;;  %v2047_v59 = vmul.f32 %v4344_v40, %v4354_v35 }
 0x5ef   : > { %1964 = vrot.lane.b32.xlu1 %v4274_v27, %s3317_s4 }
 0x5f0   : > { %1899 = vrot.lane.b32.xlu0 %v1880_v28, %s3320_s24  ;;  %v1779_v28 = vpack.c.bf16 %v1773_v15, %v1770_v1  ;;  %v2038_v1 = vmul.f32 %v4344_v40, %v4267_v51  ;;  %v2041_v15 = vmul.f32 %v4344_v40, %v4269_v21  ;;  %v2053_v40 = vpack.c.bf16 %v2047_v59, %v2044_v33 }
 0x5f1   : > { %v2152_v51 = vmul.f32 %v4359_v31, %v4420_v26  ;;  %v2153_v21 = vpack.c.bf16 %v2144_v63, %v2141_v62 }
 0x5f3   : > { %2068 = vrot.lane.b32.xlu1 %v2051_v30, %s3321_s27  ;;  %v1875_v30 = vmul.f32 %v4370_v53, %v4289_v24  ;;  %v2046_v53 = vmul.f32 %v4346_v55, %v4445_v58  ;;  %v2150_v55 = vmul.f32 %v4356_v38, %v4354_v35  ;;  %v2048_v35 = vmul.f32 %v2034_v52, %v4289_v24 }
 0x5f4   : > { %1972 = vrot.lane.b32.xlu0 %v4424_v10, %s3317_s4  ;;  %v4847_v24 = vpack.c.bf16 %v4441_v20, %v4438_v34 }
 0x5f5   : > { %v1881_v0 = vpack.c.bf16 %v1875_v30, %v1872_v16  ;;  %v2155_v16 = vpack.c.bf16 %v2146_v50, %v2143_v42  ;;  %v4845_v30 = vpack.c.bf16 %v4410_v39, %v4407_v23  ;;  %v2404_v39 = vld [vmem:[#allocation3] sm:$0x1]  ;;  %v4856_v42 = vpack.c.bf16 %v4258_v2, %v4255_v54 }
 0x5f7   : > { %1974 = vrot.lane.b32.xlu1 %v4463_v49, %s3317_s4  ;;  %s3179_s4 = sshll.u32 %s3326_s7, 4  ;;  %s3180_s4 = int_to_ptr.vmem [resolvable:$false] %s3179_s4 }
 0x5f8   : > { %1799 = vrot.lane.b32.xlu0 %v1779_v28, %s3319_s22  ;;  %v2050_v28 = vpack.c.bf16 %v2041_v15, %v2038_v1  ;;  %v2045_v1 = vmul.f32 %v2034_v52, %v4264_v25  ;;  %v2149_v15 = vmul.f32 %v4359_v31, %v4445_v58  ;;  %v4846_v25 = vpack.c.bf16 %v4432_v41, %v4429_v44 }
 0x5f9   : > { %v4850_v31 = vpack.c.bf16 %v4455_v22, %v4452_v61  ;;  %v1581_v22 = vld [vmem:[#allocation16] sm:$0x1] }
 0x5fa   : > { %v2158_v23 = vpack.c.bf16 %v2152_v51, %v2149_v15  ;;  %v2748_v33 = vcombine.low %v1581_v22, %v1581_v22 }
 0x5fb   : > { %1801 = vrot.lane.b32.xlu1 %v1780_v47, %s3319_s22  ;;  %v2055_v47 = vpack.c.bf16 %v2049_v17, %v2046_v53 }
 0x5fc   : > { %2070 = vrot.lane.b32.xlu0 %v2052_v29, %s3321_s27  ;;  %v2147_v29 = vmul.f32 %v4356_v38, %v4365_v43  ;;  %v2054_v38 = vpack.c.bf16 %v2048_v35, %v2045_v1 }
 0x5fe   : > { %v2156_v43 = vpack.c.bf16 %v2150_v55, %v2147_v29  ;;  %v4858_v29 = vmov 0   ;;  %v4859_v55 = vpack.c.bf16 %v4304_v18, %v4301_v13 }
 0x5ff   : > { %1903 = vrot.lane.b32.xlu1 %v1882_v8, %s3320_s24 }
 0x600   : > { %1901 = vrot.lane.b32.xlu0 %v1881_v0, %s3320_s24 }
 0x603   : > { %2066 = vrot.lane.b32.xlu1 %v2050_v28, %s3321_s27  ;;  %v1628_v28 = vshrl.u32 %v2748_v33, 16 }
 0x604   : > { %2072 = vrot.lane.b32.xlu0 %v2053_v40, %s3321_s27 }
 0x607   : > { %2076 = vrot.lane.b32.xlu1 %v2055_v47, %s3321_s27  ;;  %v4857_v47 = vpack.c.bf16 %v4286_v14, %v4282_v7  ;;  %v2943_v14 = vld [vmem:[#allocation16] ss:$0 sps:$4 sm:$0x22]  }
 0x608   : > { %2173 = vrot.lane.b32.xlu0 %v2155_v16, %s3322_s3  ;;  %v1784_v60 = vrot.slane %v2943_v14, 1  ;;  %v1884_v15 = vshrl.u32 %v2943_v14, 16 }
 0x60b   : > { %2171 = vrot.lane.b32.xlu1 %v4845_v30, %s3322_s3 }
 0x60c   : > { %2175 = vrot.lane.b32.xlu0 %v2156_v43, %s3322_s3 }
 0x60f   : > { %2169 = vrot.lane.b32.xlu1 %v2153_v21, %s3322_s3 }
 0x610   : > { %2074 = vrot.lane.b32.xlu0 %v2054_v38, %s3321_s27 }
 0x613   : > { %2179 = vrot.lane.b32.xlu1 %v2158_v23, %s3322_s3 }
 0x614   : > { %2243 = vrot.lane.b32.xlu0 %v4294_v11, %s3318_s11  ;;  %v2322_v11 = vmul.f32 %v4378_v56, %v4445_v58 }
 0x617   : > { %2241 = vrot.lane.b32.xlu1 %v4318_v32, %s3318_s11  ;;  %v4848_v32 = vpack.c.bf16 %v4395_v45, %v4391_v6 }
 0x618   : > { %2177 = vrot.lane.b32.xlu0 %v4846_v25, %s3322_s3  ;;  %v1886_v25 = vrot.slane %v1884_v15, 1 }
 0x61b   : > { %2239 = vrot.lane.b32.xlu1 %v4274_v27, %s3318_s11  ;;  %v2325_v27 = vmul.f32 %v4378_v56, %v4420_v26  ;;  %v4851_v56 = vpack.c.bf16 %v4416_v37, %v4413_v36 }
 0x61c   : > { %2247 = vrot.lane.b32.xlu0 %v4424_v10, %s3318_s11 }
 0x61f   : > { %2249 = vrot.lane.b32.xlu1 %v4463_v49, %s3318_s11  ;;  %v4849_v49 = vpack.c.bf16 %v4404_v19, %v4401_v48 }
 0x620   : > { %2245 = vrot.lane.b32.xlu0 %v4376_v46, %s3318_s11  ;;  %v2331_v46 = vpack.c.bf16 %v2325_v27, %v2322_v11  ;;  %s3181_s11 = scalar_lea.vmem %s3180_s4, 64 }
 0x623   : > { %2340 = vrot.lane.b32.xlu1 %v4847_v24, %s3324_s21 }
 0x624   : > { %2342 = vrot.lane.b32.xlu0 %v4848_v32, %s3324_s21 }
 0x627   : > { %2338 = vrot.lane.b32.xlu1 %v4849_v49, %s3324_s21  ;;  %v2944_v49 = vld [vmem:[#allocation16] ss:$0 sps:$4 sm:$0x44]  }
 0x628   : > { %2346 = vrot.lane.b32.xlu0 %v4850_v31, %s3324_s21 }
 0x62b   : > { %2348 = vrot.lane.b32.xlu1 %v2331_v46, %s3324_s21 }
 0x62c   : > { %2344 = vrot.lane.b32.xlu0 %v4851_v56, %s3324_s21 }
 0x62f   : > { %2407 = vperm.xlu1 %2931, %v2404_v39  }
 0x641   : > { %v1637_v6 = vpop.permute.xlu1 %1636 }
 0x642   : > { %v1641_v45 = vpop.permute.xlu0 %1640 }
 0x645   : > { %v1639_v26 = vpop.permute.xlu1 %1638 }
 0x646   : > { %v1648_v48 = vsel %vm4852_vm13, %v1637_v6, %v1639_v26  ;;  %v4610_v19 = vpop.permute.xlu0 %1968  ;;  %v1649_v10 = vsel %vm4853_vm6, %v1639_v26, %v1641_v45  ;;  %v1963_v6 = vrot.slane %v2944_v49, 2 }
 0x647   : > { %1659 = vmatprep.subr.bf16.mxu0 %v1649_v10  ;;  %v2057_v10 = vshrl.u32 %v2944_v49, 16 }
 0x648   : > { %1660 = vmatpush1.bf16.msra.mxu0 %v1648_v48 }
 0x649   : > { %v1792_v44 = vpop.permute.xlu1 %1791 }
 0x64a   : > { %v1796_v41 = vpop.permute.xlu0 %1795 }
 0x64d   : > { %v1894_v34 = vpop.permute.xlu1 %1893 }
 0x64e   : > { %v1898_v20 = vpop.permute.xlu0 %1897 }
 0x651   : > { %v1967_v58 = vpop.permute.xlu1 %1966 }
 0x652   : > { %v1643_v61 = vpop.permute.xlu0 %1642  ;;  %v1977_v24 = vsel %vm713_vm2, %v1967_v58, %v4610_v19 }
 0x655   : > { %v1794_v36 = vpop.permute.xlu1 %1793 }
 0x656   : > { %v4613_v37 = vpop.permute.xlu0 %1970  ;;  %v1804_v54 = vsel %vm4838_vm3, %v1794_v36, %v1796_v41  ;;  %v1803_v63 = vsel %vm4860_vm4, %v1792_v44, %v1794_v36 }
 0x659   : > { %v1896_v52 = vpop.permute.xlu1 %1895 }
 0x65a   : > { %v1645_v8 = vpop.permute.xlu0 %1644  ;;  %v1905_v1 = vsel %vm701_vm12, %v1894_v34, %v1896_v52 }
 0x65b   : > { %v1650_v53 = vsel %vm4855_vm15, %v1643_v61, %v1645_v8 }
 0x65d   : > { %v1647_v59 = vpop.permute.xlu1 %1646 }
 0x65e   : > { %v1651_v0 = vsel %vm4854_vm11, %v1645_v8, %v1647_v59  ;;  %v1798_v17 = vpop.permute.xlu0 %1797 }
 0x65f   : > { %1661 = vmatprep.subr.bf16.mxu0 %v1651_v0 }
 0x660   : > { %1662 = vmatpush1.bf16.msra.mxu0 %v1650_v53 }
 0x661   : > { %1703 = vmatprep.subr.bf16.mxu0 %v4856_v42  ;;  %v1965_v50 = vpop.permute.xlu1 %1964 }
 0x662   : > { %v1900_v40 = vpop.permute.xlu0 %1899  ;;  %v1976_v27 = vsel %vm713_vm2, %v1965_v50, %v1967_v58  ;;  %v2059_v58 = vrot.slane %v2057_v10, 2 }
 0x663   : > { %2749 = vmatmul.mubr.msk.bf16.vlgmr.msra.gmra.mrb[8].mxu0 %vm633_vm8, %v1628_v28 }
 0x664   : > { %1704 = vmatpush1.bf16.msra.mxu0 %v4857_v47  ;;  %1735 = vmatprep.mubr.bf16.mxu0 %v4858_v29 }
 0x665   : > { %1705 = vmatprep.subr.bf16.mxu0 %v4859_v55  ;;  %v2069_v16 = vpop.permute.xlu1 %2068 }
 0x666   : > { %v1973_v62 = vpop.permute.xlu0 %1972 }
 0x667   : > { %v1978_v39 = vsel %vm713_vm2, %v4613_v37, %v1973_v62 }
 0x668   : > { %1706 = vmatpush1.bf16.msra.mxu0 %v1612_v12  ;;  %v1906_v12 = vsel %vm701_vm12, %v1896_v52, %v1898_v20  ;;  %v2945_v52 = vld [vmem:[#allocation16] ss:$0 sps:$4 sm:$0x88]  }
 0x669   : > { %1814 = vmatprep.subr.bf16.mxu0 %v1804_v54  ;;  %v1975_v2 = vpop.permute.xlu1 %1974  ;;  %v2162_v53 = vrot.slane %v2945_v52, 3 }
 0x66a   : > { %v1800_v7 = vpop.permute.xlu0 %1799  ;;  %v1979_v31 = vsel %vm713_vm2, %v1973_v62, %v1975_v2 }
 0x66b   : > { %2750 = vmatmul.mubr.msk.bf16.vlgmr.msra.gmra.mrb[12].mxu0 %vm633_vm8, %v1581_v22  ;;  %v1805_v30 = vsel %vm4862_vm5, %v1798_v17, %v1800_v7 }
 0x66c   : > { %1815 = vmatpush1.bf16.msra.mxu0 %v1803_v63  ;;  %1846 = vmatprep.mubr.bf16.mxu0 %v4858_v29 }
 0x66d   : > { %v1802_v13 = vpop.permute.xlu1 %1801 }
 0x66e   : > { %v1806_v18 = vsel %vm4861_vm0, %v1800_v7, %v1802_v13  ;;  %v2071_v57 = vpop.permute.xlu0 %2070 }
 0x66f   : > { %1816 = vmatprep.subr.bf16.mxu0 %v1806_v18  ;;  %v2079_v45 = vsel %vm728_vm1, %v2069_v16, %v2071_v57 }
 0x670   : > { %1817 = vmatpush1.bf16.msra.mxu0 %v1805_v30 }
 0x671   : > { %1916 = vmatprep.subr.bf16.mxu0 %v1906_v12  ;;  %v1904_v43 = vpop.permute.xlu1 %1903 }
 0x672   : > { %v1902_v35 = vpop.permute.xlu0 %1901 }
 0x673   : > { %2752 = vmatmul.mubr.msk.bf16.vlgmr.msra.gmra.mrb[16].mxu0 %vm633_vm8, %v1784_v60  ;;  %v1908_v51 = vsel %vm701_vm12, %v1902_v35, %v1904_v43  ;;  %v1907_v38 = vsel %vm701_vm12, %v1900_v40, %v1902_v35  ;;  %v2236_v40 = vshrl.u32 %v2945_v52, 16  ;;  %v2305_v60 = vld [vmem:[#allocation16 + $0x4] sm:$0x1]  ;;  %vm2487_vm12 = vsmask.f32 1280 }
 0x674   : > { %1917 = vmatpush1.bf16.msra.mxu0 %v1905_v1  ;;  %1948 = vmatprep.mubr.bf16.mxu0 %v4858_v29 }
 0x675   : > { %1918 = vmatprep.subr.bf16.mxu0 %v1908_v51  ;;  %v2067_v21 = vpop.permute.xlu1 %2066  ;;  %v2238_v54 = vrot.slane %v2236_v40, 3 }
 0x676   : > { %v2073_v23 = vpop.permute.xlu0 %2072  ;;  %v2078_v48 = vsel %vm728_vm1, %v2067_v21, %v2069_v16 }
 0x678   : > { %1919 = vmatpush1.bf16.msra.mxu0 %v1907_v38 }
 0x679   : > { %1987 = vmatprep.subr.bf16.mxu0 %v1977_v24  ;;  %v2077_v11 = vpop.permute.xlu1 %2076 }
 0x67a   : > { %v2174_v32 = vpop.permute.xlu0 %2173 }
 0x67b   : > { %2753 = vmatmul.mubr.msk.bf16.vlgmr.msra.gmra.mrb[20].mxu0 %vm633_vm8, %v1886_v25 }
 0x67c   : > { %1988 = vmatpush1.bf16.msra.mxu0 %v1976_v27  ;;  %2019 = vmatprep.mubr.bf16.mxu0 %v4858_v29 }
 0x67d   : > { %1989 = vmatprep.subr.bf16.mxu0 %v1979_v31  ;;  %v2172_v46 = vpop.permute.xlu1 %2171 }
 0x67e   : > { %v2176_v56 = vpop.permute.xlu0 %2175  ;;  %v2182_v61 = vsel %vm743_vm10, %v2172_v46, %v2174_v32 }
 0x680   : > { %1990 = vmatpush1.bf16.msra.mxu0 %v1978_v39 }
 0x681   : > { %2089 = vmatprep.subr.bf16.mxu0 %v2079_v45  ;;  %v2170_v26 = vpop.permute.xlu1 %2169 }
 0x682   : > { %v2075_v19 = vpop.permute.xlu0 %2074  ;;  %v2181_v37 = vsel %vm743_vm10, %v2170_v26, %v2172_v46 }
 0x683   : > { %2755 = vmatmul.mubr.msk.bf16.vlgmr.msra.gmra.mrb[24].mxu0 %vm633_vm8, %v1963_v6  ;;  %v2081_v44 = vsel %vm728_vm1, %v2075_v19, %v2077_v11  ;;  %v2080_v34 = vsel %vm728_vm1, %v2073_v23, %v2075_v19 }
 0x684   : > { %2090 = vmatpush1.bf16.msra.mxu0 %v2078_v48  ;;  %2121 = vmatprep.mubr.bf16.mxu0 %v4858_v29 }
 0x685   : > { %2091 = vmatprep.subr.bf16.mxu0 %v2081_v44  ;;  %v2180_v41 = vpop.permute.xlu1 %2179 }
 0x686   : > { %v2244_v20 = vpop.permute.xlu0 %2243 }
 0x688   : > { %2092 = vmatpush1.bf16.msra.mxu0 %v2080_v34 }
 0x689   : > { %2192 = vmatprep.subr.bf16.mxu0 %v2182_v61  ;;  %v2242_v36 = vpop.permute.xlu1 %2241 }
 0x68a   : > { %v2178_v22 = vpop.permute.xlu0 %2177  ;;  %v2252_v17 = vsel %vm755_vm9, %v2242_v36, %v2244_v20 }
 0x68b   : > { %2756 = vmatmul.mubr.msk.bf16.vlgmr.msra.gmra.mrb[28].mxu0 %vm633_vm8, %v2059_v58  ;;  %v2184_v8 = vsel %vm743_vm10, %v2178_v22, %v2180_v41  ;;  %v2183_v59 = vsel %vm743_vm10, %v2176_v56, %v2178_v22  ;;  %vm2486_vm10 = vcmask 1041409  }
 0x68c   : > { %2193 = vmatpush1.bf16.msra.mxu0 %v2181_v37  ;;  %2224 = vmatprep.mubr.bf16.mxu0 %v4858_v29 }
 0x68d   : > { %2194 = vmatprep.subr.bf16.mxu0 %v2184_v8  ;;  %v2240_v33 = vpop.permute.xlu1 %2239 }
 0x68e   : > { %v2248_v0 = vpop.permute.xlu0 %2247  ;;  %v2251_v42 = vsel %vm755_vm9, %v2240_v33, %v2242_v36 }
 0x690   : > { %2195 = vmatpush1.bf16.msra.mxu0 %v2183_v59 }
 0x691   : > { %2262 = vmatprep.subr.bf16.mxu0 %v2252_v17  ;;  %v2250_v28 = vpop.permute.xlu1 %2249 }
 0x692   : > { %v2246_v50 = vpop.permute.xlu0 %2245  ;;  %v2254_v47 = vsel %vm755_vm9, %v2248_v0, %v2250_v28 }
 0x693   : > { %2758 = vmatmul.mubr.msk.bf16.vlgmr.msra.gmra.mrb[32].mxu0 %vm633_vm8, %v2162_v53  ;;  %v2253_v16 = vsel %vm755_vm9, %v2246_v50, %v2248_v0  ;;  %vm2484_vm9 = vsmask.f32 256 }
 0x694   : > { %2263 = vmatpush1.bf16.msra.mxu0 %v2251_v42  ;;  %2294 = vmatprep.mubr.bf16.mxu0 %v4858_v29 }
 0x695   : > { %2264 = vmatprep.subr.bf16.mxu0 %v2254_v47  ;;  %v2341_v55 = vpop.permute.xlu1 %2340 }
 0x696   : > { %v2343_v62 = vpop.permute.xlu0 %2342 }
 0x697   : > { %v2351_v2 = vsel %vm767_vm14, %v2341_v55, %v2343_v62 }
 0x698   : > { %2265 = vmatpush1.bf16.msra.mxu0 %v2253_v16 }
 0x699   : > { %2361 = vmatprep.subr.bf16.mxu0 %v2351_v2  ;;  %v2339_v63 = vpop.permute.xlu1 %2338 }
 0x69a   : > { %v2350_v7 = vsel %vm767_vm14, %v2339_v63, %v2341_v55  ;;  %v2347_v14 = vpop.permute.xlu0 %2346  ;;  %v3325_v55 = vmov 1966171168  }
 0x69b   : > { %2759 = vmatmul.mubr.msk.bf16.vlgmr.msra.gmra.mrb[36].mxu0 %vm633_vm8, %v2238_v54  ;;  %v2432_v16 = vunpack.c.l.s4 %v3325_v55  ;;  %v2946_v54 = vld [vmem:[%s441_s25] sm:$0x3]  ;;  %s504_s25 = scalar_lea.vmem [#allocation18], %s3678_s5 }
 0x69c   : > { %2362 = vmatpush1.bf16.msra.mxu0 %v2350_v7  ;;  %2393 = vmatprep.mubr.bf16.mxu0 %v4858_v29  ;;  %v2419_v2 = vrot.slane %v2946_v54, %v3716_v4  ;;  %s2513_s30 = sshll.u32 %s504_s25, 4  ;;  %s4693_s30 = int_to_ptr.vmem [resolvable:$true] %s2513_s30 }
 0x69d   : > { %v2349_v13 = vpop.permute.xlu1 %2348  ;;  %s3175_s13 = scalar_lea.vmem %s4693_s30, 32  ;;  %p3182_p9 = scmp.lt.s32.totalorder %s4693_s30, %s3180_s4 }
 0x69e   : > { %v2353_v18 = vsel %vm767_vm14, %v2347_v14, %v2349_v13  ;;  %v2345_v30 = vpop.permute.xlu0 %2344  ;;  %v2423_v13 = vrot.slane %v2946_v54, %v3719_v5  ;;  %p3176_p13 = scmp.ne.s32.totalorder %s4693_s30, %s3175_s13  ;;  %p3183_p6 = scmp.lt.s32.totalorder %s3181_s11, %s3175_s13 }
 0x69f   : > { %2363 = vmatprep.subr.bf16.mxu0 %v2353_v18  ;;  %v2352_v57 = vsel %vm767_vm14, %v2345_v30, %v2347_v14  ;;  %v2433_v30 = vunpack.c.0.s8 %v2432_v16 }
 0x6a0   : > { %2364 = vmatpush1.bf16.msra.mxu0 %v2352_v57  ;;  %p3177_p10 = pnand %p3176_p13, %p4864_p0  ;;  %p3184_p2 = por %p3183_p6, %p3182_p9 }
 0x6a2   : > { %p3178_p11 = pneg %p3177_p10 }
 0x6a3   : > { %2760 = vmatmul.mubr.msk.bf16.vlgmr.msra.gmra.mrb[40].mxu0 %vm633_vm8, %v2305_v60 }
 0x6a4   : > { %p3185_p8 = pnand %p3184_p2, %p3178_p11 }
 0x6ae   : > { %v2408_v47 = vpop.permute.xlu1 %2407 }
 0x6af   : > { %v2413_v63 = vrot.slane %v2408_v47, %v3716_v4 }
 0x736   : > { %v1693_v12 = vpop.f32.mrb[8].mxu0 }
 0x737   : > { %v1695_v43 = vpop.f32.mrb[9].mxu0 }
 0x738   : > { %v1697_v1 = vpop.f32.mrb[10].mxu0 }
 0x739   : > { %v1698_v35 = vpop.f32.mrb[11].mxu0 }
 0x73e   : > { %v1737_v15 = vpop.f32.mrb[12].mxu0 }
 0x73f   : > { %v1738_v51 = vadd.f32 %v1737_v15, %v1693_v12  ;;  %v1739_v21 = vpop.f32.mrb[13].mxu0  ;;  %v2436_v15 = vsub.s32 %v2433_v30, %v3713_v3 }
 0x740   : > { %v1740_v38 = vadd.f32 %v1739_v21, %v1695_v43  ;;  %v1741_v29 = vpop.f32.mrb[14].mxu0 }
 0x741   : > { %v1742_v23 = vpop.f32.mrb[15].mxu0 }
 0x742   : > { %v4863_v23 = vlaneseq }
 0x744   : > { %vm2449_vm8 = vcmp.lt.s32.totalorder %v4863_v23, 256 }
 0x746   : > { %v1848_v25 = vpop.f32.mrb[16].mxu0 }
 0x747   : > { %v1855_v24 = vadd.f32 %v1848_v25, %v1738_v51  ;;  %v1850_v11 = vpop.f32.mrb[17].mxu0 }
 0x748   : > { %v1856_v27 = vadd.f32 %v1850_v11, %v1740_v38  ;;  %v1852_v32 = vpop.f32.mrb[18].mxu0 }
 0x749   : > { %v1853_v49 = vpop.f32.mrb[19].mxu0 }
 0x74e   : > { %v1950_v31 = vpop.f32.mrb[20].mxu0 }
 0x74f   : > { %v1957_v46 = vadd.f32 %v1950_v31, %v1855_v24  ;;  %v1952_v39 = vpop.f32.mrb[21].mxu0 }
 0x750   : > { %v1958_v56 = vadd.f32 %v1952_v39, %v1856_v27  ;;  %v1954_v6 = vpop.f32.mrb[22].mxu0 }
 0x751   : > { %v1955_v45 = vpop.f32.mrb[23].mxu0 }
 0x756   : > { %v2021_v26 = vpop.f32.mrb[24].mxu0 }
 0x757   : > { %v2028_v48 = vadd.f32 %v2021_v26, %v1957_v46  ;;  %v2023_v19 = vpop.f32.mrb[25].mxu0 }
 0x758   : > { %v2029_v10 = vadd.f32 %v2023_v19, %v1958_v56  ;;  %v2025_v44 = vpop.f32.mrb[26].mxu0 }
 0x759   : > { %v2026_v41 = vpop.f32.mrb[27].mxu0 }
 0x75e   : > { %v2123_v34 = vpop.f32.mrb[28].mxu0 }
 0x75f   : > { %v2130_v20 = vadd.f32 %v2123_v34, %v2028_v48  ;;  %v2125_v58 = vpop.f32.mrb[29].mxu0 }
 0x760   : > { %v2131_v61 = vadd.f32 %v2125_v58, %v2029_v10  ;;  %v2127_v36 = vpop.f32.mrb[30].mxu0 }
 0x761   : > { %v2128_v37 = vpop.f32.mrb[31].mxu0 }
 0x766   : > { %v2226_v22 = vpop.f32.mrb[32].mxu0 }
 0x767   : > { %v2233_v52 = vadd.f32 %v2226_v22, %v2130_v20  ;;  %v2228_v8 = vpop.f32.mrb[33].mxu0 }
 0x768   : > { %v2234_v33 = vadd.f32 %v2228_v8, %v2131_v61  ;;  %v2230_v59 = vpop.f32.mrb[34].mxu0 }
 0x769   : > { %v2231_v0 = vpop.f32.mrb[35].mxu0 }
 0x76e   : > { %v2296_v53 = vpop.f32.mrb[36].mxu0 }
 0x76f   : > { %v2303_v17 = vadd.f32 %v2296_v53, %v2233_v52  ;;  %v2298_v28 = vpop.f32.mrb[37].mxu0 }
 0x770   : > { %v2304_v42 = vadd.f32 %v2298_v28, %v2234_v33  ;;  %v2300_v50 = vpop.f32.mrb[38].mxu0 }
 0x771   : > { %v2301_v40 = vpop.f32.mrb[39].mxu0 }
 0x776   : > { %v2395_v62 = vpop.f32.mrb[40].mxu0 }
 0x777   : > { %v2402_v7 = vadd.f32 %v2395_v62, %v2303_v17  ;;  %v2397_v14 = vpop.f32.mrb[41].mxu0 }
 0x778   : > { %v2403_v18 = vadd.f32 %v2397_v14, %v2304_v42  ;;  %v2399_v57 = vpop.f32.mrb[42].mxu0 }
 0x779   : > { %v2414_v60 = vadd.f32 %v2413_v63, %v2402_v7  ;;  %v2400_v12 = vpop.f32.mrb[43].mxu0 }
 0x77a   : > { %v2415_v43 = vadd.f32 %v2413_v63, %v2403_v18 }
 0x77b   : > { %v2426_v1 = vmul.f32 %v2419_v2, %v2414_v60 }
 0x77c   : > { %v2427_v35 = vmul.f32 %v2423_v13, %v2415_v43 }
 0x77e   : > { %v2430_v51 = vcombine.low %v2426_v1, %v2427_v35 }
 0x780   : > { %v2437_v21 = vrot.slane %v2430_v51, %v2436_v15 }
 0x782   : > { %v2444_v38 = vrot.slane %v2437_v21, %v2436_v15 }
 0x784   : > { %v2446_v29 = vadd.f32 %v2444_v38, %v3724_v9 }
 0x786   : > { %v2447_v25 = vmul.f32 255.0, %v2446_v29 }
 0x788   : > { %v2456_v3 = vrot.slane %v2447_v25, %v3716_v4  ;;  %v2460_v9 = vrot.slane %v2447_v25, %v3719_v5  ;;  %2451 = vst.msk [vmem:[%s504_s25] sm:$0x3] %vm2449_vm8, %v2447_v25 }
 0x789   : > { %3188 = shalt.err (!%p3185_p8)
}
 0x78a   : > { %s3189_s22 = scalar_lea.hbm %s4691_s23, 32  ;;  %s3193_s3 = scalar_lea.hbm %s4782_s9, 64 }
 0x78b   : > { %p3190_p12 = scmp.ne.s32.totalorder %s4691_s23, %s3189_s22  ;;  %p3194_p4 = scmp.lt.u32.totalorder %s4691_s23, %s4782_s9 }
 0x78c   : > { %p3195_p1 = scmp.lt.u32.totalorder %s3193_s3, %s3189_s22  ;;  %p3197_p13 = scmp.lt.u32.totalorder %s3189_s22, %s4691_s23 }
 0x78d   : > { %p3191_p5 = pnand %p3190_p12, %p4864_p0 }
 0x78e   : > { %p3196_p3 = por %p3195_p1, %p3194_p4 }
 0x78f   : > { %p3192_p7 = pneg %p3191_p5 }
 0x790   : > { %p3198_p10 = por %p3197_p13, %p3196_p3 }
 0x792   : > { %p3199_p11 = pnand %p3198_p10, %p3192_p7 }
 0x794   : > { %3202 = shalt.err (!%p3199_p11)
}
 0x795   : > { %2818 = dma.vmem_to_hbm [thread:$0]  (%p4864_p0), %s4693_s30, 32, %s4691_s23, %s2494_s8   ;;  %vm4865_vm1 = vcmask 1040384   ;;  %v2761_v4 = vpack.c.bf16 %v2460_v9, %v2456_v3  ;;  %vm2488_vm14 = vmand %vm2486_vm10, %vm2487_vm12 }
 0x796   : > { %vm2485_vm2 = vmand %vm4865_vm1, %vm2484_vm9  ;;  %s511_s6 = scalar_lea.vmem [#allocation19], %s3678_s5  ;;  %s4729_s4 = scalar_lea.hbm %s4783_s10, %s2772_s29 }
 0x797   : > { %v2474_v5 = vrot.slane %v2761_v4, %v2436_v15  ;;  %s2527_s19 = sshll.u32 %s511_s6, 4  ;;  %vm2489_vm7 = vmor %vm2488_vm14, %vm2485_vm2  ;;  %v2490_v24 = vld [vmem:[%s511_s6] sm:$0x3]  ;;  %s2499_s30 = scalar_lea.sflag [#allocation20], %s3675_s28  ;;  %s4731_s19 = int_to_ptr.vmem [resolvable:$true] %s2527_s19 }
 0x798   : > { %s3203_s23 = scalar_lea.vmem %s4731_s19, 32  ;;  %s3327_s5 = smov [#allocation19]  }
 0x799   : > { %v2481_v11 = vrot.slane %v2474_v5, %v2436_v15  ;;  %p3204_p9 = scmp.ne.s32.totalorder %s4731_s19, %s3203_s23  ;;  %s3207_s20 = sshll.u32 %s3327_s5, 4  ;;  %s3208_s20 = int_to_ptr.vmem [resolvable:$false] %s3207_s20 }
 0x79a   : > { %s3209_s8 = scalar_lea.vmem %s3208_s20, 64  ;;  %p3210_p8 = scmp.lt.s32.totalorder %s4731_s19, %s3208_s20 }
 0x79b   : > { %v2491_v27 = vsel %vm2489_vm7, %v2481_v11, %v2490_v24  ;;  %p3205_p6 = pnand %p3204_p9, %p4864_p0  ;;  %p3211_p12 = scmp.lt.s32.totalorder %s3209_s8, %s3203_s23 }
 0x79c   : > { %2492 = vst [vmem:[%s511_s6] sm:$0x3] %v2491_v27 }
 0x79d   : > { %p3206_p2 = pneg %p3205_p6  ;;  %p3212_p5 = por %p3211_p12, %p3210_p8 }
 0x79f   : > { %p3213_p7 = pnand %p3212_p5, %p3206_p2 }
 0x7a1   : > { %3216 = shalt.err (!%p3213_p7)
}
 0x7a2   : > { %s3217_s28 = scalar_lea.hbm %s4729_s4, 32  ;;  %s3221_s22 = scalar_lea.hbm %s4783_s10, 64 }
 0x7a3   : > { %p3218_p4 = scmp.ne.s32.totalorder %s4729_s4, %s3217_s28  ;;  %p3222_p13 = scmp.lt.u32.totalorder %s4729_s4, %s4783_s10 }
 0x7a4   : > { %p3223_p10 = scmp.lt.u32.totalorder %s3221_s22, %s3217_s28  ;;  %p3225_p9 = scmp.lt.u32.totalorder %s3217_s28, %s4729_s4 }
 0x7a5   : > { %p3219_p1 = pnand %p3218_p4, %p4864_p0 }
 0x7a6   : > { %p3224_p11 = por %p3223_p10, %p3222_p13 }
 0x7a7   : > { %p3220_p3 = pneg %p3219_p1 }
 0x7a8   : > { %p3226_p6 = por %p3225_p9, %p3224_p11 }
 0x7aa   : > { %p3227_p2 = pnand %p3226_p6, %p3220_p3 }
 0x7ac   : > { %3230 = shalt.err (!%p3227_p2)
}
 0x7ad   : > { %2819 = dma.vmem_to_hbm [thread:$0]  (%p4864_p0), %s4731_s19, 32, %s4729_s4, %s2499_s30  }
 0x7ae PF: > { %s2539_s3 = sand.u32 1, %s3281_s15   ;;  %p4866_p8 = scmp.ne.s32.totalorder %s4820_s2, 0 }
 0x7af   : > { %p4867_p12 = scmp.ge.s32.totalorder %s3293_s18, 2  ;;  %s2540_s21 = scalar_lea.sflag [#allocation6], %s2539_s3 }
 0x7b1   : > { %p2849_p5 = pnand %p4867_p12, %p4866_p8 }
 0x7b3   : > { %3272 = dma.done.wait (!%p2849_p5), %s2540_s21, 32  }
 0x7b4   : > { %3274 = vsyncadd (!%p2849_p5), %s2540_s21, 4294967264  ;;  %s2549_s25 = scalar_lea.sflag [#allocation20], %s2539_s3 }
 0x7b5   : > { %3276 = dma.done.wait (!%p2849_p5), %s2549_s25, 32  }
 0x7b6   : > { %3278 = vsyncadd (!%p2849_p5), %s2549_s25, 4294967264  ;;  %p35_p0 = scmp.ge.s32.totalorder %s3568_s12, 4   ;;  %s4868_s15 = smov %s3285_s16 }
 0x7b7   : > { %s4869_s16 = smov %s3289_s17  ;;  %s4870_s17 = smov %s3579_s14 }
 0x7b8   : > { %s4871_s18 = smov %s3568_s12  ;;  %37 = sbr.rel (!%p35_p0) target bundleno = 19 (0x13), region = 157 }
 0x7bf   :  { %2554 = vsyncpa [#allocation5], 1 }
 0x7c0   :  { %2556 = vsyncpa [#allocation5 + $0x1], 1 }
 0x7c1   :  { %2557 = vsyncpa [#allocation8], 1 }
 0x7c2   :  { %2559 = vsyncpa [#allocation8 + $0x1], 1 }
 0x7c3   :  { %2560 = vsyncpa [#allocation11], 1 }
 0x7c4   :  { %2561 = vsyncpa [#allocation14], 1 }
 0x7c5   :  { %2562 = vsyncpa [#allocation17], 1 }
 0x7c6   :  { %2563 = vsyncpa [#allocation6], 1 }
 0x7c7   :  { %2565 = vsyncpa [#allocation6 + $0x1], 1 }
 0x7c8   :  { %2566 = vsyncpa [#allocation20], 1 }
 0x7c9   :  { %2568 = vsyncpa [#allocation20 + $0x1], 1 }

</bundles_post_ra>
